<compile_context>
chip_gen: v5e
topology: v5e:2x2
jax: 0.10.0
libtpu: 0.0.40
codegen_flags: <defaults>
</compile_context>

<pallas_src>
import functools
import math

import jax
import jax.numpy as jnp
import numpy as np
from jax.experimental import pallas as pl
from jax.experimental.pallas import tpu as pltpu

# ----- small synthetic Flan-T5-ish config (small shapes, same structure) -----
VOCAB = 128
D_MODEL = 64
N_HEADS = 4
D_KV = 16
INNER = N_HEADS * D_KV
D_FF = 128
N_LAYERS = 2
N_BUCKETS = 32
MAX_DIST = 128
IMG_DIM = 32
SEQ = 8
EPS = 1e-6


def mdot(a, b):
    # Default MXU precision; f32 accumulation.
    return jnp.dot(a, b, preferred_element_type=jnp.float32)


def _rms(x, w):
    # T5 LayerNorm: no mean subtraction, no bias.
    var = jnp.mean(x * x, axis=-1, keepdims=True)
    return x * jax.lax.rsqrt(var + EPS) * w


def _gelu_new(x):
    return 0.5 * x * (1.0 + jnp.tanh(0.7978845608028654 * (x + 0.044715 * x * x * x)))


# ---------------------------------------------------------------------------
# relative position bias (HF T5, bidirectional) -- plain-JAX glue, tiny table
# ---------------------------------------------------------------------------
def _relative_position_bucket(rel_pos, num_buckets=N_BUCKETS, max_distance=MAX_DIST):
    num_buckets = num_buckets // 2
    buckets = (rel_pos > 0).astype(jnp.int32) * num_buckets
    n = jnp.abs(rel_pos)
    max_exact = num_buckets // 2
    is_small = n < max_exact
    nf = jnp.maximum(n, 1).astype(jnp.float32)
    large = max_exact + (
        jnp.log(nf / max_exact) / math.log(max_distance / max_exact)
        * (num_buckets - max_exact)
    ).astype(jnp.int32)
    large = jnp.minimum(large, num_buckets - 1)
    return buckets + jnp.where(is_small, n, large)


def compute_position_bias(seq_len, rel_emb):
    ctx = jnp.arange(seq_len)[:, None]
    mem = jnp.arange(seq_len)[None, :]
    buckets = _relative_position_bucket(mem - ctx)              # (S, S)
    bias = jnp.take(rel_emb, buckets, axis=0)                   # (S, S, H)
    return jnp.transpose(bias, (2, 0, 1)).astype(jnp.float32)   # (H, S, S)


# ---------------------------------------------------------------------------
# Kernel 1: T5 encoder layer.  grid = (N_LAYERS,); the (B*S, D) output block is
# resident across the layer axis and is the hidden-state accumulator.  All weight
# stacks are VMEM-resident (constant index_map) and indexed by layer in-kernel.
# ---------------------------------------------------------------------------
def t5_layer_kernel(x_ref, bias_ref, ln1_ref, wq_ref, wk_ref, wv_ref, wo_ref,
                    ln2_ref, wff_ref, woff_ref, lnf_ref, out_ref,
                    s_scr, ctx_scr, *, n_heads, d_kv, d_ff):
    layer = pl.program_id(0)
    last = pl.num_programs(0) - 1

    @pl.when(layer == 0)
    def _():
        # Output block is aliased to the embedding HBM buffer, but its VMEM window is
        # write-only, so one copy seeds the accumulator at layer 0.
        out_ref[...] = x_ref[...]

    x = out_ref[...]                                   # (BS, D) running hidden state

    # ---- self-attention (T5: no 1/sqrt(dk); bias = rel-pos + mask, block-diag) ----
    xn = _rms(x, ln1_ref[layer])
    q = mdot(xn, wq_ref[layer])                        # (BS, INNER) lane-aligned
    k = mdot(xn, wk_ref[layer])
    v = mdot(xn, wv_ref[layer])

    # all-head scores into a VMEM scratch -> single bias add + single softmax chain
    for h in range(n_heads):
        sl = slice(h * d_kv, (h + 1) * d_kv)
        s_scr[h] = jax.lax.dot_general(q[:, sl], k[:, sl],
                                       (((1,), (1,)), ((), ())),
                                       preferred_element_type=jnp.float32)  # (BS, BS)

    s = s_scr[...] + bias_ref[...]                     # (H, BS, BS)
    s = s - jnp.max(s, axis=-1, keepdims=True)
    e = jnp.exp(s)
    p = e * pl.reciprocal(jnp.sum(e, axis=-1, keepdims=True), approx=True)

    # per-head PV accumulated into a single (BS, INNER) context buffer,
    # then ONE K=INNER output projection (instead of 4 K=d_kv passes).
    for h in range(n_heads):
        sl = slice(h * d_kv, (h + 1) * d_kv)
        ctx_scr[:, sl] = mdot(p[h], v[:, sl])          # (BS, d_kv)

    x = x + mdot(ctx_scr[...], wo_ref[layer])          # (BS, D)

    # ---- gated-GELU feed-forward (wi0 | wi1 fused; slices at 0 / 128 lanes) ----
    xn2 = _rms(x, ln2_ref[layer])
    hff = mdot(xn2, wff_ref[layer])                    # (BS, 2*D_FF)
    hg = _gelu_new(hff[:, :d_ff]) * hff[:, d_ff:]
    x = x + mdot(hg, woff_ref[layer])

    @pl.when(layer != last)
    def _():
        out_ref[...] = x

    @pl.when(layer == last)
    def _():
        out_ref[...] = _rms(x, lnf_ref[...])           # final T5 LayerNorm, from regs


def t5_encode(token_ids, attn_mask, p):
    B, S = token_ids.shape
    BS = B * S
    D = D_MODEL

    x_emb = jnp.take(p['emb'], token_ids.reshape(-1), axis=0).astype(jnp.float32)  # (BS, D)

    # combined additive bias (H, BS, BS): block-diagonal over the folded batch,
    # rel-pos bias where (same batch row AND key unmasked), else a single -1e9.
    posb = compute_position_bias(S, p['rel_emb'])                      # (H, S, S)
    posb_full = jnp.tile(posb, (1, B, B))                              # (H, BS, BS)
    key_valid = attn_mask.reshape(1, 1, BS) > 0
    row_batch = jnp.arange(BS) // S
    same = (row_batch[:, None] == row_batch[None, :])[None]            # (1, BS, BS)
    bias = jnp.where(same & key_valid, posb_full, -1e9).astype(jnp.float32)
    # NOTE: a fully padded query row would softmax to uniform; position 0 (CLS) is
    # always unmasked here, matching the reference encoder.

    args = (x_emb, bias, p['ln1'], p['wq'], p['wk'], p['wv'], p['wo'],
            p['ln2'], p['wff'], p['wo_ff'], p['final_ln'])

    def full(a):
        nd = a.ndim
        return pl.BlockSpec(a.shape, lambda l: (0,) * nd)

    flops = N_LAYERS * (2 * BS * D * 3 * INNER            # QKV projections
                        + 2 * 2 * N_HEADS * BS * BS * D_KV  # scores + PV
                        + 2 * BS * INNER * D               # output projection
                        + 2 * BS * D * 2 * D_FF            # fused wi0|wi1
                        + 2 * BS * D_FF * D)               # FFN out
    transcendentals = N_LAYERS * (N_HEADS * BS * BS + BS * D_FF)
    bytes_accessed = (sum(int(np.prod(a.shape)) for a in args) + BS * D) * 4

    out = pl.pallas_call(
        functools.partial(t5_layer_kernel, n_heads=N_HEADS, d_kv=D_KV, d_ff=D_FF),
        out_shape=jax.ShapeDtypeStruct((BS, D), jnp.float32),
        grid_spec=pltpu.PrefetchScalarGridSpec(
            num_scalar_prefetch=0, grid=(N_LAYERS,),
            in_specs=[full(a) for a in args],
            out_specs=pl.BlockSpec((BS, D), lambda l: (0, 0)),
            scratch_shapes=[pltpu.VMEM((N_HEADS, BS, BS), jnp.float32),   # scores
                            pltpu.VMEM((BS, INNER), jnp.float32)]),      # attn ctx
        input_output_aliases={0: 0},            # donate x_emb buffer to the output
        compiler_params=pltpu.CompilerParams(
            dimension_semantics=("arbitrary",),
            vmem_limit_bytes=16 * 1024 * 1024),
        cost_estimate=pl.CostEstimate(flops=flops,
                                      transcendentals=transcendentals,
                                      bytes_accessed=bytes_accessed),
    )(*args)
    return out.reshape(B, S, D)


# ---------------------------------------------------------------------------
# Kernel 2: classifier MLP over fused [state_txt | img_proj | act_cls].
# img_proj (affine) is folded into the classifier's first layer in the wrapper, so
# the kernel is a 2-matmul transposed MLP producing a lane-dense (1, Ba) score row.
# TODO(synk): this tiny grid=(1,) call could alternatively be left to plain XLA or
#             appended as a final grid step of the encoder call.
# ---------------------------------------------------------------------------
def fusion_kernel(inT_ref, w1T_ref, b1_ref, w2T_ref, b2_ref, scores_ref):
    hT = jnp.maximum(mdot(w1T_ref[...], inT_ref[...]) + b1_ref[...], 0.0)   # (D, Ba)
    scores_ref[...] = mdot(w2T_ref[...], hT) + b2_ref[...]                  # (1, Ba)


def fused_scores(state_txt_rep, state_img_rep, act_cls, p):
    Ba, D = act_cls.shape
    # Pre-split cls_w1 into its three (D, D) blocks and fold img_proj into the middle
    # block (exact affine composition), done once in XLA — no in-kernel lane slices.
    w1_txt = p['cls_w1'][:D]
    w1_img = p['cls_w1'][D:2 * D]
    w1_act = p['cls_w1'][2 * D:]
    w1f = jnp.concatenate([w1_txt, jnp.dot(p['img_w'], w1_img), w1_act], axis=0)  # (2D+IMG, D)
    b1f = p['cls_b1'] + jnp.dot(p['img_b'], w1_img)                               # (1, D)

    inT = jnp.concatenate([state_txt_rep, state_img_rep, act_cls], axis=-1).T     # (2D+IMG, Ba)
    args = (inT, w1f.T, b1f.T, p['cls_w2'].T, p['cls_b2'].reshape(1, 1))

    def full(a):
        nd = a.ndim
        return pl.BlockSpec(a.shape, lambda i: (0,) * nd)

    return pl.pallas_call(
        fusion_kernel,
        out_shape=jax.ShapeDtypeStruct((1, Ba), jnp.float32),
        grid_spec=pltpu.PrefetchScalarGridSpec(
            num_scalar_prefetch=0, grid=(1,),
            in_specs=[full(a) for a in args],
            out_specs=pl.BlockSpec((1, Ba), lambda i: (0, 0))),
        compiler_params=pltpu.CompilerParams(dimension_semantics=("arbitrary",)),
    )(*args)


# ---------------------------------------------------------------------------
# forward() equivalent
# ---------------------------------------------------------------------------
def t5_webshop_forward(params, state_ids, state_mask, state_img,
                       act_ids, act_mask, sizes, labels=None):
    Bs = state_ids.shape[0]
    # single encoder call over the concatenated [states ; actions] batch
    all_ids = jnp.concatenate([state_ids, act_ids], axis=0)
    all_mask = jnp.concatenate([state_mask, act_mask], axis=0)
    cls = t5_encode(all_ids, all_mask, params)[:, 0, :]        # (Bs+Ba, D)
    state_cls = cls[:Bs]
    act_cls = cls[Bs:]

    # repeat_interleave of state rows over their action counts (sizes is static)
    rep_idx = jnp.asarray(np.repeat(np.arange(len(sizes)), sizes), dtype=jnp.int32)
    st_txt_rep = jnp.take(state_cls, rep_idx, axis=0)
    st_img_rep = jnp.take(state_img, rep_idx, axis=0)

    scores = fused_scores(st_txt_rep, st_img_rep, act_cls, params)[0]  # (Ba,)

    logits, off = [], 0
    for sz in sizes:
        logits.append(scores[off:off + sz])
        off += sz

    loss = None
    if labels is not None:
        logps = [jax.nn.log_softmax(lg)[lbl] for lg, lbl in zip(logits, labels)]
        loss = -sum(logps) / len(logps)
    return loss, logits


# ---------------------------------------------------------------------------
# pure-JAX reference (same math, default precision) for a correctness check
# ---------------------------------------------------------------------------
def ref_encode(token_ids, attn_mask, p):
    x = jnp.take(p['emb'], token_ids, axis=0).astype(jnp.float32)
    B, S, D = x.shape
    maskb = (1.0 - attn_mask.astype(jnp.float32))[:, None, None, :] * -1e9
    posb = compute_position_bias(S, p['rel_emb'])[None]
    for l in range(N_LAYERS):
        xn = _rms(x, p['ln1'][l])
        q = jnp.einsum('bsd,de->bse', xn, p['wq'][l]).reshape(B, S, N_HEADS, D_KV)
        k = jnp.einsum('bsd,de->bse', xn, p['wk'][l]).reshape(B, S, N_HEADS, D_KV)
        v = jnp.einsum('bsd,de->bse', xn, p['wv'][l]).reshape(B, S, N_HEADS, D_KV)
        s = jnp.einsum('bqhe,bkhe->bhqk', q, k) + posb + maskb
        pr = jax.nn.softmax(s, axis=-1)
        o = jnp.einsum('bhqk,bkhe->bqhe', pr, v).reshape(B, S, INNER)
        x = x + jnp.einsum('bse,ed->bsd', o, p['wo'][l])
        xn2 = _rms(x, p['ln2'][l])
        hg = _gelu_new(jnp.einsum('bsd,df->bsf', xn2, p['wi0'][l])) \
            * jnp.einsum('bsd,df->bsf', xn2, p['wi1'][l])
        x = x + jnp.einsum('bsf,fd->bsd', hg, p['wo_ff'][l])
    return _rms(x, p['final_ln'])


def ref_forward(params, state_ids, state_mask, state_img, act_ids, act_mask, sizes, labels):
    st_cls = ref_encode(state_ids, state_mask, params)[:, 0, :]
    act_cls = ref_encode(act_ids, act_mask, params)[:, 0, :]
    img_p = mdot(state_img, params['img_w']) + params['img_b']
    state_vec = jnp.concatenate([st_cls, img_p], axis=-1)
    state_rep = state_vec[np.repeat(np.arange(len(sizes)), sizes)]
    fused = jnp.concatenate([state_rep, act_cls], axis=-1)
    h = jnp.maximum(mdot(fused, params['cls_w1']) + params['cls_b1'], 0.0)
    scores = (mdot(h, params['cls_w2']) + params['cls_b2'])[:, 0]
    logits, off = [], 0
    for sz in sizes:
        logits.append(scores[off:off + sz])
        off += sz
    logps = [jax.nn.log_softmax(lg)[lbl] for lg, lbl in zip(logits, labels)]
    loss = -sum(logps) / len(logps)
    return loss, logits


# ---------------------------------------------------------------------------
# deterministic parameter init (synthetic stand-in for the pretrained encoder)
# ---------------------------------------------------------------------------
def init_params(key):
    ks = iter(jax.random.split(key, 16))
    n = lambda shape, scale=0.02: scale * jax.random.normal(next(ks), shape, jnp.float32)
    wq = n((N_LAYERS, D_MODEL, INNER))
    wk = n((N_LAYERS, D_MODEL, INNER))
    wv = n((N_LAYERS, D_MODEL, INNER))
    wo = n((N_LAYERS, INNER, D_MODEL))
    wi0 = n((N_LAYERS, D_MODEL, D_FF))
    wi1 = n((N_LAYERS, D_MODEL, D_FF))
    p = dict(
        emb=n((VOCAB, D_MODEL), 1.0),
        rel_emb=n((N_BUCKETS, N_HEADS), 0.1),
        ln1=jnp.ones((N_LAYERS, 1, D_MODEL), jnp.float32),
        wq=wq, wk=wk, wv=wv, wo=wo,
        ln2=jnp.ones((N_LAYERS, 1, D_MODEL), jnp.float32),
        wi0=wi0, wi1=wi1,
        wo_ff=n((N_LAYERS, D_FF, D_MODEL)),
        final_ln=jnp.ones((1, D_MODEL), jnp.float32),
        img_w=n((IMG_DIM, D_MODEL)),
        img_b=jnp.zeros((1, D_MODEL), jnp.float32),
        cls_w1=n((3 * D_MODEL, D_MODEL)),
        cls_b1=jnp.zeros((1, D_MODEL), jnp.float32),
        cls_w2=n((D_MODEL, 1)),
        cls_b2=jnp.zeros((1, 1), jnp.float32),
    )
    # MXU-friendly fused FFN weight (wi0|wi1): output slices land on 128-lane tiles.
    p['wff'] = jnp.concatenate([wi0, wi1], axis=-1)      # (L, D, 2*D_FF) = (.., 64, 256)
    return p


if __name__ == "__main__":
    key = jax.random.PRNGKey(0)
    kp, k1, k2, k3, k4 = jax.random.split(key, 5)
    params = init_params(kp)

    B_S = 2                       # number of states
    sizes = [2, 3]                # actions per state (static python list, like the module)
    labels = [1, 0]
    B_A = sum(sizes)

    state_ids = jax.random.randint(k1, (B_S, SEQ), 1, VOCAB, dtype=jnp.int32)
    state_mask = jnp.array([[1] * SEQ, [1] * 6 + [0] * 2], dtype=jnp.int32)
    state_img = 0.1 * jax.random.normal(k2, (B_S, IMG_DIM), jnp.float32)
    act_ids = jax.random.randint(k3, (B_A, SEQ), 1, VOCAB, dtype=jnp.int32)
    act_mask = (jax.random.uniform(k4, (B_A, SEQ)) > 0.2).astype(jnp.int32)
    act_mask = act_mask.at[:, 0].set(1)

    loss, logits = t5_webshop_forward(params, state_ids, state_mask, state_img,
                                      act_ids, act_mask, sizes, labels)
    loss = jax.block_until_ready(loss)
    logits = [jax.block_until_ready(lg) for lg in logits]

    ref_loss, ref_logits = ref_forward(params, state_ids, state_mask, state_img,
                                       act_ids, act_mask, sizes, labels)
    np.testing.assert_allclose(np.asarray(loss), np.asarray(ref_loss), rtol=2e-3, atol=2e-3)
    for a, b in zip(logits, ref_logits):
        np.testing.assert_allclose(np.asarray(a), np.asarray(b), rtol=2e-3, atol=2e-3)
    assert np.isfinite(np.asarray(loss))
    print("KERNEL_OK")
</pallas_src>

<mosaic_0001>
module attributes {stable_mosaic.version = 11 : i64} {
  func.func @t5_layer_kernel(%arg0: i32, %arg1: memref<56x64xf32, #tpu.memory_space<vmem>>, %arg2: memref<4x56x56xf32, #tpu.memory_space<vmem>>, %arg3: memref<2x1x64xf32, #tpu.memory_space<vmem>>, %arg4: memref<2x64x64xf32, #tpu.memory_space<vmem>>, %arg5: memref<2x64x64xf32, #tpu.memory_space<vmem>>, %arg6: memref<2x64x64xf32, #tpu.memory_space<vmem>>, %arg7: memref<2x64x64xf32, #tpu.memory_space<vmem>>, %arg8: memref<2x1x64xf32, #tpu.memory_space<vmem>>, %arg9: memref<2x64x256xf32, #tpu.memory_space<vmem>>, %arg10: memref<2x128x64xf32, #tpu.memory_space<vmem>>, %arg11: memref<1x64xf32, #tpu.memory_space<vmem>>, %arg12: memref<56x64xf32, #tpu.memory_space<vmem>>, %arg13: memref<4x56x56xf32, #tpu.memory_space<vmem>>, %arg14: memref<56x64xf32, #tpu.memory_space<vmem>>) attributes {dimension_semantics = [#tpu.dimension_semantics<arbitrary>], iteration_bounds = array<i64: 2>, scalar_prefetch = 0 : i64, scratch_operands = 2 : i64, tpu.core_type = #tpu.core_type<tc>, window_params = [{pipeline_mode = #tpu.pipeline_mode<synchronous>, transform_indices = @transform_0, window_bounds = array<i64: 56, 64>}, {pipeline_mode = #tpu.pipeline_mode<synchronous>, transform_indices = @transform_1, window_bounds = array<i64: 4, 56, 56>}, {pipeline_mode = #tpu.pipeline_mode<synchronous>, transform_indices = @transform_2, window_bounds = array<i64: 2, 1, 64>}, {pipeline_mode = #tpu.pipeline_mode<synchronous>, transform_indices = @transform_3, window_bounds = array<i64: 2, 64, 64>}, {pipeline_mode = #tpu.pipeline_mode<synchronous>, transform_indices = @transform_4, window_bounds = array<i64: 2, 64, 64>}, {pipeline_mode = #tpu.pipeline_mode<synchronous>, transform_indices = @transform_5, window_bounds = array<i64: 2, 64, 64>}, {pipeline_mode = #tpu.pipeline_mode<synchronous>, transform_indices = @transform_6, window_bounds = array<i64: 2, 64, 64>}, {pipeline_mode = #tpu.pipeline_mode<synchronous>, transform_indices = @transform_7, window_bounds = array<i64: 2, 1, 64>}, {pipeline_mode = #tpu.pipeline_mode<synchronous>, transform_indices = @transform_8, window_bounds = array<i64: 2, 64, 256>}, {pipeline_mode = #tpu.pipeline_mode<synchronous>, transform_indices = @transform_9, window_bounds = array<i64: 2, 128, 64>}, {pipeline_mode = #tpu.pipeline_mode<synchronous>, transform_indices = @transform_10, window_bounds = array<i64: 1, 64>}, {pipeline_mode = #tpu.pipeline_mode<synchronous>, transform_indices = @transform_11, window_bounds = array<i64: 56, 64>}]} {
    %c0_i32 = arith.constant 0 : i32
    %0 = arith.cmpi eq, %arg0, %c0_i32 : i32
    %1 = arith.extui %0 : i1 to i32
    %c0_i32_0 = arith.constant 0 : i32
    %2 = arith.cmpi ne, %1, %c0_i32_0 : i32
    scf.if %2 {
      %c0_68 = arith.constant 0 : index
      %c0_69 = arith.constant 0 : index
      %140 = vector.load %arg1[%c0_68, %c0_69] : memref<56x64xf32, #tpu.memory_space<vmem>>, vector<56x64xf32>
      %c0_70 = arith.constant 0 : index
      %c0_71 = arith.constant 0 : index
      %141 = vector.load %arg12[%c0_70, %c0_71] : memref<56x64xf32, #tpu.memory_space<vmem>>, vector<56x64xf32>
      tpu.vector_store %arg12[%c0_70, %c0_71], %140 {strides = array<i32>} : memref<56x64xf32, #tpu.memory_space<vmem>>, vector<56x64xf32>,
    } else {
    }
    %c0 = arith.constant 0 : index
    %c0_1 = arith.constant 0 : index
    %3 = vector.load %arg12[%c0, %c0_1] : memref<56x64xf32, #tpu.memory_space<vmem>>, vector<56x64xf32>
    %4 = arith.index_cast %arg0 : i32 to index
    %c0_2 = arith.constant 0 : index
    %c0_3 = arith.constant 0 : index
    %5 = vector.load %arg3[%4, %c0_2, %c0_3] : memref<2x1x64xf32, #tpu.memory_space<vmem>>, vector<1x1x64xf32>
    %6 = vector.shape_cast %5 : vector<1x1x64xf32> to vector<1x64xf32>
    %7 = arith.mulf %3, %3 : vector<56x64xf32>
    %cst = arith.constant dense<0.000000e+00> : vector<56xf32>
    %8 = vector.multi_reduction <add>, %7, %cst [1] : vector<56x64xf32> to vector<56xf32>
    %9 = vector.shape_cast %8 : vector<56xf32> to vector<56x1xf32>
    %cst_4 = arith.constant 6.400000e+01 : f32
    %10 = vector.broadcast %cst_4 : f32 to vector<56x1xf32>
    %11 = arith.divf %9, %10 : vector<56x1xf32>
    %cst_5 = arith.constant 9.99999997E-7 : f32
    %12 = vector.broadcast %cst_5 : f32 to vector<56x1xf32>
    %13 = arith.addf %11, %12 : vector<56x1xf32>
    %14 = math.rsqrt %13 : vector<56x1xf32>
    %15 = vector.broadcast %14 : vector<56x1xf32> to vector<56x64xf32>
    %16 = arith.mulf %3, %15 : vector<56x64xf32>
    %17 = vector.broadcast %6 : vector<1x64xf32> to vector<56x64xf32>
    %18 = arith.mulf %16, %17 : vector<56x64xf32>
    %19 = arith.index_cast %arg0 : i32 to index
    %c0_6 = arith.constant 0 : index
    %c0_7 = arith.constant 0 : index
    %20 = vector.load %arg4[%19, %c0_6, %c0_7] : memref<2x64x64xf32, #tpu.memory_space<vmem>>, vector<1x64x64xf32>
    %21 = vector.shape_cast %20 : vector<1x64x64xf32> to vector<64x64xf32>
    %cst_8 = arith.constant dense<0.000000e+00> : vector<56x64xf32>
    %22 = tpu.matmul %18, %21, %cst_8 {dimension_numbers = #tpu.dot_dimension_numbers<[1], [0], [0], [1], [0, 0, 1, 1], [], []>} : vector<56x64xf32>, vector<64x64xf32>, vector<56x64xf32> -> vector<56x64xf32>
    %23 = arith.index_cast %arg0 : i32 to index
    %c0_9 = arith.constant 0 : index
    %c0_10 = arith.constant 0 : index
    %24 = vector.load %arg5[%23, %c0_9, %c0_10] : memref<2x64x64xf32, #tpu.memory_space<vmem>>, vector<1x64x64xf32>
    %25 = vector.shape_cast %24 : vector<1x64x64xf32> to vector<64x64xf32>
    %cst_11 = arith.constant dense<0.000000e+00> : vector<56x64xf32>
    %26 = tpu.matmul %18, %25, %cst_11 {dimension_numbers = #tpu.dot_dimension_numbers<[1], [0], [0], [1], [0, 0, 1, 1], [], []>} : vector<56x64xf32>, vector<64x64xf32>, vector<56x64xf32> -> vector<56x64xf32>
    %27 = arith.index_cast %arg0 : i32 to index
    %c0_12 = arith.constant 0 : index
    %c0_13 = arith.constant 0 : index
    %28 = vector.load %arg6[%27, %c0_12, %c0_13] : memref<2x64x64xf32, #tpu.memory_space<vmem>>, vector<1x64x64xf32>
    %29 = vector.shape_cast %28 : vector<1x64x64xf32> to vector<64x64xf32>
    %cst_14 = arith.constant dense<0.000000e+00> : vector<56x64xf32>
    %30 = tpu.matmul %18, %29, %cst_14 {dimension_numbers = #tpu.dot_dimension_numbers<[1], [0], [0], [1], [0, 0, 1, 1], [], []>} : vector<56x64xf32>, vector<64x64xf32>, vector<56x64xf32> -> vector<56x64xf32>
    %31 = vector.extract_strided_slice %22 {offsets = [0, 0], sizes = [56, 16], strides = [1, 1]} : vector<56x64xf32> to vector<56x16xf32>
    %32 = vector.extract_strided_slice %26 {offsets = [0, 0], sizes = [56, 16], strides = [1, 1]} : vector<56x64xf32> to vector<56x16xf32>
    %cst_15 = arith.constant dense<0.000000e+00> : vector<56x56xf32>
    %33 = tpu.matmul %31, %32, %cst_15 {dimension_numbers = #tpu.dot_dimension_numbers<[1], [1], [0], [0], [0, 0, 1, 0], [], []>} : vector<56x16xf32>, vector<56x16xf32>, vector<56x56xf32> -> vector<56x56xf32>
    %c0_16 = arith.constant 0 : index
    %c0_17 = arith.constant 0 : index
    %c0_18 = arith.constant 0 : index
    %34 = vector.load %arg13[%c0_16, %c0_17, %c0_18] : memref<4x56x56xf32, #tpu.memory_space<vmem>>, vector<1x56x56xf32>
    %35 = vector.shape_cast %34 : vector<1x56x56xf32> to vector<56x56xf32>
    %36 = vector.shape_cast %33 : vector<56x56xf32> to vector<1x56x56xf32>
    tpu.vector_store %arg13[%c0_16, %c0_17, %c0_18], %36 {strides = array<i32>} : memref<4x56x56xf32, #tpu.memory_space<vmem>>, vector<1x56x56xf32>,
    %37 = vector.extract_strided_slice %22 {offsets = [0, 16], sizes = [56, 16], strides = [1, 1]} : vector<56x64xf32> to vector<56x16xf32>
    %38 = vector.extract_strided_slice %26 {offsets = [0, 16], sizes = [56, 16], strides = [1, 1]} : vector<56x64xf32> to vector<56x16xf32>
    %cst_19 = arith.constant dense<0.000000e+00> : vector<56x56xf32>
    %39 = tpu.matmul %37, %38, %cst_19 {dimension_numbers = #tpu.dot_dimension_numbers<[1], [1], [0], [0], [0, 0, 1, 0], [], []>} : vector<56x16xf32>, vector<56x16xf32>, vector<56x56xf32> -> vector<56x56xf32>
    %c1 = arith.constant 1 : index
    %c0_20 = arith.constant 0 : index
    %c0_21 = arith.constant 0 : index
    %40 = vector.load %arg13[%c1, %c0_20, %c0_21] : memref<4x56x56xf32, #tpu.memory_space<vmem>>, vector<1x56x56xf32>
    %41 = vector.shape_cast %40 : vector<1x56x56xf32> to vector<56x56xf32>
    %42 = vector.shape_cast %39 : vector<56x56xf32> to vector<1x56x56xf32>
    tpu.vector_store %arg13[%c1, %c0_20, %c0_21], %42 {strides = array<i32>} : memref<4x56x56xf32, #tpu.memory_space<vmem>>, vector<1x56x56xf32>,
    %43 = vector.extract_strided_slice %22 {offsets = [0, 32], sizes = [56, 16], strides = [1, 1]} : vector<56x64xf32> to vector<56x16xf32>
    %44 = vector.extract_strided_slice %26 {offsets = [0, 32], sizes = [56, 16], strides = [1, 1]} : vector<56x64xf32> to vector<56x16xf32>
    %cst_22 = arith.constant dense<0.000000e+00> : vector<56x56xf32>
    %45 = tpu.matmul %43, %44, %cst_22 {dimension_numbers = #tpu.dot_dimension_numbers<[1], [1], [0], [0], [0, 0, 1, 0], [], []>} : vector<56x16xf32>, vector<56x16xf32>, vector<56x56xf32> -> vector<56x56xf32>
    %c2 = arith.constant 2 : index
    %c0_23 = arith.constant 0 : index
    %c0_24 = arith.constant 0 : index
    %46 = vector.load %arg13[%c2, %c0_23, %c0_24] : memref<4x56x56xf32, #tpu.memory_space<vmem>>, vector<1x56x56xf32>
    %47 = vector.shape_cast %46 : vector<1x56x56xf32> to vector<56x56xf32>
    %48 = vector.shape_cast %45 : vector<56x56xf32> to vector<1x56x56xf32>
    tpu.vector_store %arg13[%c2, %c0_23, %c0_24], %48 {strides = array<i32>} : memref<4x56x56xf32, #tpu.memory_space<vmem>>, vector<1x56x56xf32>,
    %49 = vector.extract_strided_slice %22 {offsets = [0, 48], sizes = [56, 16], strides = [1, 1]} : vector<56x64xf32> to vector<56x16xf32>
    %50 = vector.extract_strided_slice %26 {offsets = [0, 48], sizes = [56, 16], strides = [1, 1]} : vector<56x64xf32> to vector<56x16xf32>
    %cst_25 = arith.constant dense<0.000000e+00> : vector<56x56xf32>
    %51 = tpu.matmul %49, %50, %cst_25 {dimension_numbers = #tpu.dot_dimension_numbers<[1], [1], [0], [0], [0, 0, 1, 0], [], []>} : vector<56x16xf32>, vector<56x16xf32>, vector<56x56xf32> -> vector<56x56xf32>
    %c3 = arith.constant 3 : index
    %c0_26 = arith.constant 0 : index
    %c0_27 = arith.constant 0 : index
    %52 = vector.load %arg13[%c3, %c0_26, %c0_27] : memref<4x56x56xf32, #tpu.memory_space<vmem>>, vector<1x56x56xf32>
    %53 = vector.shape_cast %52 : vector<1x56x56xf32> to vector<56x56xf32>
    %54 = vector.shape_cast %51 : vector<56x56xf32> to vector<1x56x56xf32>
    tpu.vector_store %arg13[%c3, %c0_26, %c0_27], %54 {strides = array<i32>} : memref<4x56x56xf32, #tpu.memory_space<vmem>>, vector<1x56x56xf32>,
    %c0_28 = arith.constant 0 : index
    %c0_29 = arith.constant 0 : index
    %c0_30 = arith.constant 0 : index
    %55 = vector.load %arg13[%c0_28, %c0_29, %c0_30] : memref<4x56x56xf32, #tpu.memory_space<vmem>>, vector<4x56x56xf32>
    %c0_31 = arith.constant 0 : index
    %c0_32 = arith.constant 0 : index
    %c0_33 = arith.constant 0 : index
    %56 = vector.load %arg2[%c0_31, %c0_32, %c0_33] : memref<4x56x56xf32, #tpu.memory_space<vmem>>, vector<4x56x56xf32>
    %57 = arith.addf %55, %56 : vector<4x56x56xf32>
    %cst_34 = arith.constant dense<0xFF800000> : vector<4x56xf32>
    %58 = vector.multi_reduction <maximumf>, %57, %cst_34 [2] : vector<4x56x56xf32> to vector<4x56xf32>
    %59 = vector.shape_cast %58 : vector<4x56xf32> to vector<4x56x1xf32>
    %60 = vector.broadcast %59 : vector<4x56x1xf32> to vector<4x56x56xf32>
    %61 = arith.subf %57, %60 : vector<4x56x56xf32>
    %62 = math.exp %61 : vector<4x56x56xf32>
    %cst_35 = arith.constant dense<0.000000e+00> : vector<4x56xf32>
    %63 = vector.multi_reduction <add>, %62, %cst_35 [2] : vector<4x56x56xf32> to vector<4x56xf32>
    %64 = vector.shape_cast %63 : vector<4x56xf32> to vector<4x56x1xf32>
    %65 = tpu.reciprocal %64 {approx = true} : vector<4x56x1xf32> -> vector<4x56x1xf32>
    %66 = vector.broadcast %65 : vector<4x56x1xf32> to vector<4x56x56xf32>
    %67 = arith.mulf %62, %66 : vector<4x56x56xf32>
    %68 = vector.extract_strided_slice %67 {offsets = [0, 0, 0], sizes = [1, 56, 56], strides = [1, 1, 1]} : vector<4x56x56xf32> to vector<1x56x56xf32>
    %69 = vector.shape_cast %68 : vector<1x56x56xf32> to vector<56x56xf32>
    %70 = vector.extract_strided_slice %30 {offsets = [0, 0], sizes = [56, 16], strides = [1, 1]} : vector<56x64xf32> to vector<56x16xf32>
    %cst_36 = arith.constant dense<0.000000e+00> : vector<56x16xf32>
    %71 = tpu.matmul %69, %70, %cst_36 {dimension_numbers = #tpu.dot_dimension_numbers<[1], [0], [0], [1], [0, 0, 1, 1], [], []>} : vector<56x56xf32>, vector<56x16xf32>, vector<56x16xf32> -> vector<56x16xf32>
    %c0_37 = arith.constant 0 : index
    %c0_38 = arith.constant 0 : index
    %72 = vector.load %arg14[%c0_37, %c0_38] : memref<56x64xf32, #tpu.memory_space<vmem>>, vector<56x16xf32>
    tpu.vector_store %arg14[%c0_37, %c0_38], %71 {strides = array<i32>} : memref<56x64xf32, #tpu.memory_space<vmem>>, vector<56x16xf32>,
    %73 = vector.extract_strided_slice %67 {offsets = [1, 0, 0], sizes = [1, 56, 56], strides = [1, 1, 1]} : vector<4x56x56xf32> to vector<1x56x56xf32>
    %74 = vector.shape_cast %73 : vector<1x56x56xf32> to vector<56x56xf32>
    %75 = vector.extract_strided_slice %30 {offsets = [0, 16], sizes = [56, 16], strides = [1, 1]} : vector<56x64xf32> to vector<56x16xf32>
    %cst_39 = arith.constant dense<0.000000e+00> : vector<56x16xf32>
    %76 = tpu.matmul %74, %75, %cst_39 {dimension_numbers = #tpu.dot_dimension_numbers<[1], [0], [0], [1], [0, 0, 1, 1], [], []>} : vector<56x56xf32>, vector<56x16xf32>, vector<56x16xf32> -> vector<56x16xf32>
    %c0_40 = arith.constant 0 : index
    %c16 = arith.constant 16 : index
    %77 = vector.load %arg14[%c0_40, %c16] : memref<56x64xf32, #tpu.memory_space<vmem>>, vector<56x16xf32>
    tpu.vector_store %arg14[%c0_40, %c16], %76 {strides = array<i32>} : memref<56x64xf32, #tpu.memory_space<vmem>>, vector<56x16xf32>,
    %78 = vector.extract_strided_slice %67 {offsets = [2, 0, 0], sizes = [1, 56, 56], strides = [1, 1, 1]} : vector<4x56x56xf32> to vector<1x56x56xf32>
    %79 = vector.shape_cast %78 : vector<1x56x56xf32> to vector<56x56xf32>
    %80 = vector.extract_strided_slice %30 {offsets = [0, 32], sizes = [56, 16], strides = [1, 1]} : vector<56x64xf32> to vector<56x16xf32>
    %cst_41 = arith.constant dense<0.000000e+00> : vector<56x16xf32>
    %81 = tpu.matmul %79, %80, %cst_41 {dimension_numbers = #tpu.dot_dimension_numbers<[1], [0], [0], [1], [0, 0, 1, 1], [], []>} : vector<56x56xf32>, vector<56x16xf32>, vector<56x16xf32> -> vector<56x16xf32>
    %c0_42 = arith.constant 0 : index
    %c32 = arith.constant 32 : index
    %82 = vector.load %arg14[%c0_42, %c32] : memref<56x64xf32, #tpu.memory_space<vmem>>, vector<56x16xf32>
    tpu.vector_store %arg14[%c0_42, %c32], %81 {strides = array<i32>} : memref<56x64xf32, #tpu.memory_space<vmem>>, vector<56x16xf32>,
    %83 = vector.extract_strided_slice %67 {offsets = [3, 0, 0], sizes = [1, 56, 56], strides = [1, 1, 1]} : vector<4x56x56xf32> to vector<1x56x56xf32>
    %84 = vector.shape_cast %83 : vector<1x56x56xf32> to vector<56x56xf32>
    %85 = vector.extract_strided_slice %30 {offsets = [0, 48], sizes = [56, 16], strides = [1, 1]} : vector<56x64xf32> to vector<56x16xf32>
    %cst_43 = arith.constant dense<0.000000e+00> : vector<56x16xf32>
    %86 = tpu.matmul %84, %85, %cst_43 {dimension_numbers = #tpu.dot_dimension_numbers<[1], [0], [0], [1], [0, 0, 1, 1], [], []>} : vector<56x56xf32>, vector<56x16xf32>, vector<56x16xf32> -> vector<56x16xf32>
    %c0_44 = arith.constant 0 : index
    %c48 = arith.constant 48 : index
    %87 = vector.load %arg14[%c0_44, %c48] : memref<56x64xf32, #tpu.memory_space<vmem>>, vector<56x16xf32>
    tpu.vector_store %arg14[%c0_44, %c48], %86 {strides = array<i32>} : memref<56x64xf32, #tpu.memory_space<vmem>>, vector<56x16xf32>,
    %c0_45 = arith.constant 0 : index
    %c0_46 = arith.constant 0 : index
    %88 = vector.load %arg14[%c0_45, %c0_46] : memref<56x64xf32, #tpu.memory_space<vmem>>, vector<56x64xf32>
    %89 = arith.index_cast %arg0 : i32 to index
    %c0_47 = arith.constant 0 : index
    %c0_48 = arith.constant 0 : index
    %90 = vector.load %arg7[%89, %c0_47, %c0_48] : memref<2x64x64xf32, #tpu.memory_space<vmem>>, vector<1x64x64xf32>
    %91 = vector.shape_cast %90 : vector<1x64x64xf32> to vector<64x64xf32>
    %cst_49 = arith.constant dense<0.000000e+00> : vector<56x64xf32>
    %92 = tpu.matmul %88, %91, %cst_49 {dimension_numbers = #tpu.dot_dimension_numbers<[1], [0], [0], [1], [0, 0, 1, 1], [], []>} : vector<56x64xf32>, vector<64x64xf32>, vector<56x64xf32> -> vector<56x64xf32>
    %93 = arith.addf %3, %92 : vector<56x64xf32>
    %94 = arith.index_cast %arg0 : i32 to index
    %c0_50 = arith.constant 0 : index
    %c0_51 = arith.constant 0 : index
    %95 = vector.load %arg8[%94, %c0_50, %c0_51] : memref<2x1x64xf32, #tpu.memory_space<vmem>>, vector<1x1x64xf32>
    %96 = vector.shape_cast %95 : vector<1x1x64xf32> to vector<1x64xf32>
    %97 = arith.mulf %93, %93 : vector<56x64xf32>
    %cst_52 = arith.constant dense<0.000000e+00> : vector<56xf32>
    %98 = vector.multi_reduction <add>, %97, %cst_52 [1] : vector<56x64xf32> to vector<56xf32>
    %99 = vector.shape_cast %98 : vector<56xf32> to vector<56x1xf32>
    %cst_53 = arith.constant 6.400000e+01 : f32
    %100 = vector.broadcast %cst_53 : f32 to vector<56x1xf32>
    %101 = arith.divf %99, %100 : vector<56x1xf32>
    %cst_54 = arith.constant 9.99999997E-7 : f32
    %102 = vector.broadcast %cst_54 : f32 to vector<56x1xf32>
    %103 = arith.addf %101, %102 : vector<56x1xf32>
    %104 = math.rsqrt %103 : vector<56x1xf32>
    %105 = vector.broadcast %104 : vector<56x1xf32> to vector<56x64xf32>
    %106 = arith.mulf %93, %105 : vector<56x64xf32>
    %107 = vector.broadcast %96 : vector<1x64xf32> to vector<56x64xf32>
    %108 = arith.mulf %106, %107 : vector<56x64xf32>
    %109 = arith.index_cast %arg0 : i32 to index
    %c0_55 = arith.constant 0 : index
    %c0_56 = arith.constant 0 : index
    %110 = vector.load %arg9[%109, %c0_55, %c0_56] : memref<2x64x256xf32, #tpu.memory_space<vmem>>, vector<1x64x256xf32>
    %111 = vector.shape_cast %110 : vector<1x64x256xf32> to vector<64x256xf32>
    %cst_57 = arith.constant dense<0.000000e+00> : vector<56x256xf32>
    %112 = tpu.matmul %108, %111, %cst_57 {dimension_numbers = #tpu.dot_dimension_numbers<[1], [0], [0], [1], [0, 0, 1, 1], [], []>} : vector<56x64xf32>, vector<64x256xf32>, vector<56x256xf32> -> vector<56x256xf32>
    %113 = vector.extract_strided_slice %112 {offsets = [0, 0], sizes = [56, 128], strides = [1, 1]} : vector<56x256xf32> to vector<56x128xf32>
    %cst_58 = arith.constant 5.000000e-01 : f32
    %114 = vector.broadcast %cst_58 : f32 to vector<56x128xf32>
    %115 = arith.mulf %114, %113 : vector<56x128xf32>
    %cst_59 = arith.constant 4.471500e-02 : f32
    %116 = vector.broadcast %cst_59 : f32 to vector<56x128xf32>
    %117 = arith.mulf %116, %113 : vector<56x128xf32>
    %118 = arith.mulf %117, %113 : vector<56x128xf32>
    %119 = arith.mulf %118, %113 : vector<56x128xf32>
    %120 = arith.addf %113, %119 : vector<56x128xf32>
    %cst_60 = arith.constant 0.797884583 : f32
    %121 = vector.broadcast %cst_60 : f32 to vector<56x128xf32>
    %122 = arith.mulf %121, %120 : vector<56x128xf32>
    %123 = math.tanh %122 : vector<56x128xf32>
    %cst_61 = arith.constant 1.000000e+00 : f32
    %124 = vector.broadcast %cst_61 : f32 to vector<56x128xf32>
    %125 = arith.addf %124, %123 : vector<56x128xf32>
    %126 = arith.mulf %115, %125 : vector<56x128xf32>
    %127 = vector.extract_strided_slice %112 {offsets = [0, 128], sizes = [56, 128], strides = [1, 1]} : vector<56x256xf32> to vector<56x128xf32>
    %128 = arith.mulf %126, %127 : vector<56x128xf32>
    %129 = arith.index_cast %arg0 : i32 to index
    %c0_62 = arith.constant 0 : index
    %c0_63 = arith.constant 0 : index
    %130 = vector.load %arg10[%129, %c0_62, %c0_63] : memref<2x128x64xf32, #tpu.memory_space<vmem>>, vector<1x128x64xf32>
    %131 = vector.shape_cast %130 : vector<1x128x64xf32> to vector<128x64xf32>
    %cst_64 = arith.constant dense<0.000000e+00> : vector<56x64xf32>
    %132 = tpu.matmul %128, %131, %cst_64 {dimension_numbers = #tpu.dot_dimension_numbers<[1], [0], [0], [1], [0, 0, 1, 1], [], []>} : vector<56x128xf32>, vector<128x64xf32>, vector<56x64xf32> -> vector<56x64xf32>
    %133 = arith.addf %93, %132 : vector<56x64xf32>
    %c1_i32 = arith.constant 1 : i32
    %134 = arith.cmpi ne, %arg0, %c1_i32 : i32
    %135 = arith.extui %134 : i1 to i32
    %c0_i32_65 = arith.constant 0 : i32
    %136 = arith.cmpi ne, %135, %c0_i32_65 : i32
    scf.if %136 {
      %c0_68 = arith.constant 0 : index
      %c0_69 = arith.constant 0 : index
      %140 = vector.load %arg12[%c0_68, %c0_69] : memref<56x64xf32, #tpu.memory_space<vmem>>, vector<56x64xf32>
      tpu.vector_store %arg12[%c0_68, %c0_69], %133 {strides = array<i32>} : memref<56x64xf32, #tpu.memory_space<vmem>>, vector<56x64xf32>,
    } else {
    }
    %c1_i32_66 = arith.constant 1 : i32
    %137 = arith.cmpi eq, %arg0, %c1_i32_66 : i32
    %138 = arith.extui %137 : i1 to i32
    %c0_i32_67 = arith.constant 0 : i32
    %139 = arith.cmpi ne, %138, %c0_i32_67 : i32
    scf.if %139 {
      %c0_68 = arith.constant 0 : index
      %c0_69 = arith.constant 0 : index
      %140 = vector.load %arg11[%c0_68, %c0_69] : memref<1x64xf32, #tpu.memory_space<vmem>>, vector<1x64xf32>
      %141 = arith.mulf %133, %133 : vector<56x64xf32>
      %cst_70 = arith.constant dense<0.000000e+00> : vector<56xf32>
      %142 = vector.multi_reduction <add>, %141, %cst_70 [1] : vector<56x64xf32> to vector<56xf32>
      %143 = vector.shape_cast %142 : vector<56xf32> to vector<56x1xf32>
      %cst_71 = arith.constant 6.400000e+01 : f32
      %144 = vector.broadcast %cst_71 : f32 to vector<56x1xf32>
      %145 = arith.divf %143, %144 : vector<56x1xf32>
      %cst_72 = arith.constant 9.99999997E-7 : f32
      %146 = vector.broadcast %cst_72 : f32 to vector<56x1xf32>
      %147 = arith.addf %145, %146 : vector<56x1xf32>
      %148 = math.rsqrt %147 : vector<56x1xf32>
      %149 = vector.broadcast %148 : vector<56x1xf32> to vector<56x64xf32>
      %150 = arith.mulf %133, %149 : vector<56x64xf32>
      %151 = vector.broadcast %140 : vector<1x64xf32> to vector<56x64xf32>
      %152 = arith.mulf %150, %151 : vector<56x64xf32>
      %c0_73 = arith.constant 0 : index
      %c0_74 = arith.constant 0 : index
      %153 = vector.load %arg12[%c0_73, %c0_74] : memref<56x64xf32, #tpu.memory_space<vmem>>, vector<56x64xf32>
      tpu.vector_store %arg12[%c0_73, %c0_74], %152 {strides = array<i32>} : memref<56x64xf32, #tpu.memory_space<vmem>>, vector<56x64xf32>,
    } else {
    }
    return
  }
  func.func @transform_0(%arg0: i32) -> (i32, i32) {
    %c0_i32 = arith.constant 0 : i32
    %c0_i32_0 = arith.constant 0 : i32
    %c0_i32_1 = arith.constant 0 : i32
    return %c0_i32, %c0_i32_0 : i32, i32
  }
  func.func @transform_1(%arg0: i32) -> (i32, i32, i32) {
    %c0_i32 = arith.constant 0 : i32
    %c0_i32_0 = arith.constant 0 : i32
    %c0_i32_1 = arith.constant 0 : i32
    %c0_i32_2 = arith.constant 0 : i32
    return %c0_i32, %c0_i32_0, %c0_i32_1 : i32, i32, i32
  }
  func.func @transform_2(%arg0: i32) -> (i32, i32, i32) {
    %c0_i32 = arith.constant 0 : i32
    %c0_i32_0 = arith.constant 0 : i32
    %c0_i32_1 = arith.constant 0 : i32
    %c0_i32_2 = arith.constant 0 : i32
    return %c0_i32, %c0_i32_0, %c0_i32_1 : i32, i32, i32
  }
  func.func @transform_3(%arg0: i32) -> (i32, i32, i32) {
    %c0_i32 = arith.constant 0 : i32
    %c0_i32_0 = arith.constant 0 : i32
    %c0_i32_1 = arith.constant 0 : i32
    %c0_i32_2 = arith.constant 0 : i32
    return %c0_i32, %c0_i32_0, %c0_i32_1 : i32, i32, i32
  }
  func.func @transform_4(%arg0: i32) -> (i32, i32, i32) {
    %c0_i32 = arith.constant 0 : i32
    %c0_i32_0 = arith.constant 0 : i32
    %c0_i32_1 = arith.constant 0 : i32
    %c0_i32_2 = arith.constant 0 : i32
    return %c0_i32, %c0_i32_0, %c0_i32_1 : i32, i32, i32
  }
  func.func @transform_5(%arg0: i32) -> (i32, i32, i32) {
    %c0_i32 = arith.constant 0 : i32
    %c0_i32_0 = arith.constant 0 : i32
    %c0_i32_1 = arith.constant 0 : i32
    %c0_i32_2 = arith.constant 0 : i32
    return %c0_i32, %c0_i32_0, %c0_i32_1 : i32, i32, i32
  }
  func.func @transform_6(%arg0: i32) -> (i32, i32, i32) {
    %c0_i32 = arith.constant 0 : i32
    %c0_i32_0 = arith.constant 0 : i32
    %c0_i32_1 = arith.constant 0 : i32
    %c0_i32_2 = arith.constant 0 : i32
    return %c0_i32, %c0_i32_0, %c0_i32_1 : i32, i32, i32
  }
  func.func @transform_7(%arg0: i32) -> (i32, i32, i32) {
    %c0_i32 = arith.constant 0 : i32
    %c0_i32_0 = arith.constant 0 : i32
    %c0_i32_1 = arith.constant 0 : i32
    %c0_i32_2 = arith.constant 0 : i32
    return %c0_i32, %c0_i32_0, %c0_i32_1 : i32, i32, i32
  }
  func.func @transform_8(%arg0: i32) -> (i32, i32, i32) {
    %c0_i32 = arith.constant 0 : i32
    %c0_i32_0 = arith.constant 0 : i32
    %c0_i32_1 = arith.constant 0 : i32
    %c0_i32_2 = arith.constant 0 : i32
    return %c0_i32, %c0_i32_0, %c0_i32_1 : i32, i32, i32
  }
  func.func @transform_9(%arg0: i32) -> (i32, i32, i32) {
    %c0_i32 = arith.constant 0 : i32
    %c0_i32_0 = arith.constant 0 : i32
    %c0_i32_1 = arith.constant 0 : i32
    %c0_i32_2 = arith.constant 0 : i32
    return %c0_i32, %c0_i32_0, %c0_i32_1 : i32, i32, i32
  }
  func.func @transform_10(%arg0: i32) -> (i32, i32) {
    %c0_i32 = arith.constant 0 : i32
    %c0_i32_0 = arith.constant 0 : i32
    %c0_i32_1 = arith.constant 0 : i32
    return %c0_i32, %c0_i32_0 : i32, i32
  }
  func.func @transform_11(%arg0: i32) -> (i32, i32) {
    %c0_i32 = arith.constant 0 : i32
    %c0_i32_0 = arith.constant 0 : i32
    %c0_i32_1 = arith.constant 0 : i32
    return %c0_i32, %c0_i32_0 : i32, i32
  }
}

</mosaic_0001>

<bundles_post_ra>
// kernel: tpu_custom_call.1
= control target key start
LH: loop header
LB: loop body
LE: loop exit
PB: predicated region body
PF: predicated region fallthrough
CT: control target
= control target key end

     0   :  { %s4573_s0 = inlined_call_operand.hbm [shape: f32[56,64], index: 0, kind: input, shape index: {}, may-alias: {0,11}]   ;;  %s4574_s1 = inlined_call_operand.vmem [shape: f32[4,56,56], index: 1, kind: input, shape index: {}]   ;;  %s4575_s2 = inlined_call_operand.vmem [shape: f32[2,1,64], index: 2, kind: input, shape index: {}]   ;;  %s4576_s3 = inlined_call_operand.hbm [shape: f32[2,64,64], index: 3, kind: input, shape index: {}]   ;;  %s4577_s4 = inlined_call_operand.hbm [shape: f32[2,64,64], index: 4, kind: input, shape index: {}]   ;;  %s4578_s5 = inlined_call_operand.hbm [shape: f32[2,64,64], index: 5, kind: input, shape index: {}]   ;;  %s4579_s6 = inlined_call_operand.hbm [shape: f32[2,64,64], index: 6, kind: input, shape index: {}]   ;;  %s4580_s7 = inlined_call_operand.vmem [shape: f32[2,1,64], index: 7, kind: input, shape index: {}]   ;;  %s4581_s8 = inlined_call_operand.vmem [shape: f32[2,64,256], index: 8, kind: input, shape index: {}]   ;;  %s4582_s9 = inlined_call_operand.vmem [shape: f32[2,128,64], index: 9, kind: input, shape index: {}]   ;;  %s4583_s10 = inlined_call_operand.vmem [shape: f32[1,64], index: 10, kind: input, shape index: {}]   ;;  %s4584_s11 = inlined_call_operand.hbm [shape: f32[56,64], index: 11, kind: output, shape index: {}, may-alias: {0,11}]  }
   0x1   :  { %4585 = sst [smem:[#allocation18_spill]] %s4573_s0 }
   0x2   :  { %16 = vsyncpa [#allocation5], 0 }
   0x3   :  { %17 = vsyncpa [#allocation8], 0 }
   0x4   :  { %18 = vsyncpa [#allocation11], 0 }
   0x5   :  { %19 = vsyncpa [#allocation6], 0  ;;  %s3452_s17 = smov 0  }
   0x6 LB: > { %s3458_s18 = sadd.s32 4294967295, %s3373_s17   ;;  %p2689_p0 = scmp.ge.s32.totalorder %s3373_s17, 1  ;;  %s3373_s17 = sphi %s3452_s17, %s25_s17  }
   0x7   : > { %p282_p1 = scmp.lt.s32.totalorder %s3373_s17, 3  ;;  %p2690_p2 = scmp.ne.s32.totalorder %s3458_s18, 0 }
   0x8   : > { %p2911_p3 = scmp.eq.s32.totalorder %s3458_s18, 0  ;;  %s313_s21 = sshll.u32 %s4576_s3, 4  ;;  %s314_s21 = int_to_ptr.hbm [resolvable:$true] %s313_s21 }
   0x9   : > { %p3467_p4 = pnand %p2689_p0, %p282_p1  ;;  %s341_s25 = sshll.u32 %s4578_s5, 4  ;;  %s342_s25 = int_to_ptr.hbm [resolvable:$true] %s341_s25 }
   0xa   : > { %s3375_s26 = smov [#allocation7]   ;;  %s3376_s29 = smov [#allocation10]  }
   0xb   : > { %p2895_p5 = pneg %p3467_p4  ;;  %s315_s27 = sshll.u32 %s3375_s26, 4  ;;  %s316_s27 = int_to_ptr.vmem [resolvable:$true] %s315_s27 }
   0xc   : > { %s343_s30 = sshll.u32 %s3376_s29, 4  ;;  %s4588_s0 = sld [smem:[#allocation18_spill]]  ;;  %s344_s30 = int_to_ptr.vmem [resolvable:$true] %s343_s30 }
   0xd   : > { %p3478_p6 = pnand %p2911_p3, %p2895_p5  ;;  %s3377_s15 = smov 128  }
   0xe   : > { %s3378_s16 = smov 8   ;;  %s3379_s19 = smov [#allocation4]  }
   0xf   : > { %2901 = dma.hbm_to_vmem [thread:$0]  (!%p3478_p6), %s314_s21, 2048, %s316_s27, [#allocation8], %s3377_s15, %s3377_s15, %s3378_s16  }
  0x10   : > { %2907 = dma.hbm_to_vmem [thread:$0]  (!%p3478_p6), %s342_s25, 2048, %s344_s30, [#allocation11], %s3377_s15, %s3377_s15, %s3378_s16  }
  0x11   : > { %s295_s20 = sshll.u32 %s3379_s19, 4  ;;  %s327_s26 = sshll.u32 %s4577_s4, 4  ;;  %s296_s20 = int_to_ptr.vmem [resolvable:$true] %s295_s20  ;;  %s328_s26 = int_to_ptr.hbm [resolvable:$true] %s327_s26 }
  0x12   : > { %s293_s14 = sshll.u32 %s4588_s0, 4  ;;  %s355_s13 = sshll.u32 %s4579_s6, 4  ;;  %s294_s14 = int_to_ptr.hbm [resolvable:$true] %s293_s14  ;;  %s356_s13 = int_to_ptr.hbm [resolvable:$true] %s355_s13 }
  0x13   : > { %2898 = dma.hbm_to_vmem [thread:$0]  (!%p3478_p6), %s294_s14, 896, %s296_s20, [#allocation5], %s3377_s15, %s3377_s15, %s3378_s16  }
  0x14   : > { %s3380_s0 = smov [#allocation9]   ;;  %s3381_s25 = smov [#allocation12]  }
  0x15   : > { %s329_s21 = sshll.u32 %s3380_s0, 4  ;;  %s357_s27 = sshll.u32 %s3381_s25, 4  ;;  %s330_s21 = int_to_ptr.vmem [resolvable:$true] %s329_s21  ;;  %s358_s27 = int_to_ptr.vmem [resolvable:$true] %s357_s27 }
  0x16   : > { %2904 = dma.hbm_to_vmem [thread:$0]  (!%p3478_p6), %s328_s26, 2048, %s330_s21, [#allocation8], %s3377_s15, %s3377_s15, %s3378_s16  }
  0x17   : > { %2910 = dma.hbm_to_vmem [thread:$0]  (!%p3478_p6), %s356_s13, 2048, %s358_s27, [#allocation11], %s3377_s15, %s3377_s15, %s3378_s16  }
  0x18   : > { %385 = sbr.rel (%p3467_p4) target bundleno = 1984 (0x7c0), region = 64 }
  0x1d   : > { %3356 = dma.done.wait (%p2911_p3), [#allocation5], 896  }
  0x1e   : > { %3358 = vsyncadd (%p2911_p3), [#allocation5], 4294966400 }
  0x1f   : > { %3360 = dma.done.wait (%p2911_p3), [#allocation8], 4096  }
  0x20   : > { %3362 = vsyncadd (%p2911_p3), [#allocation8], 4294963200 }
  0x21   : > { %3364 = dma.done.wait (%p2911_p3), [#allocation11], 4096  }
  0x22   : > { %3366 = vsyncadd (%p2911_p3), [#allocation11], 4294963200  ;;  %439 = sbr.rel (%p2690_p2) target bundleno = 47 (0x2f), region = 88 }
  0x27   : > { %v440_v0 = vld [vmem:[#allocation4] sm:$0xff]  ;;  %vm447_vm0 = vcmask 523264   ;;  %v441_v1 = vld [vmem:[#allocation4 + $0x8] sm:$0xff]  ;;  %v442_v2 = vld [vmem:[#allocation4 + $0x10] sm:$0xff] }
  0x28   : > { %448 = vst.msk [vmem:[#allocation13] sm:$0xff] %vm447_vm0, %v440_v0  ;;  %v443_v3 = vld [vmem:[#allocation4 + $0x18] sm:$0xff]  ;;  %v444_v4 = vld [vmem:[#allocation4 + $0x20] sm:$0xff]  ;;  %v445_v5 = vld [vmem:[#allocation4 + $0x28] sm:$0xff] }
  0x29   : > { %449 = vst.msk [vmem:[#allocation13 + $0x8] sm:$0xff] %vm447_vm0, %v441_v1  ;;  %v446_v6 = vld [vmem:[#allocation4 + $0x30] sm:$0xff] }
  0x2a   : > { %450 = vst.msk [vmem:[#allocation13 + $0x10] sm:$0xff] %vm447_vm0, %v442_v2 }
  0x2b   : > { %451 = vst.msk [vmem:[#allocation13 + $0x18] sm:$0xff] %vm447_vm0, %v443_v3 }
  0x2c   : > { %452 = vst.msk [vmem:[#allocation13 + $0x20] sm:$0xff] %vm447_vm0, %v444_v4 }
  0x2d   : > { %453 = vst.msk [vmem:[#allocation13 + $0x28] sm:$0xff] %vm447_vm0, %v445_v5 }
  0x2e   : > { %454 = vst.msk [vmem:[#allocation13 + $0x30] sm:$0xff] %vm447_vm0, %v446_v6 }
  0x2f PF: > { %v3517_v7 = vld [vmem:[#allocation13] sm:$0xff]  ;;  %vm471_vm1 = vcmask 523264   ;;  %s462_s28 = scalar_lea.vmem %s4575_s2, %s3458_s18  ;;  %s3557_s30 = sshll.u32 %s3458_s18, 6  ;;  %v3382_v28 = vmov 64.0  }
  0x30   : > { %v464_v9 = vmul.f32 %v3517_v7, %v3517_v7  ;;  %v3527_v12 = vld [vmem:[#allocation13 + $0x8] sm:$0xff]  ;;  %2995 = vrcp.f32 %v3382_v28  ;;  %s3562_s14 = scalar_lea.vmem [#allocation7], %s3557_s30  ;;  %s3566_s15 = scalar_lea.vmem [#allocation9], %s3557_s30 }
  0x31   : > { %v3519_v8 = vld [vmem:[#allocation13 + $0x10] sm:$0xff]  ;;  %v465_v19 = vmul.f32 %v3527_v12, %v3527_v12  ;;  %v610_v30 = vld [vmem:[%s3562_s14 + $0x38] sm:$0xff]  ;;  %s3570_s16 = scalar_lea.vmem [#allocation10], %s3557_s30  ;;  %v609_v33 = vld [vmem:[%s3562_s14 + $0x30] sm:$0xff]  ;;  %s3383_s23 = smov 80  }
  0x32   : > { %v466_v10 = vmul.f32 %v3519_v8, %v3519_v8  ;;  %v3529_v13 = vld [vmem:[#allocation13 + $0x18] sm:$0xff]  ;;  %v472_v15 = vsel %vm471_vm1, %v464_v9, 0.0  ;;  %v678_v31 = vld [vmem:[%s3566_s15 + $0x38] sm:$0xff]  ;;  %640 = vmatpush.msra.mxu0 %v610_v30  ;;  %v677_v34 = vld [vmem:[%s3566_s15 + $0x30] sm:$0xff]  ;;  %2839 = vmatpush.msra.mxu3 %v610_v30  ;;  %s3384_s24 = smov 96   ;;  %s3385_s26 = smov 112  }
  0x33   : > { %v3525_v11 = vld [vmem:[#allocation13 + $0x20] sm:$0xff]  ;;  %473 = vadd.xlane.f32.xlu0 %v472_v15  ;;  %v467_v20 = vmul.f32 %v3529_v13, %v3529_v13  ;;  %v475_v22 = vsel %vm471_vm1, %v465_v19, 0.0  ;;  %v725_v32 = vld [vmem:[%s3570_s16 + $0x38] sm:$0xff]  ;;  %687 = vmatpush.msra.mxu1 %v678_v31  ;;  %v608_v37 = vld [vmem:[%s3562_s14 + $0x28] sm:$0xff]  ;;  %s3386_s22 = smov 16   ;;  %s2054_s19 = scalar_lea.vmem %s4580_s7, %s3458_s18 }
  0x34   : > { %v468_v14 = vmul.f32 %v3525_v11, %v3525_v11  ;;  %v478_v16 = vsel %vm471_vm1, %v466_v10, 0.0  ;;  %v3535_v17 = vld [vmem:[#allocation13 + $0x28] sm:$0xff]  ;;  %734 = vmatpush.msra.mxu2 %v725_v32  ;;  %v724_v35 = vld [vmem:[%s3570_s16 + $0x30] sm:$0xff]  ;;  %641 = vmatpush.msra.mxu0 %v609_v33  ;;  %v676_v38 = vld [vmem:[%s3566_s15 + $0x28] sm:$0xff]  ;;  %s2838_s20 = sshll.u32 %s3458_s18, 7  ;;  %p2832_p7 = scmp.eq.s32.totalorder %s3458_s18, 1 }
  0x35   : > { %479 = vadd.xlane.f32.xlu1 %v478_v16  ;;  %v469_v21 = vmul.f32 %v3535_v17, %v3535_v17  ;;  %v481_v23 = vsel %vm471_vm1, %v467_v20, 0.0  ;;  %v3547_v25 = vld [vmem:[#allocation13 + $0x30] sm:$0xff]  ;;  %688 = vmatpush.msra.mxu1 %v677_v34  ;;  %v723_v39 = vld [vmem:[%s3570_s16 + $0x28] sm:$0xff]  ;;  %v606_v44 = vld [vmem:[%s3562_s14 + $0x18] sm:$0xff]  ;;  %s4365_s29 = scalar_lea.vmem %s4581_s8, %s2838_s20  ;;  %s4417_s25 = scalar_lea.vmem %s4582_s9, %s2838_s20 }
  0x36   : > { %v484_v18 = vsel %vm471_vm1, %v468_v14, 0.0  ;;  %v470_v26 = vmul.f32 %v3547_v25, %v3547_v25  ;;  %v3559_v29 = vpop.eup %2995  ;;  %735 = vmatpush.msra.mxu2 %v724_v35  ;;  %2840 = vmatpush.msra.mxu3 %v609_v33  ;;  %v607_v40 = vld [vmem:[%s3562_s14 + $0x20] sm:$0xff]  ;;  %v674_v45 = vld [vmem:[%s3566_s15 + $0x18] sm:$0xff]  ;;  %v605_v47 = vld [vmem:[%s3562_s14 + $0x10] sm:$0xff] }
  0x37   : > { %485 = vadd.xlane.f32.xlu2 %v484_v18  ;;  %v487_v24 = vsel %vm471_vm1, %v469_v21, 0.0  ;;  %v494_v36 = vmul.f32 64.0, %v3559_v29  ;;  %642 = vmatpush.msra.mxu0 %v608_v37  ;;  %v675_v41 = vld [vmem:[%s3566_s15 + $0x20] sm:$0xff]  ;;  %v721_v46 = vld [vmem:[%s3570_s16 + $0x18] sm:$0xff]  ;;  %v673_v48 = vld [vmem:[%s3566_s15 + $0x10] sm:$0xff]  ;;  %vm498_vm2 = vweird.f32 %v3559_v29 }
  0x38   : > { %v490_v27 = vsel %vm471_vm1, %v470_v26, 0.0  ;;  %689 = vmatpush.msra.mxu1 %v676_v38  ;;  %736 = vmatpush.msra.mxu2 %v723_v39  ;;  %v722_v42 = vld [vmem:[%s3570_s16 + $0x20] sm:$0xff]  ;;  %v720_v49 = vld [vmem:[%s3570_s16 + $0x10] sm:$0xff]  ;;  %v604_v51 = vld [vmem:[%s3562_s14 + $0x8] sm:$0xff] }
  0x39   : > { %2841 = vmatpush.msra.mxu3 %v608_v37  ;;  %v495_v43 = vsub.f32 1.0, %v494_v36  ;;  %643 = vmatpush.msra.mxu0 %v607_v40  ;;  %v672_v52 = vld [vmem:[%s3566_s15 + $0x8] sm:$0xff]  ;;  %v603_v54 = vld [vmem:[%s3562_s14] sm:$0xff]  ;;  %s3388_s14 = smov 32  }
  0x3a   : > { %690 = vmatpush.msra.mxu1 %v675_v41  ;;  %737 = vmatpush.msra.mxu2 %v722_v42  ;;  %v719_v53 = vld [vmem:[%s3570_s16 + $0x8] sm:$0xff]  ;;  %v671_v55 = vld [vmem:[%s3566_s15] sm:$0xff]  ;;  %s1979_s15 = scalar_lea.vmem [#allocation12], %s3557_s30 }
  0x3b   : > { %476 = vadd.xlane.f32.xlu0 %v475_v22  ;;  %2842 = vmatpush.msra.mxu3 %v607_v40  ;;  %v496_v50 = vmul.f32 %v3559_v29, %v495_v43  ;;  %v718_v56 = vld [vmem:[%s3570_s16] sm:$0xff] }
  0x3c   : > { %644 = vmatpush.msra.mxu0 %v606_v44  ;;  %691 = vmatpush.msra.mxu1 %v674_v45  ;;  %v3630_v45 = vld [vmem:[%s462_s28] ss:$0 sm:$0xff]  ;;  %s3387_s28 = smov 48  }
  0x3d   : > { %482 = vadd.xlane.f32.xlu1 %v481_v23  ;;  %738 = vmatpush.msra.mxu2 %v721_v46  ;;  %v497_v57 = vadd.f32 %v3559_v29, %v496_v50 }
  0x3e   : > { %2843 = vmatpush.msra.mxu3 %v606_v44  ;;  %645 = vmatpush.msra.mxu0 %v605_v47 }
  0x3f   : > { %488 = vadd.xlane.f32.xlu2 %v487_v24  ;;  %692 = vmatpush.msra.mxu1 %v673_v48  ;;  %v3599_v58 = vsel %vm498_vm2, %v3559_v29, %v497_v57 }
  0x40   : > { %739 = vmatpush.msra.mxu2 %v720_v49  ;;  %2844 = vmatpush.msra.mxu3 %v605_v47 }
  0x41   : > { %646 = vmatpush.msra.mxu0 %v604_v51  ;;  %693 = vmatpush.msra.mxu1 %v672_v52 }
  0x42   : > { %740 = vmatpush.msra.mxu2 %v719_v53  ;;  %2845 = vmatpush.msra.mxu3 %v604_v51 }
  0x43   : > { %491 = vadd.xlane.f32.xlu0 %v490_v27  ;;  %647 = vmatpush.msra.mxu0 %v603_v54 }
  0x44   : > { %694 = vmatpush.msra.mxu1 %v671_v55  ;;  %741 = vmatpush.msra.mxu2 %v718_v56 }
  0x45   : > { %2846 = vmatpush.msra.mxu3 %v603_v54 }
  0xa6   : > { %v474_v59 = vpop.xlane.xlu0 %473 }
  0xa7   : > { %v500_v61 = vmul.f32 %v3599_v58, %v474_v59 }
  0xa8   : > { %v480_v60 = vpop.xlane.xlu1 %479 }
  0xa9   : > { %v502_v62 = vmul.f32 %v3599_v58, %v480_v60  ;;  %v507_v1 = vadd.f32 1e-06, %v500_v61 }
  0xaa   : > { %v486_v63 = vpop.xlane.xlu2 %485 }
  0xab   : > { %v504_v0 = vmul.f32 %v3599_v58, %v486_v63  ;;  %v3604_v2 = vadd.f32 1e-06, %v502_v62  ;;  %2997 = vrsqrt.f32 %v507_v1  ;;  %vm520_vm6 = vweird.f32 %v507_v1 }
  0xad   : > { %v511_v3 = vadd.f32 1e-06, %v504_v0  ;;  %2999 = vrsqrt.f32 %v3604_v2  ;;  %vm540_vm14 = vweird.f32 %v3604_v2 }
  0xae   : > { %v477_v4 = vpop.xlane.xlu0 %476 }
  0xaf   : > { %3001 = vrsqrt.f32 %v511_v3  ;;  %v501_v6 = vmul.f32 %v3599_v58, %v477_v4  ;;  %vm560_vm4 = vweird.f32 %v511_v3 }
  0xb0   : > { %v483_v5 = vpop.xlane.xlu1 %482 }
  0xb1   : > { %v503_v9 = vmul.f32 %v3599_v58, %v483_v5  ;;  %v2998_v15 = vpop.eup %2997  ;;  %v508_v16 = vadd.f32 1e-06, %v501_v6 }
  0xb2   : > { %v489_v10 = vpop.xlane.xlu2 %488  ;;  %v515_v20 = vmul.f32 %v2998_v15, %v507_v1  ;;  %vm521_vm3 = vweird.f32 %v2998_v15 }
  0xb3   : > { %v505_v14 = vmul.f32 %v3599_v58, %v489_v10  ;;  %v3610_v18 = vadd.f32 1e-06, %v503_v9  ;;  %v3612_v19 = vpop.eup %2999  ;;  %3003 = vrsqrt.f32 %v508_v16  ;;  %vm522_vm7 = vmor %vm520_vm6, %vm521_vm3  ;;  %vm530_vm12 = vweird.f32 %v508_v16 }
  0xb4   : > { %v516_v23 = vmul.f32 %v2998_v15, %v515_v20  ;;  %v535_v26 = vmul.f32 %v3612_v19, %v3604_v2  ;;  %vm541_vm15 = vweird.f32 %v3612_v19 }
  0xb5   : > { %v512_v21 = vadd.f32 1e-06, %v505_v14  ;;  %v3002_v22 = vpop.eup %3001  ;;  %3005 = vrsqrt.f32 %v3610_v18  ;;  %vm3655_vm2 = vmor %vm540_vm14, %vm541_vm15  ;;  %vm550_vm6 = vweird.f32 %v3610_v18 }
  0xb6   : > { %v555_v24 = vmul.f32 %v3002_v22, %v511_v3  ;;  %v517_v27 = vmul.f32 0.5, %v516_v23  ;;  %v492_v29 = vpop.xlane.xlu0 %491  ;;  %v536_v34 = vmul.f32 %v3612_v19, %v535_v26  ;;  %vm561_vm5 = vweird.f32 %v3002_v22 }
  0xb7   : > { %3007 = vrsqrt.f32 %v512_v21  ;;  %v506_v30 = vmul.f32 %v3599_v58, %v492_v29  ;;  %vm3621_vm8 = vmor %vm560_vm4, %vm561_vm5  ;;  %vm570_vm10 = vweird.f32 %v512_v21 }
  0xb8   : > { %v556_v28 = vmul.f32 %v3002_v22, %v555_v24  ;;  %v518_v31 = vsub.f32 1.5, %v517_v27  ;;  %v537_v46 = vmul.f32 0.5, %v536_v34 }
  0xb9   : > { %v3004_v33 = vpop.eup %3003  ;;  %v513_v35 = vadd.f32 1e-06, %v506_v30 }
  0xba   : > { %v557_v32 = vmul.f32 0.5, %v556_v28  ;;  %v525_v37 = vmul.f32 %v3004_v33, %v508_v16  ;;  %v519_v39 = vmul.f32 %v2998_v15, %v518_v31  ;;  %vm531_vm9 = vweird.f32 %v3004_v33 }
  0xbb   : > { %v3619_v36 = vpop.eup %3005  ;;  %3009 = vrsqrt.f32 %v513_v35  ;;  %v538_v57 = vsub.f32 1.5, %v537_v46  ;;  %vm532_vm13 = vmor %vm530_vm12, %vm531_vm9  ;;  %vm580_vm3 = vweird.f32 %v513_v35  ;;  %vm764_vm9 = vcmask 130048  }
  0xbc   : > { %v558_v38 = vsub.f32 1.5, %v557_v32  ;;  %v526_v41 = vmul.f32 %v3004_v33, %v525_v37  ;;  %v545_v47 = vmul.f32 %v3619_v36, %v3610_v18  ;;  %v523_v48 = vsel %vm522_vm7, %v2998_v15, %v519_v39 }
  0xbd   : > { %v3008_v40 = vpop.eup %3007  ;;  %v584_v51 = vmul.f32 %v523_v48, %v3517_v7  ;;  %v539_v4 = vmul.f32 %v3612_v19, %v538_v57  ;;  %vm551_vm7 = vweird.f32 %v3619_v36  ;;  %vm1848_vm12 = vcmask 392448  }
  0xbe   : > { %v559_v42 = vmul.f32 %v3002_v22, %v558_v38  ;;  %v565_v44 = vmul.f32 %v3008_v40, %v512_v21  ;;  %v527_v49 = vmul.f32 0.5, %v526_v41  ;;  %vm571_vm11 = vweird.f32 %v3008_v40 }
  0xbf   : > { %v594_v55 = vmul.f32 %v3630_v45, %v584_v51  ;;  %v546_v59 = vmul.f32 %v3619_v36, %v545_v47  ;;  %vm3646_vm0 = vmor %vm570_vm10, %vm571_vm11  ;;  %vm845_vm10 = vcmask 457728   ;;  %vm1732_vm11 = vcmask 261248  }
  0xc0   : > { %v566_v50 = vmul.f32 %v3008_v40, %v565_v44  ;;  %v563_v52 = vsel %vm3621_vm8, %v3002_v22, %v559_v42  ;;  %v528_v53 = vsub.f32 1.5, %v527_v49  ;;  %vm552_vm8 = vmor %vm550_vm6, %vm551_vm7 }
  0xc1   : > { %v3010_v56 = vpop.eup %3009  ;;  %v588_v60 = vmul.f32 %v563_v52, %v3525_v11  ;;  %2703 = vmatmul.msk.f32.vlgmr.msra.gmra.mxu0 %vm471_vm1, %v594_v55  ;;  %2710 = vmatmul.msk.f32.vlgmr.msra.gmra.mxu1 %vm471_vm1, %v594_v55  ;;  %v547_v5 = vmul.f32 0.5, %v546_v59 }
  0xc2   : > { %v567_v54 = vmul.f32 0.5, %v566_v50  ;;  %v529_v61 = vmul.f32 %v3004_v33, %v528_v53  ;;  %v575_v62 = vmul.f32 %v3010_v56, %v513_v35  ;;  %2717 = vmatmul.msk.f32.vlgmr.msra.gmra.mxu2 %vm471_vm1, %v594_v55  ;;  %vm581_vm4 = vweird.f32 %v3010_v56 }
  0xc3   : > { %v598_v11 = vmul.f32 %v3630_v45, %v588_v60  ;;  %v548_v20 = vsub.f32 1.5, %v547_v5  ;;  %vm582_vm5 = vmor %vm580_vm3, %vm581_vm4 }
  0xc4   : > { %v568_v7 = vsub.f32 1.5, %v567_v54  ;;  %v576_v1 = vmul.f32 %v3010_v56, %v575_v62  ;;  %v533_v3 = vsel %vm532_vm13, %v3004_v33, %v529_v61  ;;  %vm1964_vm13 = vcmask 523648  }
  0xc5   : > { %v585_v2 = vmul.f32 %v533_v3, %v3527_v12  ;;  %2707 = vmatmul.msk.f32.vlgmr.msra.gmra.mxu3 %vm471_vm1, %v598_v11  ;;  %v543_v12 = vsel %vm3655_vm2, %v3612_v19, %v539_v4  ;;  %v549_v24 = vmul.f32 %v3619_v36, %v548_v20 }
  0xc6   : > { %v569_v0 = vmul.f32 %v3008_v40, %v568_v7  ;;  %v577_v9 = vmul.f32 0.5, %v576_v1 }
  0xc7   : > { %v595_v14 = vmul.f32 %v3630_v45, %v585_v2  ;;  %v553_v27 = vsel %vm552_vm8, %v3619_v36, %v549_v24 }
  0xc8   : > { %v573_v10 = vsel %vm3646_vm0, %v3008_v40, %v569_v0  ;;  %v578_v16 = vsub.f32 1.5, %v577_v9 }
  0xc9   : > { %v589_v15 = vmul.f32 %v573_v10, %v3535_v17  ;;  %2704 = vmatmul.msk.f32.gmra.mxu0 %vm471_vm1, %v595_v14  ;;  %2711 = vmatmul.msk.f32.gmra.mxu1 %vm471_vm1, %v595_v14  ;;  %v586_v17 = vmul.f32 %v543_v12, %v3519_v8  ;;  %v587_v8 = vmul.f32 %v553_v27, %v3529_v13 }
  0xca   : > { %v579_v22 = vmul.f32 %v3010_v56, %v578_v16  ;;  %2718 = vmatmul.msk.f32.gmra.mxu2 %vm471_vm1, %v595_v14 }
  0xcb   : > { %v599_v21 = vmul.f32 %v3630_v45, %v589_v15  ;;  %v596_v26 = vmul.f32 %v3630_v45, %v586_v17  ;;  %v597_v28 = vmul.f32 %v3630_v45, %v587_v8 }
  0xcc   : > { %v583_v23 = vsel %vm582_vm5, %v3010_v56, %v579_v22 }
  0xcd   : > { %2708 = vmatmul.msk.f32.gmra.mxu3 %vm471_vm1, %v599_v21  ;;  %v590_v19 = vmul.f32 %v583_v23, %v3547_v25 }
  0xcf   : > { %v600_v18 = vmul.f32 %v3630_v45, %v590_v19 }
  0xd1   : > { %2705 = vmatmul.msk.f32.gmra.mxu0 %vm471_vm1, %v596_v26  ;;  %2712 = vmatmul.msk.f32.gmra.mxu1 %vm471_vm1, %v596_v26 }
  0xd2   : > { %2719 = vmatmul.msk.f32.gmra.mxu2 %vm471_vm1, %v596_v26 }
  0xd5   : > { %2709 = vmatmul.msk.f32.gmra.mxu3 %vm471_vm1, %v600_v18 }
  0xd9   : > { %2706 = vmatmul.msk.f32.gmra.mxu0 %vm471_vm1, %v597_v28  ;;  %2713 = vmatmul.msk.f32.gmra.mxu1 %vm471_vm1, %v597_v28 }
  0xda   : > { %2720 = vmatmul.msk.f32.gmra.mxu2 %vm471_vm1, %v597_v28 }
  0xe1   : > { %2714 = vmatmul.msk.f32.gmra.mxu1 %vm471_vm1, %v598_v11 }
  0xe2   : > { %2721 = vmatmul.msk.f32.gmra.mxu2 %vm471_vm1, %v598_v11 }
  0xe9   : > { %2715 = vmatmul.msk.f32.gmra.mxu1 %vm471_vm1, %v599_v21 }
  0xea   : > { %2722 = vmatmul.msk.f32.gmra.mxu2 %vm471_vm1, %v599_v21 }
  0xf1   : > { %2716 = vmatmul.msk.f32.gmra.mxu1 %vm471_vm1, %v600_v18 }
  0xf2   : > { %2723 = vmatmul.msk.f32.gmra.mxu2 %vm471_vm1, %v600_v18  ;;  %v1187_v18 = vld [vmem:[%s4574_s1] sm:$0xff] }
 0x13e   : > { %v696_v13 = vpop.f32.mrf.mxu1  ;;  %v649_v40 = vpop.f32.mrf.mxu0 }
 0x145   : > { %v3694_v25 = vpop.f32.mrf.mxu2 }
 0x146   : > { %v699_v29 = vpop.f32.mrf.mxu1  ;;  %v652_v42 = vpop.f32.mrf.mxu0 }
 0x147   : > { %1073 = vrot.lane.b32.xlu0 %v699_v29, %s3383_s23 }
 0x148   : > { %v661_v46 = vpop.f32.mrf.mxu3 }
 0x14d   : > { %v3697_v30 = vpop.f32.mrf.mxu2 }
 0x14e   : > { %v702_v31 = vpop.f32.mrf.mxu1  ;;  %v655_v44 = vpop.f32.mrf.mxu0 }
 0x14f   : > { %1075 = vrot.lane.b32.xlu0 %v702_v31, %s3383_s23 }
 0x150   : > { %v664_v47 = vpop.f32.mrf.mxu3 }
 0x155   : > { %v3700_v32 = vpop.f32.mrf.mxu2 }
 0x156   : > { %v705_v33 = vpop.f32.mrf.mxu1  ;;  %v658_v45 = vpop.f32.mrf.mxu0  ;;  %v2968_v54 = vpack.i.bf16 %v3697_v30, %v3700_v32 }
 0x157   : > { %975 = vrot.lane.b32.xlu1 %v705_v33, %s3384_s24  ;;  %873 = vrot.lane.b32.xlu2 %v705_v33, %s3385_s26 }
 0x158   : > { %1077 = vrot.lane.b32.xlu0 %v705_v33, %s3383_s23  ;;  %v667_v48 = vpop.f32.mrf.mxu3 }
 0x15d   : > { %v752_v34 = vpop.f32.mrf.mxu2 }
 0x15e   : > { %v708_v35 = vpop.f32.mrf.mxu1 }
 0x15f   : > { %977 = vrot.lane.b32.xlu1 %v708_v35, %s3384_s24  ;;  %875 = vrot.lane.b32.xlu2 %v708_v35, %s3385_s26 }
 0x160   : > { %1079 = vrot.lane.b32.xlu0 %v708_v35, %s3383_s23 }
 0x165   : > { %v755_v36 = vpop.f32.mrf.mxu2 }
 0x166   : > { %v711_v37 = vpop.f32.mrf.mxu1  ;;  %v3708_v38 = vpack.i.bf16 %v752_v34, %v755_v36 }
 0x167   : > { %979 = vrot.lane.b32.xlu1 %v711_v37, %s3384_s24  ;;  %1081 = vrot.lane.b32.xlu2 %v711_v37, %s3383_s23 }
 0x168   : > { %1071 = vrot.lane.b32.xlu0 %v696_v13, %s3383_s23 }
 0x16d   : > { %v3723_v41 = vpop.f32.mrf.mxu2 }
 0x16e   : > { %v714_v39 = vpop.f32.mrf.mxu1 }
 0x16f   : > { %877 = vrot.lane.b32.xlu2 %v711_v37, %s3385_s26  ;;  %1083 = vrot.lane.b32.xlu1 %v714_v39, %s3383_s23 }
 0x170   : > { %1057 = vrot.lane.b32.xlu0 %v649_v40, %s3383_s23  ;;  %2724 = vmatpush.xpose.msk.msrb.mxu3 %vm764_vm9, %v714_v39 }
 0x174   : > { %2725 = vmatpush.xpose.msk.msrb.mxu3 %vm764_vm9, %v711_v37 }
 0x175   : > { %v761_v43 = vpop.f32.mrf.mxu2 }
 0x176   : > { %v2978_v59 = vpack.i.bf16 %v3723_v41, %v761_v43 }
 0x177   : > { %879 = vrot.lane.b32.xlu2 %v714_v39, %s3385_s26  ;;  %973 = vrot.lane.b32.xlu1 %v702_v31, %s3384_s24 }
 0x178   : > { %867 = vrot.lane.b32.xlu0 %v696_v13, %s3385_s26  ;;  %2726 = vmatpush.xpose.msk.msrb.mxu3 %vm764_vm9, %v708_v35 }
 0x17c   : > { %2727 = vmatpush.xpose.msk.msrb.mxu3 %vm764_vm9, %v705_v33  ;;  %v1188_v33 = vld [vmem:[%s4574_s1 + $0x8] sm:$0xff] }
 0x17f   : > { %871 = vrot.lane.b32.xlu2 %v702_v31, %s3385_s26  ;;  %981 = vrot.lane.b32.xlu1 %v714_v39, %s3384_s24 }
 0x180   : > { %853 = vrot.lane.b32.xlu0 %v649_v40, %s3385_s26  ;;  %2728 = vmatpush.xpose.msk.msrb.mxu3 %vm764_vm9, %v702_v31 }
 0x184   : > { %2729 = vmatpush.xpose.msk.msrb.mxu3 %vm764_vm9, %v699_v29 }
 0x187   : > { %869 = vrot.lane.b32.xlu2 %v699_v29, %s3385_s26  ;;  %971 = vrot.lane.b32.xlu1 %v699_v29, %s3384_s24 }
 0x188   : > { %855 = vrot.lane.b32.xlu0 %v652_v42, %s3385_s26  ;;  %2730 = vmatpush.xpose.msk.msrb.mxu3 %vm764_vm9, %v696_v13 }
 0x18b   : > { %2731 = vmatmul.msk.f32.vlgmr.msrb.gmra.mxu3 %vm764_vm9, %v649_v40 }
 0x18c   : > { %1581 = vmatpush.msra.mxu3 %v761_v43 }
 0x18e   : > { %1582 = vmatpush.msra.mxu3 %v3723_v41  ;;  %v1189_v41 = vld [vmem:[%s4574_s1 + $0x10] sm:$0xff] }
 0x18f   : > { %969 = vrot.lane.b32.xlu2 %v696_v13, %s3384_s24  ;;  %1059 = vrot.lane.b32.xlu1 %v652_v42, %s3383_s23 }
 0x190   : > { %1583 = vmatpush.msra.mxu3 %v755_v36  ;;  %857 = vrot.lane.b32.xlu0 %v655_v44, %s3385_s26 }
 0x192   : > { %1584 = vmatpush.msra.mxu3 %v752_v34 }
 0x193   : > { %2732 = vmatmul.msk.f32.gmra.mxu3 %vm764_vm9, %v652_v42 }
 0x194   : > { %1585 = vmatpush.msra.mxu3 %v3700_v32 }
 0x196   : > { %1586 = vmatpush.msra.mxu3 %v3697_v30 }
 0x197   : > { %955 = vrot.lane.b32.xlu2 %v649_v40, %s3384_s24  ;;  %1061 = vrot.lane.b32.xlu1 %v655_v44, %s3383_s23 }
 0x198   : > { %1587 = vmatpush.msra.mxu3 %v3694_v25  ;;  %859 = vrot.lane.b32.xlu0 %v658_v45, %s3385_s26 }
 0x19b   : > { %2733 = vmatmul.msk.f32.gmra.mxu3 %vm764_vm9, %v655_v44 }
 0x19f   : > { %957 = vrot.lane.b32.xlu2 %v652_v42, %s3384_s24  ;;  %1063 = vrot.lane.b32.xlu1 %v658_v45, %s3383_s23 }
 0x1a0   : > { %861 = vrot.lane.b32.xlu0 %v661_v46, %s3385_s26 }
 0x1a3   : > { %2734 = vmatmul.msk.f32.gmra.mxu3 %vm764_vm9, %v658_v45 }
 0x1a7   : > { %959 = vrot.lane.b32.xlu2 %v655_v44, %s3384_s24  ;;  %1065 = vrot.lane.b32.xlu1 %v661_v46, %s3383_s23 }
 0x1a8   : > { %863 = vrot.lane.b32.xlu0 %v664_v47, %s3385_s26 }
 0x1ab   : > { %2735 = vmatmul.msk.f32.gmra.mxu3 %vm764_vm9, %v661_v46 }
 0x1af   : > { %961 = vrot.lane.b32.xlu2 %v658_v45, %s3384_s24  ;;  %1067 = vrot.lane.b32.xlu1 %v664_v47, %s3383_s23 }
 0x1b0   : > { %967 = vrot.lane.b32.xlu0 %v667_v48, %s3384_s24 }
 0x1b1   : > { %v874_v49 = vpop.permute.xlu2 %873 }
 0x1b3   : > { %2736 = vmatmul.msk.f32.gmra.mxu3 %vm764_vm9, %v664_v47 }
 0x1b7   : > { %963 = vrot.lane.b32.xlu2 %v661_v46, %s3384_s24  ;;  %1069 = vrot.lane.b32.xlu1 %v667_v48, %s3383_s23 }
 0x1b8   : > { %2949 = vrot.lane.b32.xlu0 %v3708_v38, %s3383_s23 }
 0x1b9   : > { %v876_v50 = vpop.permute.xlu2 %875  ;;  %v1074_v51 = vpop.permute.xlu0 %1073 }
 0x1bb   : > { %2737 = vmatmul.msk.f32.gmra.mxu3 %vm764_vm9, %v667_v48 }
 0x1bf   : > { %965 = vrot.lane.b32.xlu2 %v664_v47, %s3384_s24  ;;  %865 = vrot.lane.b32.xlu1 %v667_v48, %s3385_s26 }
 0x1c0   : > { %1856 = vrot.lane.b32.xlu0 %v3694_v25, %s3383_s23 }
 0x1c1   : > { %v1082_v52 = vpop.permute.xlu2 %1081  ;;  %v1076_v53 = vpop.permute.xlu0 %1075 }
 0x1c7   : > { %2969 = vrot.lane.b32.xlu2 %v2968_v54, %s3385_s26  ;;  %2954 = vrot.lane.b32.xlu1 %v3708_v38, %s3385_s26 }
 0x1c8   : > { %2974 = vrot.lane.b32.xlu0 %v2968_v54, %s3384_s24 }
 0x1c9   : > { %v976_v55 = vpop.permute.xlu1 %975  ;;  %v878_v56 = vpop.permute.xlu2 %877 }
 0x1ca   : > { %v1078_v57 = vpop.permute.xlu0 %1077 }
 0x1cf   : > { %2979 = vrot.lane.b32.xlu2 %v2978_v59, %s3383_s23  ;;  %2959 = vrot.lane.b32.xlu1 %v2968_v54, %s3383_s23 }
 0x1d0   : > { %1624 = vrot.lane.b32.xlu0 %v3694_v25, %s3385_s26 }
 0x1d1   : > { %v978_v60 = vpop.permute.xlu1 %977  ;;  %v880_v61 = vpop.permute.xlu2 %879 }
 0x1d2   : > { %v1080_v7 = vpop.permute.xlu0 %1079  ;;  %2738 = vmatpush.xpose.msk.msrb.mxu0 %vm764_vm9, %v880_v61 }
 0x1d6   : > { %2739 = vmatpush.xpose.msk.msrb.mxu0 %vm764_vm9, %v878_v56 }
 0x1d7   : > { %2989 = vrot.lane.b32.xlu2 %v2978_v59, %s3384_s24  ;;  %2964 = vrot.lane.b32.xlu1 %v3708_v38, %s3384_s24 }
 0x1d9   : > { %v980_v62 = vpop.permute.xlu1 %979  ;;  %v872_v63 = vpop.permute.xlu2 %871 }
 0x1da   : > { %v1072_v11 = vpop.permute.xlu0 %1071  ;;  %2740 = vmatpush.xpose.msk.msrb.mxu0 %vm764_vm9, %v876_v50 }
 0x1de   : > { %2741 = vmatpush.xpose.msk.msrb.mxu0 %vm764_vm9, %v874_v49 }
 0x1df   : > { %2984 = vrot.lane.b32.xlu1 %v2978_v59, %s3385_s26 }
 0x1e1   : > { %v870_v0 = vpop.permute.xlu2 %869  ;;  %v1084_v1 = vpop.permute.xlu1 %1083 }
 0x1e2   : > { %v1058_v3 = vpop.permute.xlu0 %1057  ;;  %2742 = vmatpush.xpose.msk.msrb.mxu0 %vm764_vm9, %v872_v63  ;;  %2766 = vmatpush.xpose.msk.msrb.mxu2 %vm764_vm9, %v1084_v1 }
 0x1e6   : > { %2743 = vmatpush.xpose.msk.msrb.mxu0 %vm764_vm9, %v870_v0  ;;  %2767 = vmatpush.xpose.msk.msrb.mxu2 %vm764_vm9, %v1082_v52 }
 0x1e9   : > { %v970_v4 = vpop.permute.xlu2 %969  ;;  %v974_v5 = vpop.permute.xlu1 %973 }
 0x1ea   : > { %v868_v2 = vpop.permute.xlu0 %867  ;;  %2768 = vmatpush.xpose.msk.msrb.mxu2 %vm764_vm9, %v1080_v7 }
 0x1eb   : > { %2744 = vmatpush.xpose.msk.msrb.mxu0 %vm764_vm9, %v868_v2 }
 0x1ee   : > { %2769 = vmatpush.xpose.msk.msrb.mxu2 %vm764_vm9, %v1078_v57 }
 0x1f1   : > { %v956_v6 = vpop.permute.xlu2 %955  ;;  %v982_v9 = vpop.permute.xlu1 %981 }
 0x1f2   : > { %v854_v10 = vpop.permute.xlu0 %853  ;;  %2752 = vmatpush.xpose.msk.msrb.mxu1 %vm764_vm9, %v982_v9  ;;  %2770 = vmatpush.xpose.msk.msrb.mxu2 %vm764_vm9, %v1076_v53 }
 0x1f3   : > { %2745 = vmatmul.msk.f32.vlgmr.msrb.gmra.mxu0 %vm764_vm9, %v854_v10 }
 0x1f6   : > { %2753 = vmatpush.xpose.msk.msrb.mxu1 %vm764_vm9, %v980_v62  ;;  %2771 = vmatpush.xpose.msk.msrb.mxu2 %vm764_vm9, %v1074_v51  ;;  %v1190_v51 = vld [vmem:[%s4574_s1 + $0x18] sm:$0xff] }
 0x1f9   : > { %v958_v14 = vpop.permute.xlu2 %957  ;;  %v972_v15 = vpop.permute.xlu1 %971 }
 0x1fa   : > { %v856_v16 = vpop.permute.xlu0 %855  ;;  %2754 = vmatpush.xpose.msk.msrb.mxu1 %vm764_vm9, %v978_v60  ;;  %2772 = vmatpush.xpose.msk.msrb.mxu2 %vm764_vm9, %v1072_v11 }
 0x1fb   : > { %2746 = vmatmul.msk.f32.gmra.mxu0 %vm764_vm9, %v856_v16 }
 0x1fd   : > { %2773 = vmatmul.msk.f32.vlgmr.msrb.gmra.mxu2 %vm764_vm9, %v1058_v3 }
 0x1fe   : > { %2755 = vmatpush.xpose.msk.msrb.mxu1 %vm764_vm9, %v976_v55 }
 0x201   : > { %v960_v20 = vpop.permute.xlu2 %959  ;;  %v1060_v12 = vpop.permute.xlu1 %1059 }
 0x202   : > { %v858_v21 = vpop.permute.xlu0 %857  ;;  %2756 = vmatpush.xpose.msk.msrb.mxu1 %vm764_vm9, %v974_v5 }
 0x203   : > { %2747 = vmatmul.msk.f32.gmra.mxu0 %vm764_vm9, %v858_v21 }
 0x205   : > { %2774 = vmatmul.msk.f32.gmra.mxu2 %vm764_vm9, %v1060_v12 }
 0x206   : > { %2757 = vmatpush.xpose.msk.msrb.mxu1 %vm764_vm9, %v972_v15 }
 0x209   : > { %v962_v22 = vpop.permute.xlu2 %961  ;;  %v1062_v17 = vpop.permute.xlu1 %1061 }
 0x20a   : > { %v860_v23 = vpop.permute.xlu0 %859  ;;  %2758 = vmatpush.xpose.msk.msrb.mxu1 %vm764_vm9, %v970_v4 }
 0x20b   : > { %2748 = vmatmul.msk.f32.gmra.mxu0 %vm764_vm9, %v860_v23 }
 0x20d   : > { %2759 = vmatmul.msk.f32.vlgmr.msrb.gmra.mxu1 %vm764_vm9, %v956_v6  ;;  %2775 = vmatmul.msk.f32.gmra.mxu2 %vm764_vm9, %v1062_v17 }
 0x20e   : > { %v824_v24 = vpop.f32.mrf.mxu3 }
 0x20f   : > { %846 = vst.msk [vmem:[#allocation2] sm:$0xff] %vm845_vm10, %v824_v24 }
 0x211   : > { %v964_v19 = vpop.permute.xlu2 %963  ;;  %v1064_v26 = vpop.permute.xlu1 %1063 }
 0x212   : > { %v862_v27 = vpop.permute.xlu0 %861 }
 0x213   : > { %2749 = vmatmul.msk.f32.gmra.mxu0 %vm764_vm9, %v862_v27 }
 0x215   : > { %2760 = vmatmul.msk.f32.gmra.mxu1 %vm764_vm9, %v958_v14  ;;  %2776 = vmatmul.msk.f32.gmra.mxu2 %vm764_vm9, %v1064_v26 }
 0x216   : > { %v827_v8 = vpop.f32.mrf.mxu3  ;;  %v1159_v28 = vld [vmem:[#allocation2] sm:$0xff] }
 0x217   : > { %847 = vst.msk [vmem:[#allocation2 + $0x8] sm:$0xff] %vm845_vm10, %v827_v8  ;;  %v3820_v13 = vadd.f32 %v1187_v18, %v1159_v28  ;;  %v1195_v28 = vld [vmem:[%s4574_s1 + $0x40] sm:$0xff] }
 0x219   : > { %v966_v29 = vpop.permute.xlu2 %965  ;;  %v1066_v30 = vpop.permute.xlu1 %1065  ;;  %v1243_v31 = vsel %vm845_vm10, %v3820_v13, -inf }
 0x21a   : > { %1244 = vmax.xlane.f32.xlu1 %v1243_v31  ;;  %v864_v32 = vpop.permute.xlu0 %863 }
 0x21b   : > { %2750 = vmatmul.msk.f32.gmra.mxu0 %vm764_vm9, %v864_v32 }
 0x21d   : > { %2761 = vmatmul.msk.f32.gmra.mxu1 %vm764_vm9, %v960_v20  ;;  %2777 = vmatmul.msk.f32.gmra.mxu2 %vm764_vm9, %v1066_v30 }
 0x21e   : > { %v830_v34 = vpop.f32.mrf.mxu3  ;;  %v1160_v35 = vld [vmem:[#allocation2 + $0x8] sm:$0xff] }
 0x21f   : > { %848 = vst.msk [vmem:[#allocation2 + $0x10] sm:$0xff] %vm845_vm10, %v830_v34  ;;  %v3831_v36 = vadd.f32 %v1188_v33, %v1160_v35  ;;  %v1196_v34 = vld [vmem:[%s4574_s1 + $0x48] sm:$0xff] }
 0x220   : > { %v1208_v35 = vld [vmem:[%s4574_s1 + $0xa8] sm:$0xff] }
 0x221   : > { %v3833_v37 = vpop.permute.xlu2 %2969  ;;  %v1068_v38 = vpop.permute.xlu1 %1067  ;;  %v1246_v39 = vsel %vm845_vm10, %v3831_v36, -inf }
 0x222   : > { %1247 = vmax.xlane.f32.xlu0 %v1246_v39  ;;  %v968_v40 = vpop.permute.xlu0 %967  ;;  %v2972_v17 = vunpack.i.h.bf16 %v3833_v37 }
 0x225   : > { %2762 = vmatmul.msk.f32.gmra.mxu1 %vm764_vm9, %v962_v22  ;;  %2778 = vmatmul.msk.f32.gmra.mxu2 %vm764_vm9, %v1068_v38  ;;  %v2971_v22 = vunpack.i.l.bf16 %v3833_v37 }
 0x226   : > { %v833_v42 = vpop.f32.mrf.mxu3  ;;  %v1161_v43 = vld [vmem:[#allocation2 + $0x10] sm:$0xff] }
 0x227   : > { %849 = vst.msk [vmem:[#allocation2 + $0x18] sm:$0xff] %vm845_vm10, %v833_v42  ;;  %v3843_v44 = vadd.f32 %v1189_v41, %v1161_v43 }
 0x229   : > { %v2980_v45 = vpop.permute.xlu2 %2979  ;;  %v1070_v46 = vpop.permute.xlu1 %1069  ;;  %v1249_v47 = vsel %vm845_vm10, %v3843_v44, -inf }
 0x22a   : > { %v2981_v48 = vunpack.i.l.bf16 %v2980_v45  ;;  %1250 = vmax.xlane.f32.xlu1 %v1249_v47  ;;  %v2950_v49 = vpop.permute.xlu0 %2949  ;;  %v2982_v50 = vunpack.i.h.bf16 %v2980_v45  ;;  %v1197_v47 = vld [vmem:[%s4574_s1 + $0x50] sm:$0xff] }
 0x22b   : > { %v2951_v52 = vunpack.i.l.bf16 %v2950_v49  ;;  %v2952_v56 = vunpack.i.h.bf16 %v2950_v49 }
 0x22c   : > { %1907 = vmatpush.msra.mxu2 %v2981_v48  ;;  %v1209_v48 = vld [vmem:[%s4574_s1 + $0xb0] sm:$0xff] }
 0x22d   : > { %2763 = vmatmul.msk.f32.gmra.mxu1 %vm764_vm9, %v964_v19  ;;  %2779 = vmatmul.msk.f32.gmra.mxu2 %vm764_vm9, %v1070_v46  ;;  %v1194_v19 = vld [vmem:[%s4574_s1 + $0x38] sm:$0xff] }
 0x22e   : > { %v836_v53 = vpop.f32.mrf.mxu3  ;;  %1908 = vmatpush.msra.mxu2 %v2982_v50  ;;  %v1162_v54 = vld [vmem:[#allocation2 + $0x18] sm:$0xff] }
 0x22f   : > { %850 = vst.msk [vmem:[#allocation2 + $0x20] sm:$0xff] %vm845_vm10, %v836_v53  ;;  %v3853_v55 = vadd.f32 %v1190_v51, %v1162_v54 }
 0x230   : > { %1909 = vmatpush.msra.mxu2 %v2951_v52  ;;  %v1201_v52 = vld [vmem:[%s4574_s1 + $0x70] sm:$0xff] }
 0x231   : > { %v2990_v57 = vpop.permute.xlu2 %2989  ;;  %v866_v59 = vpop.permute.xlu1 %865  ;;  %v1252_v60 = vsel %vm845_vm10, %v3853_v55, -inf }
 0x232   : > { %v2991_v61 = vunpack.i.l.bf16 %v2990_v57  ;;  %1253 = vmax.xlane.f32.xlu1 %v1252_v60  ;;  %2751 = vmatmul.msk.f32.gmra.mxu0 %vm764_vm9, %v866_v59  ;;  %v2992_v7 = vunpack.i.h.bf16 %v2990_v57  ;;  %v1857_v0 = vpop.permute.xlu0 %1856 }
 0x233   : > { %1910 = vmatpush.msra.mxu2 %v2952_v56 }
 0x234   : > { %1791 = vmatpush.msra.mxu1 %v2991_v61 }
 0x235   : > { %2764 = vmatmul.msk.f32.gmra.mxu1 %vm764_vm9, %v966_v29 }
 0x236   : > { %v839_v62 = vpop.f32.mrf.mxu3  ;;  %1792 = vmatpush.msra.mxu1 %v2992_v7 }
 0x237   : > { %851 = vst.msk [vmem:[#allocation2 + $0x28] sm:$0xff] %vm845_vm10, %v839_v62 }
 0x239   : > { %v2955_v63 = vpop.permute.xlu1 %2954 }
 0x23a   : > { %v2975_v6 = vpop.permute.xlu0 %2974  ;;  %v2956_v12 = vunpack.i.l.bf16 %v2955_v63  ;;  %v2957_v21 = vunpack.i.h.bf16 %v2955_v63  ;;  %v1210_v63 = vld [vmem:[%s4574_s1 + $0xb8] sm:$0xff] }
 0x23b   : > { %v2976_v10 = vunpack.i.l.bf16 %v2975_v6  ;;  %v2977_v14 = vunpack.i.h.bf16 %v2975_v6 }
 0x23d   : > { %2765 = vmatmul.msk.f32.gmra.mxu1 %vm764_vm9, %v968_v40 }
 0x23e   : > { %v842_v11 = vpop.f32.mrf.mxu3 }
 0x23f   : > { %852 = vst.msk [vmem:[#allocation2 + $0x30] sm:$0xff] %vm845_vm10, %v842_v11 }
 0x241   : > { %v2960_v1 = vpop.permute.xlu1 %2959 }
 0x242   : > { %v2961_v3 = vunpack.i.l.bf16 %v2960_v1  ;;  %v2962_v4 = vunpack.i.h.bf16 %v2960_v1  ;;  %v1625_v23 = vpop.permute.xlu0 %1624  ;;  %v1202_v1 = vld [vmem:[%s4574_s1 + $0x78] sm:$0xff] }
 0x244   : > { %1911 = vmatpush.msra.mxu2 %v2961_v3 }
 0x246   : > { %1912 = vmatpush.msra.mxu2 %v2962_v4 }
 0x248   : > { %1913 = vmatpush.msra.mxu2 %v1857_v0 }
 0x249   : > { %v2965_v5 = vpop.permute.xlu1 %2964 }
 0x24a   : > { %v2966_v2 = vunpack.i.l.bf16 %v2965_v5  ;;  %v2967_v9 = vunpack.i.h.bf16 %v2965_v5 }
 0x24c   : > { %1793 = vmatpush.msra.mxu1 %v2966_v2 }
 0x24e   : > { %1794 = vmatpush.msra.mxu1 %v2967_v9 }
 0x250   : > { %1795 = vmatpush.msra.mxu1 %v2976_v10 }
 0x251   : > { %v2985_v15 = vpop.permute.xlu1 %2984 }
 0x252   : > { %v2986_v16 = vunpack.i.l.bf16 %v2985_v15  ;;  %1796 = vmatpush.msra.mxu1 %v2977_v14  ;;  %v2987_v20 = vunpack.i.h.bf16 %v2985_v15  ;;  %v1211_v14 = vld [vmem:[%s4574_s1 + $0xc0] sm:$0xff] }
 0x254   : > { %1675 = vmatpush.msra.mxu0 %v2986_v16  ;;  %v1203_v16 = vld [vmem:[%s4574_s1 + $0x80] sm:$0xff] }
 0x256   : > { %1676 = vmatpush.msra.mxu0 %v2987_v20 }
 0x258   : > { %1677 = vmatpush.msra.mxu0 %v2956_v12 }
 0x25a   : > { %1678 = vmatpush.msra.mxu0 %v2957_v21 }
 0x25c   : > { %1679 = vmatpush.msra.mxu0 %v2971_v22 }
 0x25e   : > { %1680 = vmatpush.msra.mxu0 %v2972_v17 }
 0x260   : > { %1681 = vmatpush.msra.mxu0 %v1625_v23 }
 0x270   : > { %v926_v24 = vpop.f32.mrf.mxu0 }
 0x271   : > { %948 = vst.msk [vmem:[#allocation2 + $0x38] sm:$0xff] %vm845_vm10, %v926_v24 }
 0x278   : > { %v929_v26 = vpop.f32.mrf.mxu0  ;;  %v1166_v27 = vld [vmem:[#allocation2 + $0x38] sm:$0xff] }
 0x279   : > { %949 = vst.msk [vmem:[#allocation2 + $0x40] sm:$0xff] %vm845_vm10, %v929_v26  ;;  %v3869_v18 = vadd.f32 %v1194_v19, %v1166_v27  ;;  %v1204_v26 = vld [vmem:[%s4574_s1 + $0x88] sm:$0xff] }
 0x27b   : > { %v1264_v8 = vsel %vm845_vm10, %v3869_v18, -inf }
 0x27c   : > { %1265 = vmax.xlane.f32.xlu1 %v1264_v8 }
 0x280   : > { %v932_v29 = vpop.f32.mrf.mxu0  ;;  %v1130_v30 = vpop.f32.mrf.mxu2  ;;  %v1167_v31 = vld [vmem:[#allocation2 + $0x40] sm:$0xff] }
 0x281   : > { %950 = vst.msk [vmem:[#allocation2 + $0x48] sm:$0xff] %vm845_vm10, %v932_v29  ;;  %v3877_v32 = vadd.f32 %v1195_v28, %v1167_v31  ;;  %v1198_v31 = vld [vmem:[%s4574_s1 + $0x58] sm:$0xff] }
 0x282   : > { %1152 = vst.msk [vmem:[#allocation2 + $0xa8] sm:$0xff] %vm845_vm10, %v1130_v30 }
 0x283   : > { %v1267_v33 = vsel %vm845_vm10, %v3877_v32, -inf }
 0x284   : > { %1268 = vmax.xlane.f32.xlu1 %v1267_v33 }
 0x288   : > { %v935_v37 = vpop.f32.mrf.mxu0  ;;  %v1133_v38 = vpop.f32.mrf.mxu2  ;;  %v1168_v39 = vld [vmem:[#allocation2 + $0x48] sm:$0xff] }
 0x289   : > { %951 = vst.msk [vmem:[#allocation2 + $0x50] sm:$0xff] %vm845_vm10, %v935_v37  ;;  %v3889_v40 = vadd.f32 %v1196_v34, %v1168_v39  ;;  %v1180_v41 = vld [vmem:[#allocation2 + $0xa8] sm:$0xff] }
 0x28a   : > { %1153 = vst.msk [vmem:[#allocation2 + $0xb0] sm:$0xff] %vm845_vm10, %v1133_v38  ;;  %v1028_v42 = vpop.f32.mrf.mxu1  ;;  %v3892_v43 = vadd.f32 %v1208_v35, %v1180_v41  ;;  %v1205_v35 = vld [vmem:[%s4574_s1 + $0x90] sm:$0xff] }
 0x28b   : > { %1050 = vst.msk [vmem:[#allocation2 + $0x70] sm:$0xff] %vm845_vm10, %v1028_v42  ;;  %v1270_v45 = vsel %vm845_vm10, %v3889_v40, -inf }
 0x28c   : > { %1271 = vmax.xlane.f32.xlu1 %v1270_v45  ;;  %v1306_v46 = vsel %vm845_vm10, %v3892_v43, -inf }
 0x28d   : > { %1307 = vmax.xlane.f32.xlu2 %v1306_v46 }
 0x290   : > { %v938_v49 = vpop.f32.mrf.mxu0  ;;  %v1136_v50 = vpop.f32.mrf.mxu2  ;;  %v1169_v51 = vld [vmem:[#allocation2 + $0x50] sm:$0xff] }
 0x291   : > { %952 = vst.msk [vmem:[#allocation2 + $0x58] sm:$0xff] %vm845_vm10, %v938_v49  ;;  %v3909_v53 = vadd.f32 %v1197_v47, %v1169_v51  ;;  %v1181_v54 = vld [vmem:[#allocation2 + $0xb0] sm:$0xff]  ;;  %v1212_v47 = vld [vmem:[%s4574_s1 + $0xc8] sm:$0xff]  ;;  %v1191_v49 = vld [vmem:[%s4574_s1 + $0x20] sm:$0xff] }
 0x292   : > { %1154 = vst.msk [vmem:[#allocation2 + $0xb8] sm:$0xff] %vm845_vm10, %v1136_v50  ;;  %v1031_v56 = vpop.f32.mrf.mxu1  ;;  %v3912_v57 = vadd.f32 %v1209_v48, %v1181_v54  ;;  %v1173_v59 = vld [vmem:[#allocation2 + $0x70] sm:$0xff]  ;;  %v1163_v48 = vld [vmem:[#allocation2 + $0x20] sm:$0xff]  ;;  %v1206_v50 = vld [vmem:[%s4574_s1 + $0x98] sm:$0xff] }
 0x293   : > { %1051 = vst.msk [vmem:[#allocation2 + $0x78] sm:$0xff] %vm845_vm10, %v1031_v56  ;;  %v1273_v60 = vsel %vm845_vm10, %v3909_v53, -inf  ;;  %v3917_v61 = vadd.f32 %v1201_v52, %v1173_v59  ;;  %v3993_v56 = vadd.f32 %v1191_v49, %v1163_v48 }
 0x294   : > { %1274 = vmax.xlane.f32.xlu1 %v1273_v60  ;;  %v1309_v7 = vsel %vm845_vm10, %v3912_v57, -inf }
 0x295   : > { %1310 = vmax.xlane.f32.xlu2 %v1309_v7  ;;  %v1285_v62 = vsel %vm845_vm10, %v3917_v61, -inf }
 0x296   : > { %1286 = vmax.xlane.f32.xlu0 %v1285_v62  ;;  %v1199_v62 = vld [vmem:[%s4574_s1 + $0x60] sm:$0xff] }
 0x298   : > { %v941_v11 = vpop.f32.mrf.mxu0  ;;  %v1139_v0 = vpop.f32.mrf.mxu2  ;;  %v1170_v30 = vld [vmem:[#allocation2 + $0x58] sm:$0xff] }
 0x299   : > { %953 = vst.msk [vmem:[#allocation2 + $0x60] sm:$0xff] %vm845_vm10, %v941_v11  ;;  %v1182_v3 = vld [vmem:[#allocation2 + $0xb8] sm:$0xff]  ;;  %v3973_v37 = vadd.f32 %v1198_v31, %v1170_v30 }
 0x29a   : > { %1155 = vst.msk [vmem:[#allocation2 + $0xc0] sm:$0xff] %vm845_vm10, %v1139_v0  ;;  %v1034_v4 = vpop.f32.mrf.mxu1  ;;  %v3931_v5 = vadd.f32 %v1210_v63, %v1182_v3  ;;  %v1174_v2 = vld [vmem:[#allocation2 + $0x78] sm:$0xff]  ;;  %v1255_v63 = vsel %vm845_vm10, %v3993_v56, -inf  ;;  %v1213_v0 = vld [vmem:[%s4574_s1 + $0xd0] sm:$0xff] }
 0x29b   : > { %1052 = vst.msk [vmem:[#allocation2 + $0x80] sm:$0xff] %vm845_vm10, %v1034_v4  ;;  %v3934_v6 = vadd.f32 %v1202_v1, %v1174_v2  ;;  %v1276_v45 = vsel %vm845_vm10, %v3973_v37, -inf  ;;  %v1200_v4 = vld [vmem:[%s4574_s1 + $0x68] sm:$0xff] }
 0x29c   : > { %v1312_v9 = vsel %vm845_vm10, %v3931_v5, -inf }
 0x29d   : > { %1313 = vmax.xlane.f32.xlu2 %v1312_v9  ;;  %v1288_v10 = vsel %vm845_vm10, %v3934_v6, -inf }
 0x29e   : > { %1289 = vmax.xlane.f32.xlu0 %v1288_v10 }
 0x2a0   : > { %v1142_v15 = vpop.f32.mrf.mxu2  ;;  %v1171_v1 = vld [vmem:[#allocation2 + $0x60] sm:$0xff] }
 0x2a1   : > { %1156 = vst.msk [vmem:[#allocation2 + $0xc8] sm:$0xff] %vm845_vm10, %v1142_v15  ;;  %v1183_v20 = vld [vmem:[#allocation2 + $0xc0] sm:$0xff]  ;;  %v4015_v9 = vadd.f32 %v1199_v62, %v1171_v1 }
 0x2a2   : > { %v1037_v12 = vpop.f32.mrf.mxu1  ;;  %v3947_v21 = vadd.f32 %v1211_v14, %v1183_v20  ;;  %v1175_v22 = vld [vmem:[#allocation2 + $0x80] sm:$0xff] }
 0x2a3   : > { %1053 = vst.msk [vmem:[#allocation2 + $0x88] sm:$0xff] %vm845_vm10, %v1037_v12  ;;  %v3950_v17 = vadd.f32 %v1203_v16, %v1175_v22  ;;  %v1279_v15 = vsel %vm845_vm10, %v4015_v9, -inf  ;;  %v1207_v12 = vld [vmem:[%s4574_s1 + $0xa0] sm:$0xff] }
 0x2a4   : > { %v1315_v23 = vsel %vm845_vm10, %v3947_v21, -inf }
 0x2a5   : > { %1316 = vmax.xlane.f32.xlu2 %v1315_v23  ;;  %v1291_v24 = vsel %vm845_vm10, %v3950_v17, -inf }
 0x2a6   : > { %1292 = vmax.xlane.f32.xlu0 %v1291_v24 }
 0x2a8   : > { %v1145_v19 = vpop.f32.mrf.mxu2  ;;  %v1184_v46 = vld [vmem:[#allocation2 + $0xc8] sm:$0xff] }
 0x2a9   : > { %1157 = vst.msk [vmem:[#allocation2 + $0xd0] sm:$0xff] %vm845_vm10, %v1145_v19  ;;  %v3991_v51 = vadd.f32 %v1212_v47, %v1184_v46  ;;  %v1214_v19 = vld [vmem:[%s4574_s1 + $0xd8] sm:$0xff] }
 0x2aa   : > { %v1040_v27 = vpop.f32.mrf.mxu1  ;;  %v1176_v8 = vld [vmem:[#allocation2 + $0x88] sm:$0xff] }
 0x2ab   : > { %1054 = vst.msk [vmem:[#allocation2 + $0x90] sm:$0xff] %vm845_vm10, %v1040_v27  ;;  %v3961_v28 = vadd.f32 %v1204_v26, %v1176_v8  ;;  %v1318_v60 = vsel %vm845_vm10, %v3991_v51, -inf  ;;  %v4037_v27 = vpop.xlane.xlu1 %1244 }
 0x2ad   : > { %v1294_v29 = vsel %vm845_vm10, %v3961_v28, -inf }
 0x2ae   : > { %1295 = vmax.xlane.f32.xlu0 %v1294_v29 }
 0x2af   : > { %v944_v33 = vpop.f32.mrf.mxu0 }
 0x2b0   : > { %954 = vst.msk [vmem:[#allocation2 + $0x68] sm:$0xff] %vm845_vm10, %v944_v33  ;;  %v1148_v34 = vpop.f32.mrf.mxu2  ;;  %v1185_v11 = vld [vmem:[#allocation2 + $0xd0] sm:$0xff] }
 0x2b1   : > { %1158 = vst.msk [vmem:[#allocation2 + $0xd8] sm:$0xff] %vm845_vm10, %v1148_v34  ;;  %v4013_v2 = vadd.f32 %v1213_v0, %v1185_v11 }
 0x2b2   : > { %v1043_v38 = vpop.f32.mrf.mxu1  ;;  %v1177_v39 = vld [vmem:[#allocation2 + $0x90] sm:$0xff] }
 0x2b3   : > { %1055 = vst.msk [vmem:[#allocation2 + $0x98] sm:$0xff] %vm845_vm10, %v1043_v38  ;;  %v3976_v41 = vadd.f32 %v1205_v35, %v1177_v39  ;;  %v1321_v14 = vsel %vm845_vm10, %v4013_v2, -inf  ;;  %v4041_v29 = vpop.xlane.xlu1 %1250 }
 0x2b5   : > { %v1297_v42 = vsel %vm845_vm10, %v3976_v41, -inf }
 0x2b6   : > { %1298 = vmax.xlane.f32.xlu2 %v1297_v42  ;;  %1277 = vmax.xlane.f32.xlu0 %v1276_v45 }
 0x2b7   : > { %v1172_v3 = vld [vmem:[#allocation2 + $0x68] sm:$0xff] }
 0x2b8   : > { %v4017_v10 = vadd.f32 %v1200_v4, %v1172_v3  ;;  %v1186_v24 = vld [vmem:[#allocation2 + $0xd8] sm:$0xff] }
 0x2b9   : > { %v4035_v26 = vadd.f32 %v1214_v19, %v1186_v24 }
 0x2ba   : > { %v1046_v52 = vpop.f32.mrf.mxu1  ;;  %v1178_v54 = vld [vmem:[#allocation2 + $0x98] sm:$0xff]  ;;  %v1282_v16 = vsel %vm845_vm10, %v4017_v10, -inf }
 0x2bb   : > { %1056 = vst.msk [vmem:[#allocation2 + $0xa0] sm:$0xff] %vm845_vm10, %v1046_v52  ;;  %v3996_v59 = vadd.f32 %v1206_v50, %v1178_v54  ;;  %v1324_v8 = vsel %vm845_vm10, %v4035_v26, -inf  ;;  %v4045_v30 = vpop.xlane.xlu1 %1253 }
 0x2bd   : > { %v1300_v7 = vsel %vm845_vm10, %v3996_v59, -inf }
 0x2be   : > { %1319 = vmax.xlane.f32.xlu2 %v1318_v60  ;;  %1301 = vmax.xlane.f32.xlu1 %v1300_v7 }
 0x2bf   : > { %1256 = vmax.xlane.f32.xlu0 %v1255_v63 }
 0x2c2   : > { %v1179_v20 = vld [vmem:[#allocation2 + $0xa0] sm:$0xff] }
 0x2c3   : > { %v4028_v22 = vadd.f32 %v1207_v12, %v1179_v20  ;;  %v1164_v20 = vld [vmem:[#allocation2 + $0x28] sm:$0xff] }
 0x2c5   : > { %v1303_v23 = vsel %vm845_vm10, %v4028_v22, -inf }
 0x2c6   : > { %1322 = vmax.xlane.f32.xlu1 %v1321_v14  ;;  %1280 = vmax.xlane.f32.xlu2 %v1279_v15 }
 0x2c7   : > { %1283 = vmax.xlane.f32.xlu0 %v1282_v16 }
 0x2cf   : > { %1304 = vmax.xlane.f32.xlu0 %v1303_v23 }
 0x2d7   : > { %1325 = vmax.xlane.f32.xlu0 %v1324_v8 }
 0x2df   : > { %1740 = vrot.lane.b32.xlu1 %v3694_v25, %s3384_s24  ;;  %v4053_v25 = vpop.xlane.xlu0 %1247 }
 0x2ef   : > { %v1266_v31 = vpop.xlane.xlu1 %1265 }
 0x2f0   : > { %v1334_v33 = vsub.f32 %v3869_v18, %v1266_v31  ;;  %v1327_v31 = vsub.f32 %v3820_v13, %v4037_v27  ;;  %v1165_v13 = vld [vmem:[#allocation2 + $0x30] sm:$0xff] }
 0x2f2   : > { %v1369_v34 = vmul.f32 1.442695, %v1334_v33 }
 0x2f4   : > { %3011 = vpow2.f32 %v1369_v34 }
 0x2f7   : > { %v1269_v35 = vpop.xlane.xlu1 %1268 }
 0x2f8   : > { %v1335_v38 = vsub.f32 %v3877_v32, %v1269_v35 }
 0x2fa   : > { %v4049_v39 = vpop.eup %3011  ;;  %v1371_v42 = vmul.f32 1.442695, %v1335_v38 }
 0x2fb   : > { %v1432_v45 = vsel %vm845_vm10, %v4049_v39, 0.0 }
 0x2fc   : > { %3013 = vpow2.f32 %v1371_v42  ;;  %1433 = vadd.xlane.f32.xlu2 %v1432_v45 }
 0x2ff   : > { %v1272_v32 = vpop.xlane.xlu1 %1271 }
 0x300   : > { %v1308_v46 = vpop.xlane.xlu2 %1307  ;;  %v1336_v62 = vsub.f32 %v3889_v40, %v1272_v32 }
 0x301   : > { %v1348_v47 = vsub.f32 %v3892_v43, %v1308_v46 }
 0x302   : > { %v4056_v48 = vpop.eup %3013  ;;  %v1373_v0 = vmul.f32 1.442695, %v1336_v62 }
 0x303   : > { %v1397_v18 = vmul.f32 1.442695, %v1348_v47  ;;  %v1435_v49 = vsel %vm845_vm10, %v4056_v48, 0.0 }
 0x304   : > { %1436 = vadd.xlane.f32.xlu2 %v1435_v49 }
 0x305   : > { %3015 = vpow2.f32 %v1397_v18 }
 0x307   : > { %v1275_v24 = vpop.xlane.xlu1 %1274 }
 0x308   : > { %v1311_v50 = vpop.xlane.xlu2 %1310  ;;  %v1337_v34 = vsub.f32 %v3909_v53, %v1275_v24  ;;  %v1193_v53 = vld [vmem:[%s4574_s1 + $0x30] sm:$0xff] }
 0x309   : > { %v1349_v52 = vsub.f32 %v3912_v57, %v1311_v50  ;;  %v1287_v54 = vpop.xlane.xlu0 %1286  ;;  %v4099_v18 = vadd.f32 %v1193_v53, %v1165_v13 }
 0x30a   : > { %v1341_v60 = vsub.f32 %v3917_v61, %v1287_v54  ;;  %v1375_v27 = vmul.f32 1.442695, %v1337_v34 }
 0x30b   : > { %v4062_v7 = vpop.eup %3015  ;;  %v1399_v43 = vmul.f32 1.442695, %v1349_v52 }
 0x30c   : > { %v1383_v63 = vmul.f32 1.442695, %v1341_v60  ;;  %v1474_v11 = vsel %vm845_vm10, %v4062_v7, 0.0  ;;  %v1261_v60 = vsel %vm845_vm10, %v4099_v18, -inf }
 0x30d   : > { %3017 = vpow2.f32 %v1399_v43  ;;  %1475 = vadd.xlane.f32.xlu1 %v1474_v11 }
 0x30e   : > { %3019 = vpow2.f32 %v1383_v63 }
 0x30f   : > { %3021 = vpow2.f32 %v1373_v0 }
 0x310   : > { %v1314_v1 = vpop.xlane.xlu2 %1313 }
 0x311   : > { %v1290_v3 = vpop.xlane.xlu0 %1289  ;;  %v1350_v40 = vsub.f32 %v3931_v5, %v1314_v1 }
 0x312   : > { %v1342_v57 = vsub.f32 %v3934_v6, %v1290_v3  ;;  %v1192_v6 = vld [vmem:[%s4574_s1 + $0x28] sm:$0xff] }
 0x313   : > { %v4068_v4 = vpop.eup %3017  ;;  %v1401_v12 = vmul.f32 1.442695, %v1350_v40  ;;  %v4082_v19 = vadd.f32 %v1192_v6, %v1164_v20 }
 0x314   : > { %v4070_v61 = vpop.eup %3019  ;;  %v1385_v14 = vmul.f32 1.442695, %v1342_v57  ;;  %v1477_v15 = vsel %vm845_vm10, %v4068_v4, 0.0  ;;  %v1328_v57 = vsub.f32 %v3831_v36, %v4053_v25 }
 0x315   : > { %1478 = vadd.xlane.f32.xlu2 %v1477_v15  ;;  %v1453_v16 = vsel %vm845_vm10, %v4070_v61, 0.0  ;;  %v4080_v23 = vpop.eup %3021  ;;  %v1258_v42 = vsel %vm845_vm10, %v4082_v19, -inf }
 0x316   : > { %3023 = vpow2.f32 %v1385_v14  ;;  %1454 = vadd.xlane.f32.xlu0 %v1453_v16  ;;  %v1438_v38 = vsel %vm845_vm10, %v4080_v23, 0.0 }
 0x317   : > { %3025 = vpow2.f32 %v1401_v12 }
 0x318   : > { %v1317_v46 = vpop.xlane.xlu2 %1316 }
 0x319   : > { %v1293_v5 = vpop.xlane.xlu0 %1292  ;;  %v1351_v54 = vsub.f32 %v3947_v21, %v1317_v46 }
 0x31a   : > { %v1343_v8 = vsub.f32 %v3950_v17, %v1293_v5  ;;  %v1355_v17 = vmul.f32 1.442695, %v1327_v31 }
 0x31b   : > { %v1403_v63 = vmul.f32 1.442695, %v1351_v54 }
 0x31c   : > { %v4087_v33 = vpop.eup %3023  ;;  %v1387_v35 = vmul.f32 1.442695, %v1343_v8 }
 0x31d   : > { %1439 = vadd.xlane.f32.xlu2 %v1438_v38  ;;  %v1456_v45 = vsel %vm845_vm10, %v4087_v33, 0.0  ;;  %v4101_v49 = vpop.eup %3025 }
 0x31e   : > { %3027 = vpow2.f32 %v1387_v35  ;;  %1259 = vmax.xlane.f32.xlu0 %v1258_v42  ;;  %1457 = vadd.xlane.f32.xlu1 %v1456_v45  ;;  %v1480_v62 = vsel %vm845_vm10, %v4101_v49, 0.0 }
 0x31f   : > { %3029 = vpow2.f32 %v1355_v17 }
 0x320   : > { %3031 = vpow2.f32 %v1375_v27 }
 0x321   : > { %v1296_v47 = vpop.xlane.xlu0 %1295 }
 0x322   : > { %v1344_v32 = vsub.f32 %v3961_v28, %v1296_v47 }
 0x324   : > { %v4104_v50 = vpop.eup %3027  ;;  %v1389_v52 = vmul.f32 1.442695, %v1344_v32 }
 0x325   : > { %v1459_v43 = vsel %vm845_vm10, %v4104_v50, 0.0  ;;  %v4113_v28 = vpop.eup %3029 }
 0x326   : > { %3033 = vpow2.f32 %v1389_v52  ;;  %1262 = vmax.xlane.f32.xlu0 %v1261_v60  ;;  %1481 = vadd.xlane.f32.xlu1 %v1480_v62  ;;  %v4115_v1 = vpop.eup %3031  ;;  %v1411_v15 = vsel %vm845_vm10, %v4113_v28, 0.0 }
 0x327   : > { %1460 = vadd.xlane.f32.xlu2 %v1459_v43  ;;  %3035 = vpow2.f32 %v1403_v63  ;;  %v1441_v14 = vsel %vm845_vm10, %v4115_v1, 0.0 }
 0x329   : > { %v1299_v11 = vpop.xlane.xlu2 %1298  ;;  %v1278_v0 = vpop.xlane.xlu0 %1277 }
 0x32a   : > { %v1338_v21 = vsub.f32 %v3973_v37, %v1278_v0  ;;  %v1357_v37 = vmul.f32 1.442695, %v1328_v57  ;;  %v1345_v8 = vsub.f32 %v3976_v41, %v1299_v11 }
 0x32c   : > { %v4118_v3 = vpop.eup %3033  ;;  %v1377_v40 = vmul.f32 1.442695, %v1338_v21  ;;  %v1391_v35 = vmul.f32 1.442695, %v1345_v8 }
 0x32d   : > { %v1462_v16 = vsel %vm845_vm10, %v4118_v3, 0.0  ;;  %v4129_v12 = vpop.eup %3035 }
 0x32e   : > { %1442 = vadd.xlane.f32.xlu0 %v1441_v14  ;;  %1412 = vadd.xlane.f32.xlu1 %v1411_v15  ;;  %3037 = vpow2.f32 %v1377_v40  ;;  %v1483_v31 = vsel %vm845_vm10, %v4129_v12, 0.0 }
 0x32f   : > { %1463 = vadd.xlane.f32.xlu2 %v1462_v16  ;;  %3039 = vpow2.f32 %v1357_v37 }
 0x331   : > { %v1320_v20 = vpop.xlane.xlu2 %1319  ;;  %v1302_v6 = vpop.xlane.xlu1 %1301 }
 0x332   : > { %v1352_v36 = vsub.f32 %v3991_v51, %v1320_v20  ;;  %v1257_v25 = vpop.xlane.xlu0 %1256  ;;  %v1346_v41 = vsub.f32 %v3996_v59, %v1302_v6 }
 0x334   : > { %v1405_v24 = vmul.f32 1.442695, %v1352_v36  ;;  %v4131_v5 = vpop.eup %3037 }
 0x335   : > { %v1444_v34 = vsel %vm845_vm10, %v4131_v5, 0.0  ;;  %v4139_v13 = vpop.eup %3039 }
 0x336   : > { %3041 = vpow2.f32 %v1405_v24  ;;  %1445 = vadd.xlane.f32.xlu0 %v1444_v34  ;;  %v1414_v47 = vsel %vm845_vm10, %v4139_v13, 0.0 }
 0x337   : > { %1484 = vadd.xlane.f32.xlu2 %v1483_v31  ;;  %3043 = vpow2.f32 %v1391_v35 }
 0x339   : > { %v1323_v51 = vpop.xlane.xlu1 %1322  ;;  %v1281_v42 = vpop.xlane.xlu2 %1280 }
 0x33a   : > { %v1353_v38 = vsub.f32 %v4013_v2, %v1323_v51  ;;  %v1284_v45 = vpop.xlane.xlu0 %1283  ;;  %v1339_v27 = vsub.f32 %v4015_v9, %v1281_v42  ;;  %v1393_v2 = vmul.f32 1.442695, %v1346_v41  ;;  %v1329_v9 = vsub.f32 %v3843_v44, %v4041_v29 }
 0x33b   : > { %v1340_v59 = vsub.f32 %v4017_v10, %v1284_v45  ;;  %v1330_v10 = vsub.f32 %v3853_v55, %v4045_v30  ;;  %v1331_v29 = vsub.f32 %v3993_v56, %v1257_v25 }
 0x33c   : > { %v4141_v53 = vpop.eup %3041  ;;  %v1407_v17 = vmul.f32 1.442695, %v1353_v38  ;;  %v1379_v32 = vmul.f32 1.442695, %v1339_v27  ;;  %v1359_v11 = vmul.f32 1.442695, %v1329_v9 }
 0x33d   : > { %v1486_v46 = vsel %vm845_vm10, %v4141_v53, 0.0  ;;  %v4149_v54 = vpop.eup %3043  ;;  %v1381_v63 = vmul.f32 1.442695, %v1340_v59  ;;  %v1361_v37 = vmul.f32 1.442695, %v1330_v10 }
 0x33e   : > { %3045 = vpow2.f32 %v1407_v17  ;;  %1415 = vadd.xlane.f32.xlu0 %v1414_v47  ;;  %v1465_v43 = vsel %vm845_vm10, %v4149_v54, 0.0  ;;  %v1363_v55 = vmul.f32 1.442695, %v1331_v29 }
 0x33f   : > { %1487 = vadd.xlane.f32.xlu2 %v1486_v46  ;;  %3047 = vpow2.f32 %v1393_v2 }
 0x340   : > { %3049 = vpow2.f32 %v1379_v32 }
 0x341   : > { %3051 = vpow2.f32 %v1381_v63 }
 0x342   : > { %v1305_v52 = vpop.xlane.xlu0 %1304  ;;  %3053 = vpow2.f32 %v1359_v11 }
 0x343   : > { %v1347_v40 = vsub.f32 %v4028_v22, %v1305_v52 }
 0x344   : > { %v4151_v60 = vpop.eup %3045 }
 0x345   : > { %v1489_v62 = vsel %vm845_vm10, %v4151_v60, 0.0  ;;  %v4160_v0 = vpop.eup %3047  ;;  %v1395_v30 = vmul.f32 1.442695, %v1347_v40 }
 0x346   : > { %1490 = vadd.xlane.f32.xlu1 %v1489_v62  ;;  %v4162_v57 = vpop.eup %3049  ;;  %v1468_v15 = vsel %vm845_vm10, %v4160_v0, 0.0 }
 0x347   : > { %1466 = vadd.xlane.f32.xlu2 %v1465_v43  ;;  %v1447_v16 = vsel %vm845_vm10, %v4162_v57, 0.0  ;;  %v4173_v20 = vpop.eup %3051 }
 0x348   : > { %v4175_v56 = vpop.eup %3053  ;;  %v1450_v6 = vsel %vm845_vm10, %v4173_v20, 0.0 }
 0x349   : > { %v1417_v36 = vsel %vm845_vm10, %v4175_v56, 0.0 }
 0x34a   : > { %v1326_v21 = vpop.xlane.xlu0 %1325 }
 0x34b   : > { %v1354_v44 = vsub.f32 %v4035_v26, %v1326_v21 }
 0x34d   : > { %v1409_v14 = vmul.f32 1.442695, %v1354_v44 }
 0x34e   : > { %1469 = vadd.xlane.f32.xlu1 %v1468_v15 }
 0x34f   : > { %3055 = vpow2.f32 %v1409_v14  ;;  %1448 = vadd.xlane.f32.xlu2 %v1447_v16 }
 0x350   : > { %3057 = vpow2.f32 %v1361_v37 }
 0x351   : > { %v1741_v26 = vpop.permute.xlu1 %1740  ;;  %3059 = vpow2.f32 %v1363_v55 }
 0x352   : > { %1797 = vmatpush.msra.mxu1 %v1741_v26  ;;  %3061 = vpow2.f32 %v1395_v30 }
 0x355   : > { %v4177_v22 = vpop.eup %3055 }
 0x356   : > { %1451 = vadd.xlane.f32.xlu1 %v1450_v6  ;;  %v1492_v25 = vsel %vm845_vm10, %v4177_v22, 0.0  ;;  %v4185_v24 = vpop.eup %3057 }
 0x357   : > { %1418 = vadd.xlane.f32.xlu2 %v1417_v36  ;;  %1493 = vadd.xlane.f32.xlu0 %v1492_v25  ;;  %v4187_v8 = vpop.eup %3059  ;;  %v1420_v35 = vsel %vm845_vm10, %v4185_v24, 0.0 }
 0x358   : > { %v4189_v31 = vpop.eup %3061  ;;  %v1423_v34 = vsel %vm845_vm10, %v4187_v8, 0.0 }
 0x359   : > { %v1471_v51 = vsel %vm845_vm10, %v4189_v31, 0.0 }
 0x35e   : > { %1424 = vadd.xlane.f32.xlu1 %v1423_v34 }
 0x35f   : > { %1421 = vadd.xlane.f32.xlu2 %v1420_v35  ;;  %1472 = vadd.xlane.f32.xlu0 %v1471_v51 }
 0x36f   : > { %v1434_v38 = vpop.xlane.xlu2 %1433 }
 0x370   : > { %3063 = vrcp.f32 %v1434_v38 }
 0x376   : > { %v3064_v42 = vpop.eup %3063 }
 0x377   : > { %v1530_v45 = vmul.f32 %v3064_v42, %v4049_v39  ;;  %v1437_v41 = vpop.xlane.xlu2 %1436 }
 0x378   : > { %3065 = vrcp.f32 %v1437_v41 }
 0x379   : > { %2787 = vmatmul.msk.f32.vlgmr.msra.gmra.mxu0 %vm845_vm10, %v1530_v45 }
 0x37e   : > { %v3066_v17 = vpop.eup %3065 }
 0x37f   : > { %v1531_v27 = vmul.f32 %v3066_v17, %v4056_v48 }
 0x380   : > { %v1476_v46 = vpop.xlane.xlu1 %1475 }
 0x381   : > { %3067 = vrcp.f32 %v1476_v46  ;;  %2788 = vmatmul.msk.f32.gmra.mxu0 %vm845_vm10, %v1531_v27 }
 0x387   : > { %v3068_v47 = vpop.eup %3067 }
 0x388   : > { %v1544_v2 = vmul.f32 %v3068_v47, %v4062_v7  ;;  %v1479_v32 = vpop.xlane.xlu2 %1478 }
 0x389   : > { %3069 = vrcp.f32 %v1479_v32  ;;  %v1455_v52 = vpop.xlane.xlu0 %1454 }
 0x38a   : > { %3071 = vrcp.f32 %v1455_v52  ;;  %2801 = vmatmul.msk.f32.vlgmr.msra.gmra.mxu2 %vm845_vm10, %v1544_v2 }
 0x38f   : > { %v3070_v39 = vpop.eup %3069 }
 0x390   : > { %v3072_v59 = vpop.eup %3071  ;;  %v1440_v9 = vpop.xlane.xlu2 %1439  ;;  %v1545_v62 = vmul.f32 %v3070_v39, %v4068_v4 }
 0x391   : > { %v1537_v48 = vmul.f32 %v3072_v59, %v4070_v61  ;;  %3073 = vrcp.f32 %v1440_v9  ;;  %v1458_v43 = vpop.xlane.xlu1 %1457  ;;  %v1260_v63 = vpop.xlane.xlu0 %1259 }
 0x392   : > { %3075 = vrcp.f32 %v1458_v43  ;;  %v1332_v11 = vsub.f32 %v4082_v19, %v1260_v63  ;;  %2802 = vmatmul.msk.f32.gmra.mxu2 %vm845_vm10, %v1545_v62 }
 0x393   : > { %2794 = vmatmul.msk.f32.vlgmr.msra.gmra.mxu1 %vm845_vm10, %v1537_v48 }
 0x394   : > { %v1365_v7 = vmul.f32 1.442695, %v1332_v11 }
 0x396   : > { %3077 = vpow2.f32 %v1365_v7 }
 0x397   : > { %v3074_v21 = vpop.eup %3073 }
 0x398   : > { %v3076_v10 = vpop.eup %3075  ;;  %v1532_v44 = vmul.f32 %v3074_v21, %v4080_v23 }
 0x399   : > { %v1482_v29 = vpop.xlane.xlu1 %1481  ;;  %v1263_v4 = vpop.xlane.xlu0 %1262  ;;  %v1538_v61 = vmul.f32 %v3076_v10, %v4087_v33 }
 0x39a   : > { %2789 = vmatmul.msk.f32.gmra.mxu0 %vm845_vm10, %v1532_v44  ;;  %3079 = vrcp.f32 %v1482_v29  ;;  %v1461_v40 = vpop.xlane.xlu2 %1460  ;;  %v1333_v19 = vsub.f32 %v4099_v18, %v1263_v4 }
 0x39b   : > { %3081 = vrcp.f32 %v1461_v40  ;;  %2795 = vmatmul.msk.f32.gmra.mxu1 %vm845_vm10, %v1538_v61 }
 0x39c   : > { %v4213_v14 = vpop.eup %3077  ;;  %v1367_v15 = vmul.f32 1.442695, %v1333_v19 }
 0x39d   : > { %v1426_v16 = vsel %vm845_vm10, %v4213_v14, 0.0 }
 0x39e   : > { %3083 = vpow2.f32 %v1367_v15  ;;  %1427 = vadd.xlane.f32.xlu0 %v1426_v16 }
 0x3a0   : > { %v3080_v23 = vpop.eup %3079 }
 0x3a1   : > { %v3082_v37 = vpop.eup %3081  ;;  %v1413_v33 = vpop.xlane.xlu1 %1412  ;;  %v1546_v30 = vmul.f32 %v3080_v23, %v4101_v49 }
 0x3a2   : > { %v1443_v55 = vpop.xlane.xlu0 %1442  ;;  %3085 = vrcp.f32 %v1413_v33  ;;  %v1464_v26 = vpop.xlane.xlu2 %1463  ;;  %v1539_v18 = vmul.f32 %v3082_v37, %v4104_v50 }
 0x3a3   : > { %3087 = vrcp.f32 %v1464_v26  ;;  %2803 = vmatmul.msk.f32.gmra.mxu2 %vm845_vm10, %v1546_v30 }
 0x3a4   : > { %v4220_v6 = vpop.eup %3083  ;;  %3089 = vrcp.f32 %v1443_v55  ;;  %2796 = vmatmul.msk.f32.gmra.mxu1 %vm845_vm10, %v1539_v18 }
 0x3a5   : > { %v1429_v36 = vsel %vm845_vm10, %v4220_v6, 0.0 }
 0x3a6   : > { %1430 = vadd.xlane.f32.xlu2 %v1429_v36 }
 0x3a8   : > { %v3086_v25 = vpop.eup %3085 }
 0x3a9   : > { %v3088_v34 = vpop.eup %3087  ;;  %v1523_v49 = vmul.f32 %v3086_v25, %v4113_v28 }
 0x3aa   : > { %v3090_v35 = vpop.eup %3089  ;;  %v1485_v51 = vpop.xlane.xlu2 %1484  ;;  %v1540_v50 = vmul.f32 %v3088_v34, %v4118_v3 }
 0x3ab   : > { %v1446_v38 = vpop.xlane.xlu0 %1445  ;;  %3091 = vrcp.f32 %v1485_v51  ;;  %2780 = vmatmul.msk.f32.vlgmr.msra.gmra.mxu3 %vm845_vm10, %v1523_v49  ;;  %v1533_v42 = vmul.f32 %v3090_v35, %v4115_v1 }
 0x3ac   : > { %3093 = vrcp.f32 %v1446_v38  ;;  %2797 = vmatmul.msk.f32.gmra.mxu1 %vm845_vm10, %v1540_v50 }
 0x3ad   : > { %2790 = vmatmul.msk.f32.gmra.mxu0 %vm845_vm10, %v1533_v42 }
 0x3b1   : > { %v3092_v45 = vpop.eup %3091 }
 0x3b2   : > { %v3094_v41 = vpop.eup %3093  ;;  %v1488_v17 = vpop.xlane.xlu2 %1487  ;;  %v1547_v28 = vmul.f32 %v3092_v45, %v4129_v12 }
 0x3b3   : > { %v1416_v27 = vpop.xlane.xlu0 %1415  ;;  %3095 = vrcp.f32 %v1488_v17  ;;  %v1534_v46 = vmul.f32 %v3094_v41, %v4131_v5 }
 0x3b4   : > { %3097 = vrcp.f32 %v1416_v27  ;;  %2804 = vmatmul.msk.f32.gmra.mxu2 %vm845_vm10, %v1547_v28  ;;  %v1987_v27 = vld [vmem:[%s1979_s15 + $0x38] sm:$0xff]  ;;  %v1986_v28 = vld [vmem:[%s1979_s15 + $0x30] sm:$0xff] }
 0x3b5   : > { %2791 = vmatmul.msk.f32.gmra.mxu0 %vm845_vm10, %v1534_v46  ;;  %2017 = vmatpush.msrb.mxu3 %v1987_v27 }
 0x3b7   : > { %2018 = vmatpush.msrb.mxu3 %v1986_v28 }
 0x3b9   : > { %v3096_v1 = vpop.eup %3095  ;;  %v1491_v3 = vpop.xlane.xlu1 %1490 }
 0x3ba   : > { %v3098_v47 = vpop.eup %3097  ;;  %3099 = vrcp.f32 %v1491_v3  ;;  %v1467_v2 = vpop.xlane.xlu2 %1466  ;;  %v1548_v32 = vmul.f32 %v3096_v1, %v4141_v53 }
 0x3bb   : > { %3101 = vrcp.f32 %v1467_v2  ;;  %v1524_v52 = vmul.f32 %v3098_v47, %v4139_v13 }
 0x3bc   : > { %2805 = vmatmul.msk.f32.gmra.mxu2 %vm845_vm10, %v1548_v32  ;;  %v1985_v32 = vld [vmem:[%s1979_s15 + $0x28] sm:$0xff] }
 0x3bd   : > { %2781 = vmatmul.msk.f32.gmra.mxu3 %vm845_vm10, %v1524_v52  ;;  %v1984_v52 = vld [vmem:[%s1979_s15 + $0x20] sm:$0xff] }
 0x3be   : > { %2019 = vmatpush.msrb.mxu3 %v1985_v32  ;;  %v3156_v32 = vld [vmem:[#allocation13 + $0x28] sm:$0xff] }
 0x3c0   : > { %v3100_v12 = vpop.eup %3099  ;;  %2020 = vmatpush.msrb.mxu3 %v1984_v52 }
 0x3c1   : > { %v3102_v5 = vpop.eup %3101  ;;  %v1470_v39 = vpop.xlane.xlu1 %1469  ;;  %v1549_v59 = vmul.f32 %v3100_v12, %v4151_v60  ;;  %v1983_v12 = vld [vmem:[%s1979_s15 + $0x18] sm:$0xff] }
 0x3c2   : > { %3103 = vrcp.f32 %v1470_v39  ;;  %v1449_v9 = vpop.xlane.xlu2 %1448  ;;  %v1541_v62 = vmul.f32 %v3102_v5, %v4149_v54  ;;  %v1982_v39 = vld [vmem:[%s1979_s15 + $0x10] sm:$0xff]  ;;  %2021 = vmatpush.msrb.mxu3 %v1983_v12 }
 0x3c3   : > { %3105 = vrcp.f32 %v1449_v9  ;;  %v1981_v9 = vld [vmem:[%s1979_s15 + $0x8] sm:$0xff] }
 0x3c4   : > { %2798 = vmatmul.msk.f32.gmra.mxu1 %vm845_vm10, %v1541_v62  ;;  %2806 = vmatmul.msk.f32.gmra.mxu2 %vm845_vm10, %v1549_v59  ;;  %v1980_v62 = vld [vmem:[%s1979_s15] sm:$0xff] }
 0x3c5   : > { %2022 = vmatpush.msrb.mxu3 %v1982_v39 }
 0x3c7   : > { %2023 = vmatpush.msrb.mxu3 %v1981_v9 }
 0x3c8   : > { %v3104_v53 = vpop.eup %3103 }
 0x3c9   : > { %v3106_v13 = vpop.eup %3105  ;;  %v1452_v48 = vpop.xlane.xlu1 %1451  ;;  %v1542_v43 = vmul.f32 %v3104_v53, %v4160_v0  ;;  %2024 = vmatpush.msrb.mxu3 %v1980_v62 }
 0x3ca   : > { %v1419_v63 = vpop.xlane.xlu2 %1418  ;;  %3107 = vrcp.f32 %v1452_v48  ;;  %v1494_v11 = vpop.xlane.xlu0 %1493  ;;  %v1535_v7 = vmul.f32 %v3106_v13, %v4162_v57 }
 0x3cb   : > { %3109 = vrcp.f32 %v1419_v63 }
 0x3cc   : > { %3111 = vrcp.f32 %v1494_v11  ;;  %2792 = vmatmul.msk.f32.gmra.mxu0 %vm845_vm10, %v1535_v7  ;;  %2799 = vmatmul.msk.f32.gmra.mxu1 %vm845_vm10, %v1542_v43 }
 0x3d0   : > { %v3108_v54 = vpop.eup %3107 }
 0x3d1   : > { %v3110_v60 = vpop.eup %3109  ;;  %v1536_v21 = vmul.f32 %v3108_v54, %v4173_v20  ;;  %v1425_v57 = vpop.xlane.xlu1 %1424 }
 0x3d2   : > { %v3112_v10 = vpop.eup %3111  ;;  %v1422_v44 = vpop.xlane.xlu2 %1421  ;;  %v1525_v0 = vmul.f32 %v3110_v60, %v4175_v56 }
 0x3d3   : > { %v1473_v29 = vpop.xlane.xlu0 %1472  ;;  %3113 = vrcp.f32 %v1422_v44  ;;  %v1550_v4 = vmul.f32 %v3112_v10, %v4177_v22 }
 0x3d4   : > { %3115 = vrcp.f32 %v1473_v29  ;;  %2782 = vmatmul.msk.f32.gmra.mxu3 %vm845_vm10, %v1525_v0  ;;  %2793 = vmatmul.msk.f32.gmra.mxu0 %vm845_vm10, %v1536_v21 }
 0x3d5   : > { %2807 = vmatmul.msk.f32.gmra.mxu2 %vm845_vm10, %v1550_v4  ;;  %3117 = vrcp.f32 %v1425_v57 }
 0x3d9   : > { %v3114_v61 = vpop.eup %3113 }
 0x3da   : > { %v3116_v40 = vpop.eup %3115  ;;  %v1526_v20 = vmul.f32 %v3114_v61, %v4185_v24 }
 0x3db   : > { %v1543_v19 = vmul.f32 %v3116_v40, %v4189_v31  ;;  %v3118_v56 = vpop.eup %3117 }
 0x3dc   : > { %2783 = vmatmul.msk.f32.gmra.mxu3 %vm845_vm10, %v1526_v20  ;;  %v1527_v22 = vmul.f32 %v3118_v56, %v4187_v8 }
 0x3dd   : > { %2800 = vmatmul.msk.f32.gmra.mxu1 %vm845_vm10, %v1543_v19 }
 0x3e4   : > { %2784 = vmatmul.msk.f32.gmra.mxu3 %vm845_vm10, %v1527_v22 }
 0x3f6   : > { %v1683_v15 = vpop.f32.mrf.mxu0 }
 0x3f7   : > { %1711 = vrot.lane.b32.xlu1 %v1683_v15, %s3386_s22 }
 0x3fe   : > { %v1686_v37 = vpop.f32.mrf.mxu0 }
 0x40d   : > { %v1915_v16 = vpop.f32.mrf.mxu2 }
 0x40e   : > { %1943 = vrot.lane.b32.xlu2 %v1915_v16, %s3387_s28 }
 0x410   : > { %v1799_v24 = vpop.f32.mrf.mxu1 }
 0x411   : > { %v1428_v23 = vpop.xlane.xlu0 %1427  ;;  %1827 = vrot.lane.b32.xlu0 %v1799_v24, %s3388_s14 }
 0x412   : > { %3119 = vrcp.f32 %v1428_v23 }
 0x415   : > { %v1918_v31 = vpop.f32.mrf.mxu2 }
 0x416   : > { %1945 = vrot.lane.b32.xlu2 %v1918_v31, %s3387_s28 }
 0x417   : > { %v1689_v18 = vpop.f32.mrf.mxu0 }
 0x418   : > { %v3120_v8 = vpop.eup %3119  ;;  %v1802_v33 = vpop.f32.mrf.mxu1 }
 0x419   : > { %v1431_v55 = vpop.xlane.xlu2 %1430  ;;  %1713 = vrot.lane.b32.xlu0 %v1686_v37, %s3386_s22  ;;  %1829 = vrot.lane.b32.xlu1 %v1802_v33, %s3388_s14  ;;  %v1528_v30 = vmul.f32 %v3120_v8, %v4213_v14 }
 0x41a   : > { %3121 = vrcp.f32 %v1431_v55  ;;  %v3151_v55 = vld [vmem:[#allocation13] sm:$0xff] }
 0x41b   : > { %2785 = vmatmul.msk.f32.gmra.mxu3 %vm845_vm10, %v1528_v30 }
 0x420   : > { %v3122_v26 = vpop.eup %3121 }
 0x421   : > { %v1805_v36 = vpop.f32.mrf.mxu1  ;;  %1715 = vrot.lane.b32.xlu0 %v1689_v18, %s3386_s22  ;;  %v1529_v25 = vmul.f32 %v3122_v26, %v4220_v6 }
 0x422   : > { %1831 = vrot.lane.b32.xlu1 %v1805_v36, %s3388_s14 }
 0x423   : > { %2786 = vmatmul.msk.f32.gmra.mxu3 %vm845_vm10, %v1529_v25  ;;  %v3152_v25 = vld [vmem:[#allocation13 + $0x8] sm:$0xff] }
 0x426   : > { %v1921_v34 = vpop.f32.mrf.mxu2 }
 0x427   : > { %1947 = vrot.lane.b32.xlu2 %v1921_v34, %s3387_s28 }
 0x429   : > { %v1808_v49 = vpop.f32.mrf.mxu1 }
 0x42a   : > { %v1692_v35 = vpop.f32.mrf.mxu0  ;;  %1833 = vrot.lane.b32.xlu1 %v1808_v49, %s3388_s14 }
 0x42b   : > { %1717 = vrot.lane.b32.xlu0 %v1692_v35, %s3386_s22 }
 0x42e   : > { %v1589_v14 = vpop.f32.mrf.mxu3 }
 0x42f   : > { %1610 = vst.msk [vmem:[#allocation3] sm:$0xff] %vm764_vm9, %v1589_v14 }
 0x432   : > { %v1695_v51 = vpop.f32.mrf.mxu0 }
 0x433   : > { %1719 = vrot.lane.b32.xlu0 %v1695_v51, %s3386_s22  ;;  %v3153_v51 = vld [vmem:[#allocation13 + $0x10] sm:$0xff] }
 0x437   : > { %v1924_v6 = vpop.f32.mrf.mxu2 }
 0x438   : > { %1949 = vrot.lane.b32.xlu2 %v1924_v6, %s3387_s28 }
 0x43f   : > { %v1927_v38 = vpop.f32.mrf.mxu2 }
 0x440   : > { %v1592_v50 = vpop.f32.mrf.mxu3  ;;  %1951 = vrot.lane.b32.xlu2 %v1927_v38, %s3387_s28 }
 0x441   : > { %1611 = vst.msk [vmem:[#allocation3 + $0x8] sm:$0xff] %vm764_vm9, %v1592_v50  ;;  %v1811_v42 = vpop.f32.mrf.mxu1 }
 0x442   : > { %1835 = vrot.lane.b32.xlu1 %v1811_v42, %s3388_s14 }
 0x447   : > { %v1930_v45 = vpop.f32.mrf.mxu2 }
 0x448   : > { %1953 = vrot.lane.b32.xlu2 %v1930_v45, %s3387_s28  ;;  %v3154_v45 = vld [vmem:[#allocation13 + $0x18] sm:$0xff] }
 0x449   : > { %v1698_v41 = vpop.f32.mrf.mxu0  ;;  %v1814_v17 = vpop.f32.mrf.mxu1 }
 0x44a   : > { %1721 = vrot.lane.b32.xlu0 %v1698_v41, %s3386_s22  ;;  %1837 = vrot.lane.b32.xlu1 %v1814_v17, %s3388_s14 }
 0x451   : > { %v1701_v46 = vpop.f32.mrf.mxu0 }
 0x452   : > { %1723 = vrot.lane.b32.xlu0 %v1701_v46, %s3386_s22  ;;  %v3155_v46 = vld [vmem:[#allocation13 + $0x20] sm:$0xff] }
 0x457   : > { %v1595_v1 = vpop.f32.mrf.mxu3 }
 0x458   : > { %1612 = vst.msk [vmem:[#allocation3 + $0x10] sm:$0xff] %vm764_vm9, %v1595_v1  ;;  %v1933_v3 = vpop.f32.mrf.mxu2 }
 0x459   : > { %1955 = vrot.lane.b32.xlu2 %v1933_v3, %s3387_s28 }
 0x45a   : > { %v1817_v47 = vpop.f32.mrf.mxu1 }
 0x45b   : > { %1839 = vrot.lane.b32.xlu1 %v1817_v47, %s3388_s14 }
 0x45f   : > { %v1598_v2 = vpop.f32.mrf.mxu3 }
 0x460   : > { %1613 = vst.msk [vmem:[#allocation3 + $0x18] sm:$0xff] %vm764_vm9, %v1598_v2 }
 0x467   : > { %v1601_v5 = vpop.f32.mrf.mxu3 }
 0x468   : > { %1614 = vst.msk [vmem:[#allocation3 + $0x20] sm:$0xff] %vm764_vm9, %v1601_v5  ;;  %v1944_v53 = vpop.permute.xlu2 %1943 }
 0x469   : > { %v1712_v59 = vpop.permute.xlu1 %1711 }
 0x46a   : > { %1733 = vst.msk [vmem:[#allocation3] sm:$0xff] %vm1732_vm11, %v1712_v59  ;;  %v3157_v59 = vld [vmem:[#allocation13 + $0x30] sm:$0xff] }
 0x470   : > { %v1946_v11 = vpop.permute.xlu2 %1945 }
 0x481   : > { %v1948_v60 = vpop.permute.xlu2 %1947 }
 0x483   : > { %v1828_v13 = vpop.permute.xlu0 %1827 }
 0x484   : > { %1849 = vst.msk [vmem:[#allocation3] sm:$0xff] %vm1848_vm12, %v1828_v13  ;;  %v2202_v13 = vld [vmem:[%s4365_s29 + $0x70] sm:$0xff] }
 0x485   : > { %1965 = vst.msk [vmem:[#allocation3] sm:$0xff] %vm1964_vm13, %v1944_v53  ;;  %2233 = vmatpush.msrb.mxu0 %v2202_v13 }
 0x48b   : > { %v1714_v48 = vpop.permute.xlu0 %1713  ;;  %v1830_v43 = vpop.permute.xlu1 %1829 }
 0x48c   : > { %1734 = vst.msk [vmem:[#allocation3 + $0x8] sm:$0xff] %vm1732_vm11, %v1714_v48  ;;  %v1972_v63 = vld [vmem:[#allocation3] sm:$0xff]  ;;  %v2203_v48 = vld [vmem:[%s4365_s29 + $0x78] sm:$0xff] }
 0x48d   : > { %1850 = vst.msk [vmem:[#allocation3 + $0x8] sm:$0xff] %vm1848_vm12, %v1830_v43  ;;  %2808 = vmatmul.msk.f32.vlgmr.msrb.gmra.mxu3 %vm471_vm1, %v1972_v63  ;;  %2271 = vmatpush.msrb.mxu1 %v2203_v48  ;;  %v2200_v43 = vld [vmem:[%s4365_s29 + $0x60] sm:$0xff]  ;;  %v2201_v63 = vld [vmem:[%s4365_s29 + $0x68] sm:$0xff] }
 0x48e   : > { %1966 = vst.msk [vmem:[#allocation3 + $0x8] sm:$0xff] %vm1964_vm13, %v1946_v11  ;;  %2847 = vmatpush.msra.mxu3 %v2203_v48  ;;  %2234 = vmatpush.msrb.mxu0 %v2200_v43  ;;  %v2198_v11 = vld [vmem:[%s4365_s29 + $0x50] sm:$0xff] }
 0x48f   : > { %2272 = vmatpush.msrb.mxu1 %v2201_v63 }
 0x490   : > { %2848 = vmatpush.msra.mxu3 %v2201_v63  ;;  %2235 = vmatpush.msrb.mxu0 %v2198_v11 }
 0x492   : > { %v1950_v4 = vpop.permute.xlu2 %1949 }
 0x493   : > { %v1716_v7 = vpop.permute.xlu0 %1715 }
 0x494   : > { %1735 = vst.msk [vmem:[#allocation3 + $0x10] sm:$0xff] %vm1732_vm11, %v1716_v7  ;;  %v1832_v54 = vpop.permute.xlu1 %1831  ;;  %v2199_v7 = vld [vmem:[%s4365_s29 + $0x58] sm:$0xff] }
 0x495   : > { %1851 = vst.msk [vmem:[#allocation3 + $0x10] sm:$0xff] %vm1848_vm12, %v1832_v54  ;;  %v1973_v21 = vld [vmem:[#allocation3 + $0x8] sm:$0xff]  ;;  %2273 = vmatpush.msrb.mxu1 %v2199_v7  ;;  %v2196_v54 = vld [vmem:[%s4365_s29 + $0x40] sm:$0xff]  ;;  %2849 = vmatpush.msra.mxu3 %v2199_v7 }
 0x496   : > { %1967 = vst.msk [vmem:[#allocation3 + $0x10] sm:$0xff] %vm1964_vm13, %v1948_v60  ;;  %2809 = vmatmul.msk.f32.gmra.mxu3 %vm471_vm1, %v1973_v21  ;;  %v2197_v60 = vld [vmem:[%s4365_s29 + $0x48] sm:$0xff]  ;;  %2236 = vmatpush.msrb.mxu0 %v2196_v54  ;;  %v2194_v21 = vld [vmem:[%s4365_s29 + $0x30] sm:$0xff] }
 0x497   : > { %2274 = vmatpush.msrb.mxu1 %v2197_v60  ;;  %2850 = vmatpush.msra.mxu3 %v2197_v60 }
 0x498   : > { %2237 = vmatpush.msrb.mxu0 %v2194_v21 }
 0x49a   : > { %v1952_v20 = vpop.permute.xlu2 %1951 }
 0x49c   : > { %v1834_v10 = vpop.permute.xlu1 %1833 }
 0x49d   : > { %v1718_v44 = vpop.permute.xlu0 %1717  ;;  %v1974_v29 = vld [vmem:[#allocation3 + $0x10] sm:$0xff] }
 0x49e   : > { %1736 = vst.msk [vmem:[#allocation3 + $0x18] sm:$0xff] %vm1732_vm11, %v1718_v44  ;;  %v1604_v0 = vpop.f32.mrf.mxu3  ;;  %2810 = vmatmul.msk.f32.gmra.mxu3 %vm471_vm1, %v1974_v29  ;;  %v2192_v44 = vld [vmem:[%s4365_s29 + $0x20] sm:$0xff]  ;;  %v2193_v29 = vld [vmem:[%s4365_s29 + $0x28] sm:$0xff] }
 0x49f   : > { %1852 = vst.msk [vmem:[#allocation3 + $0x18] sm:$0xff] %vm1848_vm12, %v1834_v10  ;;  %v2195_v10 = vld [vmem:[%s4365_s29 + $0x38] sm:$0xff]  ;;  %2238 = vmatpush.msrb.mxu0 %v2192_v44 }
 0x4a0   : > { %1968 = vst.msk [vmem:[#allocation3 + $0x18] sm:$0xff] %vm1964_vm13, %v1950_v4  ;;  %2275 = vmatpush.msrb.mxu1 %v2195_v10  ;;  %2851 = vmatpush.msra.mxu3 %v2195_v10  ;;  %v2191_v4 = vld [vmem:[%s4365_s29 + $0x18] sm:$0xff] }
 0x4a1   : > { %1615 = vst.msk [vmem:[#allocation3 + $0x28] sm:$0xff] %vm764_vm9, %v1604_v0  ;;  %v2190_v0 = vld [vmem:[%s4365_s29 + $0x10] sm:$0xff] }
 0x4a2   : > { %v1954_v16 = vpop.permute.xlu2 %1953  ;;  %2276 = vmatpush.msrb.mxu1 %v2193_v29  ;;  %2852 = vmatpush.msra.mxu3 %v2193_v29 }
 0x4a3   : > { %2239 = vmatpush.msrb.mxu0 %v2190_v0 }
 0x4a4   : > { %2277 = vmatpush.msrb.mxu1 %v2191_v4  ;;  %2853 = vmatpush.msra.mxu3 %v2191_v4 }
 0x4a5   : > { %v1720_v57 = vpop.permute.xlu0 %1719 }
 0x4a6   : > { %1737 = vst.msk [vmem:[#allocation3 + $0x20] sm:$0xff] %vm1732_vm11, %v1720_v57  ;;  %v1607_v61 = vpop.f32.mrf.mxu3  ;;  %v2188_v57 = vld [vmem:[%s4365_s29] sm:$0xff] }
 0x4a7   : > { %1616 = vst.msk [vmem:[#allocation3 + $0x30] sm:$0xff] %vm764_vm9, %v1607_v61  ;;  %v1975_v40 = vld [vmem:[#allocation3 + $0x18] sm:$0xff]  ;;  %v2189_v61 = vld [vmem:[%s4365_s29 + $0x8] sm:$0xff]  ;;  %2240 = vmatpush.msrb.mxu0 %v2188_v57 }
 0x4a8   : > { %2811 = vmatmul.msk.f32.gmra.mxu3 %vm471_vm1, %v1975_v40  ;;  %2278 = vmatpush.msrb.mxu1 %v2189_v61 }
 0x4a9   : > { %2854 = vmatpush.msra.mxu3 %v2189_v61 }
 0x4b3   : > { %v1956_v8 = vpop.permute.xlu2 %1955 }
 0x4b4   : > { %v1836_v19 = vpop.permute.xlu1 %1835 }
 0x4b5   : > { %1853 = vst.msk [vmem:[#allocation3 + $0x20] sm:$0xff] %vm1848_vm12, %v1836_v19 }
 0x4b6   : > { %1969 = vst.msk [vmem:[#allocation3 + $0x20] sm:$0xff] %vm1964_vm13, %v1952_v20 }
 0x4bc   : > { %v1722_v56 = vpop.permute.xlu0 %1721  ;;  %v1838_v22 = vpop.permute.xlu1 %1837 }
 0x4bd   : > { %1738 = vst.msk [vmem:[#allocation3 + $0x28] sm:$0xff] %vm1732_vm11, %v1722_v56  ;;  %v1976_v15 = vld [vmem:[#allocation3 + $0x20] sm:$0xff] }
 0x4be   : > { %1854 = vst.msk [vmem:[#allocation3 + $0x28] sm:$0xff] %vm1848_vm12, %v1838_v22  ;;  %2812 = vmatmul.msk.f32.gmra.mxu3 %vm471_vm1, %v1976_v15 }
 0x4bf   : > { %1970 = vst.msk [vmem:[#allocation3 + $0x28] sm:$0xff] %vm1964_vm13, %v1954_v16 }
 0x4c4   : > { %v1724_v24 = vpop.permute.xlu0 %1723 }
 0x4c5   : > { %1739 = vst.msk [vmem:[#allocation3 + $0x30] sm:$0xff] %vm1732_vm11, %v1724_v24 }
 0x4c6   : > { %v1977_v23 = vld [vmem:[#allocation3 + $0x28] sm:$0xff] }
 0x4c7   : > { %2813 = vmatmul.msk.f32.gmra.mxu3 %vm471_vm1, %v1977_v23 }
 0x4cd   : > { %v1840_v31 = vpop.permute.xlu1 %1839 }
 0x4ce   : > { %1855 = vst.msk [vmem:[#allocation3 + $0x30] sm:$0xff] %vm1848_vm12, %v1840_v31 }
 0x4cf   : > { %1971 = vst.msk [vmem:[#allocation3 + $0x30] sm:$0xff] %vm1964_vm13, %v1956_v8 }
 0x4d6   : > { %v1978_v37 = vld [vmem:[#allocation3 + $0x30] sm:$0xff] }
 0x4d7   : > { %2814 = vmatmul.msk.f32.gmra.mxu3 %vm471_vm1, %v1978_v37 }
 0x510   : > { %v2026_v33 = vpop.f32.mrf.mxu3 }
 0x511   : > { %v4324_v30 = vadd.f32 %v3151_v55, %v2026_v33 }
 0x513   : > { %v2056_v26 = vmul.f32 %v4324_v30, %v4324_v30 }
 0x515   : > { %v2063_v18 = vsel %vm471_vm1, %v2056_v26, 0.0 }
 0x516   : > { %2064 = vadd.xlane.f32.xlu0 %v2063_v18 }
 0x519   : > { %v2029_v36 = vpop.f32.mrf.mxu3 }
 0x51a   : > { %v4329_v34 = vadd.f32 %v3152_v25, %v2029_v36  ;;  %v4391_v36 = vld [vmem:[%s2054_s19] ss:$0 sm:$0xff] }
 0x51c   : > { %v2057_v49 = vmul.f32 %v4329_v34, %v4329_v34 }
 0x51e   : > { %v2066_v35 = vsel %vm471_vm1, %v2057_v49, 0.0 }
 0x51f   : > { %2067 = vadd.xlane.f32.xlu1 %v2066_v35 }
 0x521   : > { %v2032_v14 = vpop.f32.mrf.mxu3 }
 0x522   : > { %v4334_v6 = vadd.f32 %v3153_v51, %v2032_v14 }
 0x524   : > { %v2058_v38 = vmul.f32 %v4334_v6, %v4334_v6 }
 0x526   : > { %v2069_v50 = vsel %vm471_vm1, %v2058_v38, 0.0 }
 0x527   : > { %2070 = vadd.xlane.f32.xlu2 %v2069_v50 }
 0x52b   : > { %v2035_v42 = vpop.f32.mrf.mxu3 }
 0x52c   : > { %v4339_v41 = vadd.f32 %v3154_v45, %v2035_v42 }
 0x52e   : > { %v2059_v17 = vmul.f32 %v4339_v41, %v4339_v41 }
 0x530   : > { %v2072_v27 = vsel %vm471_vm1, %v2059_v17, 0.0 }
 0x531   : > { %2073 = vadd.xlane.f32.xlu0 %v2072_v27 }
 0x541   : > { %v2038_v28 = vpop.f32.mrf.mxu3 }
 0x542   : > { %v4344_v1 = vadd.f32 %v3155_v46, %v2038_v28 }
 0x544   : > { %v2060_v3 = vmul.f32 %v4344_v1, %v4344_v1 }
 0x546   : > { %v2075_v47 = vsel %vm471_vm1, %v2060_v3, 0.0 }
 0x547   : > { %2076 = vadd.xlane.f32.xlu1 %v2075_v47 }
 0x54a   : > { %v2041_v2 = vpop.f32.mrf.mxu3 }
 0x54b   : > { %v4349_v52 = vadd.f32 %v3156_v32, %v2041_v2 }
 0x54d   : > { %v2061_v12 = vmul.f32 %v4349_v52, %v4349_v52 }
 0x54f   : > { %v2078_v5 = vsel %vm471_vm1, %v2061_v12, 0.0 }
 0x550   : > { %2079 = vadd.xlane.f32.xlu2 %v2078_v5 }
 0x55a   : > { %v2044_v39 = vpop.f32.mrf.mxu3 }
 0x55b   : > { %v4354_v9 = vadd.f32 %v3157_v59, %v2044_v39 }
 0x55d   : > { %v2062_v62 = vmul.f32 %v4354_v9, %v4354_v9 }
 0x55f   : > { %v2081_v53 = vsel %vm471_vm1, %v2062_v62, 0.0 }
 0x560   : > { %2082 = vadd.xlane.f32.xlu0 %v2081_v53 }
 0x589   : > { %v2065_v40 = vpop.xlane.xlu0 %2064 }
 0x58a   : > { %v2084_v20 = vmul.f32 %v2065_v40, %v3599_v58 }
 0x58c   : > { %v2091_v19 = vadd.f32 1e-06, %v2084_v20 }
 0x58e   : > { %3123 = vrsqrt.f32 %v2091_v19  ;;  %vm2104_vm15 = vweird.f32 %v2091_v19 }
 0x592   : > { %v2068_v56 = vpop.xlane.xlu1 %2067 }
 0x593   : > { %v2085_v22 = vmul.f32 %v2068_v56, %v3599_v58 }
 0x594   : > { %v3124_v15 = vpop.eup %3123 }
 0x595   : > { %v2099_v16 = vmul.f32 %v3124_v15, %v2091_v19  ;;  %v2092_v24 = vadd.f32 1e-06, %v2085_v22  ;;  %vm2105_vm14 = vweird.f32 %v3124_v15 }
 0x596   : > { %vm2106_vm0 = vmor %vm2104_vm15, %vm2105_vm14 }
 0x597   : > { %v2100_v23 = vmul.f32 %v3124_v15, %v2099_v16  ;;  %3125 = vrsqrt.f32 %v2092_v24  ;;  %vm2114_vm3 = vweird.f32 %v2092_v24  ;;  %v2388_v16 = vld [vmem:[%s4417_s25 + $0x78] sm:$0xff] }
 0x598   : > { %2389 = vmatpush.msra.mxu0 %v2388_v16  ;;  %2855 = vmatpush.msrb.mxu2 %v2388_v16 }
 0x599   : > { %v2101_v31 = vmul.f32 0.5, %v2100_v23 }
 0x59a   : > { %v2071_v8 = vpop.xlane.xlu2 %2070 }
 0x59b   : > { %v2102_v37 = vsub.f32 1.5, %v2101_v31  ;;  %v2086_v33 = vmul.f32 %v2071_v8, %v3599_v58  ;;  %v2386_v8 = vld [vmem:[%s4417_s25 + $0x68] sm:$0xff] }
 0x59d   : > { %v3126_v55 = vpop.eup %3125  ;;  %v2103_v26 = vmul.f32 %v3124_v15, %v2102_v37  ;;  %v2093_v18 = vadd.f32 1e-06, %v2086_v33 }
 0x59e   : > { %v2109_v25 = vmul.f32 %v3126_v55, %v2092_v24  ;;  %vm2115_vm2 = vweird.f32 %v3126_v55  ;;  %v2387_v24 = vld [vmem:[%s4417_s25 + $0x70] sm:$0xff] }
 0x59f   : > { %v2107_v49 = vsel %vm2106_vm0, %v3124_v15, %v2103_v26  ;;  %3127 = vrsqrt.f32 %v2093_v18  ;;  %vm2116_vm4 = vmor %vm2114_vm3, %vm2115_vm2  ;;  %vm2124_vm6 = vweird.f32 %v2093_v18  ;;  %2390 = vmatpush.msra.mxu0 %v2387_v24  ;;  %2856 = vmatpush.msrb.mxu2 %v2387_v24 }
 0x5a0   : > { %v2168_v35 = vmul.f32 %v2107_v49, %v4324_v30  ;;  %v2110_v14 = vmul.f32 %v3126_v55, %v2109_v25  ;;  %v2385_v25 = vld [vmem:[%s4417_s25 + $0x60] sm:$0xff] }
 0x5a1   : > { %2391 = vmatpush.msra.mxu0 %v2386_v8  ;;  %2857 = vmatpush.msrb.mxu2 %v2386_v8 }
 0x5a2   : > { %v2178_v51 = vmul.f32 %v4391_v36, %v2168_v35  ;;  %v2111_v38 = vmul.f32 0.5, %v2110_v14 }
 0x5a3   : > { %2392 = vmatpush.msra.mxu0 %v2385_v25  ;;  %2858 = vmatpush.msrb.mxu2 %v2385_v25 }
 0x5a4   : > { %v2112_v50 = vsub.f32 1.5, %v2111_v38  ;;  %v2074_v42 = vpop.xlane.xlu0 %2073  ;;  %2817 = vmatmul.msk.f32.vlgmr.msrb.gmra.mxu0 %vm471_vm1, %v2178_v51  ;;  %2824 = vmatmul.msk.f32.vlgmr.msrb.gmra.mxu1 %vm471_vm1, %v2178_v51 }
 0x5a5   : > { %v3128_v45 = vpop.eup %3127  ;;  %v2087_v17 = vmul.f32 %v2074_v42, %v3599_v58 }
 0x5a6   : > { %v2113_v27 = vmul.f32 %v3126_v55, %v2112_v50  ;;  %v2119_v28 = vmul.f32 %v3128_v45, %v2093_v18  ;;  %vm2125_vm5 = vweird.f32 %v3128_v45 }
 0x5a7   : > { %v2094_v46 = vadd.f32 1e-06, %v2087_v17  ;;  %vm2126_vm7 = vmor %vm2124_vm6, %vm2125_vm5 }
 0x5a8   : > { %v2120_v3 = vmul.f32 %v3128_v45, %v2119_v28  ;;  %v2117_v47 = vsel %vm2116_vm4, %v3126_v55, %v2113_v27 }
 0x5a9   : > { %3129 = vrsqrt.f32 %v2094_v46  ;;  %v2169_v2 = vmul.f32 %v2117_v47, %v4329_v34  ;;  %vm2134_vm9 = vweird.f32 %v2094_v46 }
 0x5aa   : > { %v2121_v32 = vmul.f32 0.5, %v2120_v3 }
 0x5ab   : > { %v2179_v12 = vmul.f32 %v4391_v36, %v2169_v2 }
 0x5ac   : > { %v2122_v5 = vsub.f32 1.5, %v2121_v32 }
 0x5ad   : > { %2818 = vmatmul.msk.f32.gmra.mxu0 %vm471_vm1, %v2179_v12  ;;  %2825 = vmatmul.msk.f32.gmra.mxu1 %vm471_vm1, %v2179_v12  ;;  %v2384_v12 = vld [vmem:[%s4417_s25 + $0x58] sm:$0xff] }
 0x5ae   : > { %v2123_v39 = vmul.f32 %v3128_v45, %v2122_v5  ;;  %2393 = vmatpush.msra.mxu0 %v2384_v12  ;;  %2859 = vmatpush.msrb.mxu2 %v2384_v12  ;;  %v2383_v5 = vld [vmem:[%s4417_s25 + $0x50] sm:$0xff] }
 0x5af   : > { %v3130_v59 = vpop.eup %3129 }
 0x5b0   : > { %v2129_v62 = vmul.f32 %v3130_v59, %v2094_v46  ;;  %v2127_v53 = vsel %vm2126_vm7, %v3128_v45, %v2123_v39  ;;  %vm2135_vm8 = vweird.f32 %v3130_v59  ;;  %2394 = vmatpush.msra.mxu0 %v2383_v5  ;;  %2860 = vmatpush.msrb.mxu2 %v2383_v5  ;;  %v2382_v39 = vld [vmem:[%s4417_s25 + $0x48] sm:$0xff] }
 0x5b1   : > { %v2170_v13 = vmul.f32 %v2127_v53, %v4334_v6  ;;  %vm2136_vm10 = vmor %vm2134_vm9, %vm2135_vm8  ;;  %v2378_v53 = vld [vmem:[%s4417_s25 + $0x28] sm:$0xff] }
 0x5b2   : > { %v2130_v48 = vmul.f32 %v3130_v59, %v2129_v62  ;;  %2395 = vmatpush.msra.mxu0 %v2382_v39  ;;  %2861 = vmatpush.msrb.mxu2 %v2382_v39  ;;  %v2379_v62 = vld [vmem:[%s4417_s25 + $0x30] sm:$0xff] }
 0x5b3   : > { %v2180_v43 = vmul.f32 %v4391_v36, %v2170_v13  ;;  %v2377_v13 = vld [vmem:[%s4417_s25 + $0x20] sm:$0xff] }
 0x5b4   : > { %v2131_v63 = vmul.f32 0.5, %v2130_v48  ;;  %v2376_v48 = vld [vmem:[%s4417_s25 + $0x18] sm:$0xff] }
 0x5b5   : > { %2819 = vmatmul.msk.f32.gmra.mxu0 %vm471_vm1, %v2180_v43  ;;  %2826 = vmatmul.msk.f32.gmra.mxu1 %vm471_vm1, %v2180_v43  ;;  %v2375_v43 = vld [vmem:[%s4417_s25 + $0x10] sm:$0xff] }
 0x5b6   : > { %v2132_v11 = vsub.f32 1.5, %v2131_v63  ;;  %v2374_v63 = vld [vmem:[%s4417_s25 + $0x8] sm:$0xff] }
 0x5b8   : > { %v2133_v7 = vmul.f32 %v3130_v59, %v2132_v11  ;;  %v2373_v11 = vld [vmem:[%s4417_s25] sm:$0xff] }
 0x5ba   : > { %v2077_v54 = vpop.xlane.xlu1 %2076  ;;  %v2137_v60 = vsel %vm2136_vm10, %v3130_v59, %v2133_v7  ;;  %v2381_v59 = vld [vmem:[%s4417_s25 + $0x40] sm:$0xff] }
 0x5bb   : > { %v2088_v21 = vmul.f32 %v2077_v54, %v3599_v58  ;;  %v2171_v10 = vmul.f32 %v2137_v60, %v4339_v41  ;;  %2396 = vmatpush.msra.mxu0 %v2381_v59  ;;  %2862 = vmatpush.msrb.mxu2 %v2381_v59 }
 0x5bd   : > { %v2095_v44 = vadd.f32 1e-06, %v2088_v21  ;;  %v2181_v29 = vmul.f32 %v4391_v36, %v2171_v10 }
 0x5bf   : > { %3131 = vrsqrt.f32 %v2095_v44  ;;  %2820 = vmatmul.msk.f32.gmra.mxu0 %vm471_vm1, %v2181_v29  ;;  %2827 = vmatmul.msk.f32.gmra.mxu1 %vm471_vm1, %v2181_v29  ;;  %vm2144_vm12 = vweird.f32 %v2095_v44 }
 0x5c3   : > { %v2080_v0 = vpop.xlane.xlu2 %2079 }
 0x5c4   : > { %v2089_v4 = vmul.f32 %v2080_v0, %v3599_v58 }
 0x5c5   : > { %v3132_v57 = vpop.eup %3131 }
 0x5c6   : > { %v2139_v61 = vmul.f32 %v3132_v57, %v2095_v44  ;;  %v2096_v40 = vadd.f32 1e-06, %v2089_v4  ;;  %vm2145_vm11 = vweird.f32 %v3132_v57 }
 0x5c7   : > { %vm2146_vm13 = vmor %vm2144_vm12, %vm2145_vm11 }
 0x5c8   : > { %v2140_v20 = vmul.f32 %v3132_v57, %v2139_v61  ;;  %3133 = vrsqrt.f32 %v2096_v40  ;;  %vm2154_vm15 = vweird.f32 %v2096_v40 }
 0x5ca   : > { %v2141_v19 = vmul.f32 0.5, %v2140_v20 }
 0x5cc   : > { %v2142_v56 = vsub.f32 1.5, %v2141_v19 }
 0x5ce   : > { %v3134_v22 = vpop.eup %3133  ;;  %v2143_v15 = vmul.f32 %v3132_v57, %v2142_v56 }
 0x5cf   : > { %v2149_v23 = vmul.f32 %v3134_v22, %v2096_v40  ;;  %vm2155_vm14 = vweird.f32 %v3134_v22 }
 0x5d0   : > { %v2147_v31 = vsel %vm2146_vm13, %v3132_v57, %v2143_v15  ;;  %vm2156_vm0 = vmor %vm2154_vm15, %vm2155_vm14 }
 0x5d1   : > { %v2150_v37 = vmul.f32 %v3134_v22, %v2149_v23  ;;  %v2172_v33 = vmul.f32 %v2147_v31, %v4344_v1 }
 0x5d3   : > { %v2151_v55 = vmul.f32 0.5, %v2150_v37  ;;  %v2083_v26 = vpop.xlane.xlu0 %2082  ;;  %v2182_v18 = vmul.f32 %v4391_v36, %v2172_v33 }
 0x5d4   : > { %v2090_v49 = vmul.f32 %v2083_v26, %v3599_v58 }
 0x5d5   : > { %v2152_v35 = vsub.f32 1.5, %v2151_v55  ;;  %2821 = vmatmul.msk.f32.gmra.mxu0 %vm471_vm1, %v2182_v18  ;;  %2828 = vmatmul.msk.f32.gmra.mxu1 %vm471_vm1, %v2182_v18 }
 0x5d6   : > { %v2097_v14 = vadd.f32 1e-06, %v2090_v49 }
 0x5d7   : > { %v2153_v51 = vmul.f32 %v3134_v22, %v2152_v35 }
 0x5d8   : > { %3135 = vrsqrt.f32 %v2097_v14  ;;  %vm2164_vm3 = vweird.f32 %v2097_v14 }
 0x5d9   : > { %v2157_v38 = vsel %vm2156_vm0, %v3134_v22, %v2153_v51 }
 0x5da   : > { %v2173_v50 = vmul.f32 %v2157_v38, %v4349_v52 }
 0x5dc   : > { %v2183_v42 = vmul.f32 %v4391_v36, %v2173_v50 }
 0x5de   : > { %v3136_v45 = vpop.eup %3135  ;;  %2822 = vmatmul.msk.f32.gmra.mxu0 %vm471_vm1, %v2183_v42  ;;  %2829 = vmatmul.msk.f32.gmra.mxu1 %vm471_vm1, %v2183_v42 }
 0x5df   : > { %v2159_v17 = vmul.f32 %v3136_v45, %v2097_v14  ;;  %vm2165_vm2 = vweird.f32 %v3136_v45 }
 0x5e0   : > { %vm2166_vm4 = vmor %vm2164_vm3, %vm2165_vm2 }
 0x5e1   : > { %v2160_v27 = vmul.f32 %v3136_v45, %v2159_v17 }
 0x5e3   : > { %v2161_v28 = vmul.f32 0.5, %v2160_v27 }
 0x5e5   : > { %v2162_v46 = vsub.f32 1.5, %v2161_v28 }
 0x5e7   : > { %v2163_v3 = vmul.f32 %v3136_v45, %v2162_v46 }
 0x5e9   : > { %v2167_v47 = vsel %vm2166_vm4, %v3136_v45, %v2163_v3 }
 0x5ea   : > { %v2174_v2 = vmul.f32 %v2167_v47, %v4354_v9 }
 0x5ec   : > { %v2184_v32 = vmul.f32 %v4391_v36, %v2174_v2  ;;  %v2380_v36 = vld [vmem:[%s4417_s25 + $0x38] sm:$0xff] }
 0x5ed   : > { %2397 = vmatpush.msra.mxu0 %v2380_v36  ;;  %2863 = vmatpush.msrb.mxu2 %v2380_v36 }
 0x5ee   : > { %2823 = vmatmul.msk.f32.gmra.mxu0 %vm471_vm1, %v2184_v32  ;;  %2830 = vmatmul.msk.f32.vlgmr.msra.gmra.mxu3 %vm471_vm1, %v2184_v32 }
 0x5ef   : > { %2398 = vmatpush.msra.mxu0 %v2379_v62  ;;  %2864 = vmatpush.msrb.mxu2 %v2379_v62 }
 0x5f1   : > { %2399 = vmatpush.msra.mxu0 %v2378_v53  ;;  %2865 = vmatpush.msrb.mxu2 %v2378_v53 }
 0x5f3   : > { %2400 = vmatpush.msra.mxu0 %v2377_v13  ;;  %2866 = vmatpush.msrb.mxu2 %v2377_v13 }
 0x5f5   : > { %2401 = vmatpush.msra.mxu0 %v2376_v48  ;;  %2867 = vmatpush.msrb.mxu2 %v2376_v48 }
 0x5f7   : > { %2402 = vmatpush.msra.mxu0 %v2375_v43  ;;  %2868 = vmatpush.msrb.mxu2 %v2375_v43 }
 0x5f9   : > { %2403 = vmatpush.msra.mxu0 %v2374_v63  ;;  %2869 = vmatpush.msrb.mxu2 %v2374_v63 }
 0x5fb   : > { %2404 = vmatpush.msra.mxu0 %v2373_v11  ;;  %2870 = vmatpush.msrb.mxu2 %v2373_v11 }
 0x621   : > { %v2242_v7 = vpop.f32.mrf.mxu0  ;;  %v2280_v19 = vpop.f32.mrf.mxu1 }
 0x622   : > { %v2308_v54 = vmul.f32 0.044715, %v2242_v7  ;;  %v2301_v56 = vmul.f32 0.5, %v2242_v7 }
 0x624   : > { %v2315_v60 = vmul.f32 %v2308_v54, %v2242_v7 }
 0x626   : > { %v2322_v21 = vmul.f32 %v2315_v60, %v2242_v7 }
 0x628   : > { %v2329_v10 = vadd.f32 %v2322_v21, %v2242_v7 }
 0x62a   : > { %v2336_v44 = vmul.f32 0.7978846, %v2329_v10  ;;  %v2245_v29 = vpop.f32.mrf.mxu0  ;;  %v2283_v49 = vpop.f32.mrf.mxu1 }
 0x62b   : > { %v2309_v0 = vmul.f32 0.044715, %v2245_v29  ;;  %v2302_v26 = vmul.f32 0.5, %v2245_v29 }
 0x62c   : > { %3137 = vtanh.f32 %v2336_v44 }
 0x62d   : > { %v2316_v4 = vmul.f32 %v2309_v0, %v2245_v29 }
 0x62f   : > { %v2323_v57 = vmul.f32 %v2316_v4, %v2245_v29 }
 0x631   : > { %v2330_v61 = vadd.f32 %v2323_v57, %v2245_v29 }
 0x632   : > { %v3138_v40 = vpop.eup %3137  ;;  %v2248_v20 = vpop.f32.mrf.mxu0 }
 0x633   : > { %v2350_v22 = vadd.f32 1.0, %v3138_v40  ;;  %v2337_v15 = vmul.f32 0.7978846, %v2330_v61  ;;  %v2310_v16 = vmul.f32 0.044715, %v2248_v20  ;;  %v2303_v17 = vmul.f32 0.5, %v2248_v20  ;;  %v2286_v3 = vpop.f32.mrf.mxu1 }
 0x635   : > { %v2357_v24 = vmul.f32 %v2350_v22, %v2301_v56  ;;  %3139 = vtanh.f32 %v2337_v15  ;;  %v2317_v23 = vmul.f32 %v2310_v16, %v2248_v20 }
 0x637   : > { %v2364_v31 = vmul.f32 %v2357_v24, %v2280_v19  ;;  %v2324_v8 = vmul.f32 %v2317_v23, %v2248_v20 }
 0x639   : > { %v2331_v37 = vadd.f32 %v2324_v8, %v2248_v20  ;;  %2405 = vmatmul.f32.vlgmr.msra.gmra.mxu0 %v2364_v31 }
 0x63b   : > { %v3140_v33 = vpop.eup %3139  ;;  %v2338_v55 = vmul.f32 0.7978846, %v2331_v37 }
 0x63c   : > { %v2351_v18 = vadd.f32 1.0, %v3140_v33  ;;  %v2251_v25 = vpop.f32.mrf.mxu0  ;;  %v2289_v39 = vpop.f32.mrf.mxu1 }
 0x63d   : > { %3141 = vtanh.f32 %v2338_v55  ;;  %v2311_v35 = vmul.f32 0.044715, %v2251_v25  ;;  %v2304_v32 = vmul.f32 0.5, %v2251_v25 }
 0x63e   : > { %v2358_v14 = vmul.f32 %v2351_v18, %v2302_v26 }
 0x63f   : > { %v2318_v51 = vmul.f32 %v2311_v35, %v2251_v25 }
 0x640   : > { %v2365_v38 = vmul.f32 %v2358_v14, %v2283_v49 }
 0x641   : > { %v2325_v50 = vmul.f32 %v2318_v51, %v2251_v25 }
 0x642   : > { %2408 = vmatmul.f32.vlgmr.msrb.gmra.mxu2 %v2365_v38 }
 0x643   : > { %v3142_v42 = vpop.eup %3141  ;;  %v2332_v45 = vadd.f32 %v2325_v50, %v2251_v25 }
 0x644   : > { %v2352_v27 = vadd.f32 1.0, %v3142_v42 }
 0x645   : > { %v2339_v28 = vmul.f32 0.7978846, %v2332_v45 }
 0x646   : > { %v2359_v46 = vmul.f32 %v2352_v27, %v2303_v17 }
 0x647   : > { %3143 = vtanh.f32 %v2339_v28 }
 0x648   : > { %v2366_v47 = vmul.f32 %v2359_v46, %v2286_v3 }
 0x64a   : > { %2411 = vmatmul.f32.gmra.mxu2 %v2366_v47 }
 0x64d   : > { %v3144_v2 = vpop.eup %3143 }
 0x64e   : > { %v2353_v12 = vadd.f32 1.0, %v3144_v2 }
 0x650   : > { %v2360_v5 = vmul.f32 %v2353_v12, %v2304_v32 }
 0x652   : > { %v2367_v59 = vmul.f32 %v2360_v5, %v2289_v39  ;;  %v2254_v36 = vpop.f32.mrf.mxu0  ;;  %v2292_v0 = vpop.f32.mrf.mxu1 }
 0x653   : > { %v2312_v62 = vmul.f32 0.044715, %v2254_v36  ;;  %v2305_v10 = vmul.f32 0.5, %v2254_v36 }
 0x654   : > { %2414 = vmatmul.f32.gmra.mxu2 %v2367_v59 }
 0x655   : > { %v2319_v53 = vmul.f32 %v2312_v62, %v2254_v36 }
 0x657   : > { %v2326_v13 = vmul.f32 %v2319_v53, %v2254_v36 }
 0x659   : > { %v2333_v48 = vadd.f32 %v2326_v13, %v2254_v36 }
 0x65b   : > { %v2340_v43 = vmul.f32 0.7978846, %v2333_v48  ;;  %v2257_v63 = vpop.f32.mrf.mxu0  ;;  %v2295_v16 = vpop.f32.mrf.mxu1 }
 0x65c   : > { %v2313_v11 = vmul.f32 0.044715, %v2257_v63  ;;  %v2306_v19 = vmul.f32 0.5, %v2257_v63 }
 0x65d   : > { %3145 = vtanh.f32 %v2340_v43 }
 0x65e   : > { %v2320_v7 = vmul.f32 %v2313_v11, %v2257_v63 }
 0x660   : > { %v2327_v54 = vmul.f32 %v2320_v7, %v2257_v63 }
 0x662   : > { %v2334_v60 = vadd.f32 %v2327_v54, %v2257_v63 }
 0x663   : > { %v3146_v21 = vpop.eup %3145 }
 0x664   : > { %v2354_v44 = vadd.f32 1.0, %v3146_v21  ;;  %v2341_v29 = vmul.f32 0.7978846, %v2334_v60 }
 0x666   : > { %v2361_v4 = vmul.f32 %v2354_v44, %v2305_v10  ;;  %3147 = vtanh.f32 %v2341_v29 }
 0x668   : > { %v2368_v57 = vmul.f32 %v2361_v4, %v2292_v0 }
 0x66a   : > { %2417 = vmatmul.f32.gmra.mxu2 %v2368_v57 }
 0x66b   : > { %v2260_v61 = vpop.f32.mrf.mxu0 }
 0x66c   : > { %v3148_v40 = vpop.eup %3147  ;;  %v2314_v20 = vmul.f32 0.044715, %v2260_v61  ;;  %v2307_v33 = vmul.f32 0.5, %v2260_v61 }
 0x66d   : > { %v2355_v56 = vadd.f32 1.0, %v3148_v40 }
 0x66e   : > { %v2321_v22 = vmul.f32 %v2314_v20, %v2260_v61 }
 0x66f   : > { %v2362_v15 = vmul.f32 %v2355_v56, %v2306_v19 }
 0x670   : > { %v2328_v24 = vmul.f32 %v2321_v22, %v2260_v61 }
 0x671   : > { %v2369_v23 = vmul.f32 %v2362_v15, %v2295_v16  ;;  %v2298_v18 = vpop.f32.mrf.mxu3 }
 0x672   : > { %v2335_v31 = vadd.f32 %v2328_v24, %v2260_v61 }
 0x673   : > { %2420 = vmatmul.f32.gmra.mxu2 %v2369_v23 }
 0x674   : > { %v2342_v8 = vmul.f32 0.7978846, %v2335_v31 }
 0x676   : > { %3149 = vtanh.f32 %v2342_v8 }
 0x67c   : > { %v3150_v37 = vpop.eup %3149 }
 0x67d   : > { %v2356_v55 = vadd.f32 1.0, %v3150_v37 }
 0x67f   : > { %v2363_v26 = vmul.f32 %v2356_v55, %v2307_v33 }
 0x681   : > { %v2370_v25 = vmul.f32 %v2363_v26, %v2298_v18 }
 0x683   : > { %2423 = vmatmul.f32.gmra.mxu2 %v2370_v25 }
 0x6b6   : > { %v2406_v49 = vpop.f32.mrf.mxu0 }
 0x6b7   : > { %v4449_v35 = vadd.f32 %v2406_v49, %v4324_v30 }
 0x6c5   : > { %v2409_v14 = vpop.f32.mrf.mxu2 }
 0x6c6   : > { %v4452_v51 = vadd.f32 %v2409_v14, %v4329_v34 }
 0x6cd   : > { %v2412_v38 = vpop.f32.mrf.mxu2 }
 0x6ce   : > { %v4455_v50 = vadd.f32 %v2412_v38, %v4334_v6 }
 0x6d7   : > { %v2415_v42 = vpop.f32.mrf.mxu2 }
 0x6d8   : > { %v4458_v45 = vadd.f32 %v2415_v42, %v4339_v41 }
 0x6ed   : > { %v2418_v17 = vpop.f32.mrf.mxu2 }
 0x6ee   : > { %v4461_v27 = vadd.f32 %v2418_v17, %v4344_v1 }
 0x6f6   : > { %v2421_v28 = vpop.f32.mrf.mxu2 }
 0x6f7   : > { %v4464_v30 = vadd.f32 %v2421_v28, %v4349_v52 }
 0x703   : > { %2437 = sbr.rel (%p2832_p7) target bundleno = 1807 (0x70f), region = 92 }
 0x706   : > { %v2424_v46 = vpop.f32.mrf.mxu2 }
 0x707   : > { %v4467_v34 = vadd.f32 %v2424_v46, %v4354_v9 }
 0x708   : > { %2438 = vst.msk [vmem:[#allocation13] sm:$0xff] %vm471_vm1, %v4449_v35 }
 0x709   : > { %2439 = vst.msk [vmem:[#allocation13 + $0x8] sm:$0xff] %vm471_vm1, %v4452_v51 }
 0x70a   : > { %2440 = vst.msk [vmem:[#allocation13 + $0x10] sm:$0xff] %vm471_vm1, %v4455_v50 }
 0x70b   : > { %2441 = vst.msk [vmem:[#allocation13 + $0x18] sm:$0xff] %vm471_vm1, %v4458_v45 }
 0x70c   : > { %2442 = vst.msk [vmem:[#allocation13 + $0x20] sm:$0xff] %vm471_vm1, %v4461_v27 }
 0x70d   : > { %2443 = vst.msk [vmem:[#allocation13 + $0x28] sm:$0xff] %vm471_vm1, %v4464_v30 }
 0x70e   : > { %2444 = vst.msk [vmem:[#allocation13 + $0x30] sm:$0xff] %vm471_vm1, %v4467_v34 }
 0x70f PF: > { %p2833_p8 = scmp.ne.s32.totalorder %s3458_s18, 1 }
 0x711   : > { %2448 = sbr.rel (%p2833_p8) target bundleno = 1978 (0x7ba), region = 96 }
 0x716   : > { %v2454_v6 = vmul.f32 %v4461_v27, %v4461_v27  ;;  %v2452_v41 = vmul.f32 %v4455_v50, %v4455_v50  ;;  %v2450_v1 = vmul.f32 %v4449_v35, %v4449_v35  ;;  %v2455_v47 = vmul.f32 %v4464_v30, %v4464_v30  ;;  %v4529_v28 = vld [vmem:[%s4583_s10] ss:$0 sm:$0xff] }
 0x717   : > { %v2453_v2 = vmul.f32 %v4458_v45, %v4458_v45  ;;  %v2451_v32 = vmul.f32 %v4452_v51, %v4452_v51  ;;  %v2456_v59 = vmul.f32 %v4467_v34, %v4467_v34 }
 0x718   : > { %v2469_v52 = vsel %vm471_vm1, %v2454_v6, 0.0  ;;  %v2463_v9 = vsel %vm471_vm1, %v2452_v41, 0.0  ;;  %v2457_v3 = vsel %vm471_vm1, %v2450_v1, 0.0  ;;  %v2472_v12 = vsel %vm471_vm1, %v2455_v47, 0.0 }
 0x719   : > { %2470 = vadd.xlane.f32.xlu2 %v2469_v52  ;;  %2464 = vadd.xlane.f32.xlu1 %v2463_v9  ;;  %v2466_v5 = vsel %vm471_vm1, %v2453_v2, 0.0  ;;  %v2460_v39 = vsel %vm471_vm1, %v2451_v32, 0.0  ;;  %v2475_v36 = vsel %vm471_vm1, %v2456_v59, 0.0 }
 0x71a   : > { %2458 = vadd.xlane.f32.xlu0 %v2457_v3 }
 0x721   : > { %2473 = vadd.xlane.f32.xlu2 %v2472_v12  ;;  %2467 = vadd.xlane.f32.xlu1 %v2466_v5 }
 0x722   : > { %2461 = vadd.xlane.f32.xlu0 %v2460_v39 }
 0x72a   : > { %2476 = vadd.xlane.f32.xlu0 %v2475_v36 }
 0x78c   : > { %v2471_v62 = vpop.xlane.xlu2 %2470  ;;  %v2465_v53 = vpop.xlane.xlu1 %2464 }
 0x78d   : > { %v2482_v13 = vmul.f32 %v2471_v62, %v3599_v58  ;;  %v2480_v48 = vmul.f32 %v2465_v53, %v3599_v58  ;;  %v2459_v43 = vpop.xlane.xlu0 %2458 }
 0x78e   : > { %v2478_v63 = vmul.f32 %v2459_v43, %v3599_v58 }
 0x78f   : > { %v2489_v11 = vadd.f32 1e-06, %v2482_v13  ;;  %v2487_v7 = vadd.f32 1e-06, %v2480_v48 }
 0x790   : > { %v2485_v54 = vadd.f32 1e-06, %v2478_v63 }
 0x791   : > { %3159 = vrsqrt.f32 %v2489_v11  ;;  %vm2538_vm5 = vweird.f32 %v2489_v11  ;;  %vm2518_vm7 = vweird.f32 %v2487_v7 }
 0x792   : > { %3161 = vrsqrt.f32 %v2487_v7  ;;  %vm2498_vm11 = vweird.f32 %v2485_v54 }
 0x793   : > { %3163 = vrsqrt.f32 %v2485_v54 }
 0x794   : > { %v2474_v60 = vpop.xlane.xlu2 %2473  ;;  %v2468_v21 = vpop.xlane.xlu1 %2467 }
 0x795   : > { %v2483_v10 = vmul.f32 %v2474_v60, %v3599_v58  ;;  %v2481_v44 = vmul.f32 %v2468_v21, %v3599_v58  ;;  %v2462_v29 = vpop.xlane.xlu0 %2461 }
 0x796   : > { %v2479_v0 = vmul.f32 %v2462_v29, %v3599_v58 }
 0x797   : > { %v3160_v4 = vpop.eup %3159  ;;  %v4514_v57 = vadd.f32 1e-06, %v2483_v10  ;;  %v4516_v61 = vadd.f32 1e-06, %v2481_v44 }
 0x798   : > { %v3162_v40 = vpop.eup %3161  ;;  %v2533_v20 = vmul.f32 %v3160_v4, %v2489_v11  ;;  %v4518_v19 = vadd.f32 1e-06, %v2479_v0  ;;  %vm2539_vm6 = vweird.f32 %v3160_v4 }
 0x799   : > { %v3164_v56 = vpop.eup %3163  ;;  %v2513_v22 = vmul.f32 %v3162_v40, %v2487_v7  ;;  %3165 = vrsqrt.f32 %v4514_v57  ;;  %vm2519_vm8 = vweird.f32 %v3162_v40  ;;  %vm2540_vm10 = vmor %vm2538_vm5, %vm2539_vm6  ;;  %vm2548_vm14 = vweird.f32 %v4514_v57 }
 0x79a   : > { %v2534_v15 = vmul.f32 %v3160_v4, %v2533_v20  ;;  %v2493_v16 = vmul.f32 %v3164_v56, %v2485_v54  ;;  %3167 = vrsqrt.f32 %v4516_v61  ;;  %vm2499_vm9 = vweird.f32 %v3164_v56  ;;  %vm2520_vm12 = vmor %vm2518_vm7, %vm2519_vm8 }
 0x79b   : > { %v2514_v24 = vmul.f32 %v3162_v40, %v2513_v22  ;;  %3169 = vrsqrt.f32 %v4518_v19  ;;  %vm2500_vm13 = vmor %vm2498_vm11, %vm2499_vm9  ;;  %vm2528_vm0 = vweird.f32 %v4516_v61  ;;  %vm2508_vm6 = vweird.f32 %v4518_v19 }
 0x79c   : > { %v2535_v23 = vmul.f32 0.5, %v2534_v15  ;;  %v2494_v31 = vmul.f32 %v3164_v56, %v2493_v16 }
 0x79d   : > { %v2515_v8 = vmul.f32 0.5, %v2514_v24  ;;  %v2477_v37 = vpop.xlane.xlu0 %2476 }
 0x79e   : > { %v2536_v33 = vsub.f32 1.5, %v2535_v23  ;;  %v2495_v55 = vmul.f32 0.5, %v2494_v31  ;;  %v2484_v26 = vmul.f32 %v2477_v37, %v3599_v58 }
 0x79f   : > { %v3166_v18 = vpop.eup %3165  ;;  %v2516_v25 = vsub.f32 1.5, %v2515_v8 }
 0x7a0   : > { %v3168_v49 = vpop.eup %3167  ;;  %v2537_v14 = vmul.f32 %v3160_v4, %v2536_v33  ;;  %v2496_v38 = vsub.f32 1.5, %v2495_v55  ;;  %v2543_v42 = vmul.f32 %v3166_v18, %v4514_v57  ;;  %v2491_v6 = vadd.f32 1e-06, %v2484_v26 }
 0x7a1   : > { %v3170_v17 = vpop.eup %3169  ;;  %v2517_v46 = vmul.f32 %v3162_v40, %v2516_v25  ;;  %v2523_v58 = vmul.f32 %v3168_v49, %v4516_v61  ;;  %vm2549_vm15 = vweird.f32 %v3166_v18  ;;  %vm2529_vm2 = vweird.f32 %v3168_v49 }
 0x7a2   : > { %v2541_v41 = vsel %vm2540_vm10, %v3160_v4, %v2537_v14  ;;  %v2497_v1 = vmul.f32 %v3164_v56, %v2496_v38  ;;  %v2544_v52 = vmul.f32 %v3166_v18, %v2543_v42  ;;  %v2503_v9 = vmul.f32 %v3170_v17, %v4518_v19  ;;  %vm2550_vm4 = vmor %vm2548_vm14, %vm2549_vm15 }
 0x7a3   : > { %v2566_v3 = vmul.f32 %v2541_v41, %v4461_v27  ;;  %v2521_v47 = vsel %vm2520_vm12, %v3162_v40, %v2517_v46  ;;  %v2524_v2 = vmul.f32 %v3168_v49, %v2523_v58  ;;  %3171 = vrsqrt.f32 %v2491_v6  ;;  %vm2530_vm5 = vmor %vm2528_vm0, %vm2529_vm2 }
 0x7a4   : > { %v2564_v32 = vmul.f32 %v2521_v47, %v4455_v50  ;;  %v2501_v12 = vsel %vm2500_vm13, %v3164_v56, %v2497_v1  ;;  %v2545_v5 = vmul.f32 0.5, %v2544_v52  ;;  %v2504_v39 = vmul.f32 %v3170_v17, %v2503_v9 }
 0x7a5   : > { %v2576_v59 = vmul.f32 %v4529_v28, %v2566_v3  ;;  %v2562_v36 = vmul.f32 %v2501_v12, %v4449_v35  ;;  %v2525_v62 = vmul.f32 0.5, %v2524_v2  ;;  %vm2509_vm3 = vweird.f32 %v3170_v17 }
 0x7a6   : > { %v2574_v53 = vmul.f32 %v4529_v28, %v2564_v32  ;;  %v2546_v27 = vsub.f32 1.5, %v2545_v5  ;;  %v2505_v13 = vmul.f32 0.5, %v2504_v39  ;;  %vm2510_vm7 = vmor %vm2508_vm6, %vm2509_vm3  ;;  %vm2558_vm9 = vweird.f32 %v2491_v6 }
 0x7a7   : > { %2583 = vst.msk [vmem:[#allocation13 + $0x20] sm:$0xff] %vm471_vm1, %v2576_v59  ;;  %v2572_v48 = vmul.f32 %v4529_v28, %v2562_v36  ;;  %v2526_v43 = vsub.f32 1.5, %v2525_v62 }
 0x7a8   : > { %2581 = vst.msk [vmem:[#allocation13 + $0x10] sm:$0xff] %vm471_vm1, %v2574_v53  ;;  %v2547_v50 = vmul.f32 %v3166_v18, %v2546_v27  ;;  %v2506_v63 = vsub.f32 1.5, %v2505_v13 }
 0x7a9   : > { %2579 = vst.msk [vmem:[#allocation13] sm:$0xff] %vm471_vm1, %v2572_v48  ;;  %v2527_v35 = vmul.f32 %v3168_v49, %v2526_v43  ;;  %v3172_v54 = vpop.eup %3171 }
 0x7aa   : > { %v2551_v11 = vsel %vm2550_vm4, %v3166_v18, %v2547_v50  ;;  %v2507_v7 = vmul.f32 %v3170_v17, %v2506_v63  ;;  %v2553_v29 = vmul.f32 %v3172_v54, %v2491_v6  ;;  %vm2559_vm8 = vweird.f32 %v3172_v54 }
 0x7ab   : > { %v2567_v60 = vmul.f32 %v2551_v11, %v4464_v30  ;;  %v2531_v21 = vsel %vm2530_vm5, %v3168_v49, %v2527_v35  ;;  %vm2560_vm10 = vmor %vm2558_vm9, %vm2559_vm8 }
 0x7ac   : > { %v2565_v10 = vmul.f32 %v2531_v21, %v4458_v45  ;;  %v2511_v44 = vsel %vm2510_vm7, %v3170_v17, %v2507_v7  ;;  %v2554_v61 = vmul.f32 %v3172_v54, %v2553_v29 }
 0x7ad   : > { %v2577_v0 = vmul.f32 %v4529_v28, %v2567_v60  ;;  %v2563_v4 = vmul.f32 %v2511_v44, %v4452_v51 }
 0x7ae   : > { %v2575_v57 = vmul.f32 %v4529_v28, %v2565_v10  ;;  %v2555_v30 = vmul.f32 0.5, %v2554_v61 }
 0x7af   : > { %2584 = vst.msk [vmem:[#allocation13 + $0x28] sm:$0xff] %vm471_vm1, %v2577_v0  ;;  %v2573_v40 = vmul.f32 %v4529_v28, %v2563_v4 }
 0x7b0   : > { %2582 = vst.msk [vmem:[#allocation13 + $0x18] sm:$0xff] %vm471_vm1, %v2575_v57  ;;  %v2556_v20 = vsub.f32 1.5, %v2555_v30 }
 0x7b1   : > { %2580 = vst.msk [vmem:[#allocation13 + $0x8] sm:$0xff] %vm471_vm1, %v2573_v40 }
 0x7b2   : > { %v2557_v45 = vmul.f32 %v3172_v54, %v2556_v20 }
 0x7b4   : > { %v2561_v19 = vsel %vm2560_vm10, %v3172_v54, %v2557_v45 }
 0x7b5   : > { %v2568_v51 = vmul.f32 %v2561_v19, %v4467_v34 }
 0x7b7   : > { %v2578_v56 = vmul.f32 %v4529_v28, %v2568_v51 }
 0x7b9   : > { %2585 = vst.msk [vmem:[#allocation13 + $0x30] sm:$0xff] %vm471_vm1, %v2578_v56 }
 0x7ba PF: > { %s2593_s14 = sshll.u32 %s4584_s11, 4  ;;  %s3389_s15 = smov [#allocation13]   ;;  %s2594_s14 = int_to_ptr.hbm [resolvable:$true] %s2593_s14 }
 0x7bb   : > { %s2591_s30 = sshll.u32 %s3389_s15, 4  ;;  %s3390_s16 = smov 128   ;;  %s2592_s30 = int_to_ptr.vmem [resolvable:$true] %s2591_s30 }
 0x7bc   : > { %s3391_s19 = smov 8  }
 0x7bd   : > { %2892 = dma.vmem_to_hbm [thread:$0]  (%p2832_p7), %s2592_s30, 896, %s2594_s14, [#allocation6], %s3390_s16, %s3390_s16, %s3391_s19  }
 0x7be   : > { %3368 = dma.done.wait (%p2832_p7), [#allocation6], 896  }
 0x7bf   : > { %3370 = vsyncadd (%p2832_p7), [#allocation6], 4294966400 }
 0x7c0 PF: > { %s25_s17 = sadd.s32 1, %s3373_s17  }
 0x7c1   : > { %p22_p9 = scmp.ge.s32.totalorder %s25_s17, 4  }
 0x7c3   :  { %24 = sbr.rel (!%p22_p9) target bundleno = 6 (0x6), region = 132 }
 0x7c8   :  { %2610 = vsyncpa [#allocation5], 1 }
 0x7c9   :  { %2612 = vsyncpa [#allocation5 + $0x1], 1 }
 0x7ca   :  { %2613 = vsyncpa [#allocation8], 1 }
 0x7cb   :  { %2614 = vsyncpa [#allocation11], 1 }
 0x7cc   :  { %2615 = vsyncpa [#allocation6], 1 }
 0x7cd   :  { %2617 = vsyncpa [#allocation6 + $0x1], 1 }

</bundles_post_ra>
